<compile_context>
chip_gen: v6e
topology: v6e:2x2x1
jax: 0.10.0
libtpu: 0.0.40
codegen_flags: <defaults>
</compile_context>

<pallas_src>
import functools

import jax
import jax.numpy as jnp
from jax import lax
from jax.experimental import pallas as pl
from jax.experimental.pallas import tpu as pltpu

D_IN = 512     # CLIP text hidden size
D_OUT = 768    # projection size of self.fc
LN_EPS = 1e-5        # torch.nn.LayerNorm default
L2_EPS = 1e-12       # torch.nn.functional.normalize default


def _round_up(n, m):
  return ((n + m - 1) // m) * m


def _fc_norm_kernel(tok_ref, pool_ref, w_ref, b_ref, word_ref, text_ref):
  """LayerNorm(512) -> Linear(512,768) -> L2 normalize, rows = independent."""
  w = w_ref[...]          # [512, 768] bf16, gamma pre-folded
  b = b_ref[...]          # [1, 768]   f32,  beta @ w.T

  def ln_proj_l2(x):
    x = x.astype(jnp.float32)
    # Single-pass LayerNorm statistics: E[x], E[x^2].
    s1 = jnp.sum(x, axis=-1, keepdims=True)
    s2 = jnp.sum(x * x, axis=-1, keepdims=True)
    mean = s1 * (1.0 / D_IN)
    var = jnp.maximum(s2 * (1.0 / D_IN) - mean * mean, 0.0)
    xn = (x - mean) * lax.rsqrt(var + LN_EPS)
    # Linear: bf16 operands on the MXU, f32 accumulate, f32 post-bias.
    y = jnp.dot(xn.astype(jnp.bfloat16), w,
                preferred_element_type=jnp.float32) + b
    # F.normalize(dim=-1) via EUP rsqrt on the squared norm (no divide).
    nrm2 = jnp.sum(y * y, axis=-1, keepdims=True)
    inv = lax.rsqrt(jnp.maximum(nrm2, L2_EPS * L2_EPS))
    return y * inv

  # Token tile of the current grid step.
  word_ref[...] = ln_proj_l2(tok_ref[...]).astype(word_ref.dtype)

  # Pooler rows: tiny, VMEM-resident output written once (step 0).
  @pl.when(pl.program_id(0) == 0)
  def _():
    text_ref[...] = ln_proj_l2(pool_ref[...]).astype(text_ref.dtype)


def fused_fc_normalize(tokens, pooler, w_eff, b_eff, *, tm, out_dtype):
  """One Pallas launch over all token rows + the pooler rows.

  tokens: [R, 512]  flattened last_hidden_state rows
  pooler: [B, 512]  pooler_output rows
  w_eff : [512,768] bf16  (w.T scaled by LayerNorm gamma)
  b_eff : [1, 768]  f32   (beta @ w.T)
  Returns (word_rows [R,768], text_embeddings [B,768]) in out_dtype.
  """
  rows = tokens.shape[0]
  bsz = pooler.shape[0]
  # 16-sublane aligned tile (bf16 packing); single grid step when rows fit.
  tm_eff = min(_round_up(tm, 16), _round_up(rows, 16))
  grid = pl.cdiv(rows, tm_eff)

  # Per-step VMEM footprint estimate; raise the scoped limit only if a caller
  # pushes tm past what the smallest (v5e, 16 MiB) default covers.
  est = 2 * tm_eff * (D_IN + D_OUT) * 4 + 4 * D_IN * D_OUT + (6 << 20)
  cp_kwargs = {"dimension_semantics": ("arbitrary",)}
  if est > (14 << 20):
    cp_kwargs["vmem_limit_bytes"] = int(est)

  word, text = pl.pallas_call(
      _fc_norm_kernel,
      out_shape=(
          jax.ShapeDtypeStruct((rows, D_OUT), out_dtype),
          jax.ShapeDtypeStruct((bsz, D_OUT), out_dtype),
      ),
      grid_spec=pltpu.PrefetchScalarGridSpec(
          num_scalar_prefetch=0,
          grid=(grid,),
          in_specs=[
              pl.BlockSpec((tm_eff, D_IN), lambda i: (i, 0)),
              # Constant block indices -> resident in VMEM across the grid.
              pl.BlockSpec((bsz, D_IN), lambda i: (0, 0)),
              pl.BlockSpec((D_IN, D_OUT), lambda i: (0, 0)),
              pl.BlockSpec((1, D_OUT), lambda i: (0, 0)),
          ],
          out_specs=(
              pl.BlockSpec((tm_eff, D_OUT), lambda i: (i, 0)),
              pl.BlockSpec((bsz, D_OUT), lambda i: (0, 0)),
          ),
      ),
      compiler_params=pltpu.CompilerParams(**cp_kwargs),
  )(tokens, pooler, w_eff, b_eff)
  return word, text


def prepare_fc_params(gamma, beta, w):
  """One-time preparation of self.fc parameters (do NOT redo per forward).

  Folds the LayerNorm affine into the projection:
    y = ((x-mean)*rsqrt(var)) @ (diag(gamma) @ w.T) + beta @ w.T
  """
  w_t = jnp.transpose(w).astype(jnp.float32)                 # [512, 768]
  w_eff = (w_t * gamma.reshape(D_IN, 1).astype(jnp.float32)
           ).astype(jnp.bfloat16)                            # [512, 768] bf16
  b_eff = beta.reshape(1, D_IN).astype(jnp.float32) @ w_t    # [1, 768]  f32
  return w_eff, b_eff


@functools.partial(jax.jit, static_argnames=("tm", "out_dtype"))
def text_clip_forward(last_hidden_state, pooler_output, w_eff, b_eff,
                      *, tm=512, out_dtype=jnp.float32):
  """Text_Clip.forward with Topk_Selection=False / mode='train'.

  last_hidden_state: [B, L, 512]  (CLIP text_model last_hidden_state)
  pooler_output:     [B, 512]
  Returns (text_embeddings [B,768], word_embeddings [B, L-1, 768]).
  """
  B, L, _ = last_hidden_state.shape
  # Contiguous (free) flatten; the one wasted token-0 row per sequence avoids
  # a slice+concat HBM round trip before the kernel.
  tokens = last_hidden_state.reshape(B * L, D_IN)
  word_flat, text_embeddings = fused_fc_normalize(
      tokens, pooler_output, w_eff, b_eff, tm=tm, out_dtype=out_dtype)
  word_embeddings = word_flat.reshape(B, L, D_OUT)[:, 1:, :]  # [B, L-1, 768]
  return text_embeddings, word_embeddings


def _reference(last_hidden_state, pooler_output, gamma, beta, w):
  def fc_norm(x):
    mean = jnp.mean(x, axis=-1, keepdims=True)
    var = jnp.mean((x - mean) ** 2, axis=-1, keepdims=True)
    xn = (x - mean) / jnp.sqrt(var + LN_EPS) * gamma + beta
    y = xn @ w.T
    nrm = jnp.linalg.norm(y, axis=-1, keepdims=True)
    return y / jnp.maximum(nrm, L2_EPS)
  return fc_norm(pooler_output), fc_norm(last_hidden_state[:, 1:, :])


if __name__ == "__main__":
  B, L = 2, 77   # CLIP max_length = 77 tokens
  key = jax.random.PRNGKey(0)
  k1, k2, k3, k4, k5 = jax.random.split(key, 5)

  # Synthetic stand-ins for the pretrained CLIP text_model outputs.
  last_hidden_state = jax.random.normal(k1, (B, L, D_IN), dtype=jnp.float32)
  pooler_output = jax.random.normal(k2, (B, D_IN), dtype=jnp.float32)

  # Deterministic parameter init for self.fc (LayerNorm(512) + Linear(512,768)).
  gamma = 1.0 + 0.01 * jax.random.normal(k3, (D_IN,), dtype=jnp.float32)
  beta = 0.01 * jax.random.normal(k4, (D_IN,), dtype=jnp.float32)
  w = jax.random.normal(k5, (D_OUT, D_IN), dtype=jnp.float32) * (D_IN ** -0.5)

  w_eff, b_eff = prepare_fc_params(gamma, beta, w)
  text_emb, word_emb = text_clip_forward(
      last_hidden_state, pooler_output, w_eff, b_eff)
  jax.block_until_ready((text_emb, word_emb))

  ref_text, ref_word = _reference(
      last_hidden_state, pooler_output, gamma, beta, w)
  assert text_emb.shape == (B, D_OUT)
  assert word_emb.shape == (B, L - 1, D_OUT)
  # Tolerance loosened for the bf16 MXU contraction (f32 accumulate).
  assert jnp.allclose(text_emb, ref_text, atol=2e-2, rtol=2e-2)
  assert jnp.allclose(word_emb, ref_word, atol=2e-2, rtol=2e-2)

  print("KERNEL_OK")
</pallas_src>

<mosaic_0001>
module attributes {stable_mosaic.version = 11 : i64} {
  func.func @_fc_norm_kernel(%arg0: i32, %arg1: memref<160x512xf32, #tpu.memory_space<vmem>>, %arg2: memref<2x512xf32, #tpu.memory_space<vmem>>, %arg3: memref<512x768xbf16, #tpu.memory_space<vmem>>, %arg4: memref<1x768xf32, #tpu.memory_space<vmem>>, %arg5: memref<160x768xf32, #tpu.memory_space<vmem>>, %arg6: memref<2x768xf32, #tpu.memory_space<vmem>>) attributes {dimension_semantics = [#tpu.dimension_semantics<arbitrary>], iteration_bounds = array<i64: 1>, scalar_prefetch = 0 : i64, scratch_operands = 0 : i64, tpu.core_type = #tpu.core_type<tc>, window_params = [{transform_indices = @transform_0, window_bounds = array<i64: 160, 512>}, {pipeline_mode = #tpu.pipeline_mode<synchronous>, transform_indices = @transform_1, window_bounds = array<i64: 2, 512>}, {pipeline_mode = #tpu.pipeline_mode<synchronous>, transform_indices = @transform_2, window_bounds = array<i64: 512, 768>}, {pipeline_mode = #tpu.pipeline_mode<synchronous>, transform_indices = @transform_3, window_bounds = array<i64: 1, 768>}, {transform_indices = @transform_4, window_bounds = array<i64: 160, 768>}, {pipeline_mode = #tpu.pipeline_mode<synchronous>, transform_indices = @transform_5, window_bounds = array<i64: 2, 768>}]} {
    %c0 = arith.constant 0 : index
    %c0_0 = arith.constant 0 : index
    %0 = vector.load %arg3[%c0, %c0_0] : memref<512x768xbf16, #tpu.memory_space<vmem>>, vector<512x768xbf16>
    %c0_1 = arith.constant 0 : index
    %c0_2 = arith.constant 0 : index
    %1 = vector.load %arg4[%c0_1, %c0_2] : memref<1x768xf32, #tpu.memory_space<vmem>>, vector<1x768xf32>
    %c0_3 = arith.constant 0 : index
    %c0_4 = arith.constant 0 : index
    %2 = vector.load %arg1[%c0_3, %c0_4] : memref<160x512xf32, #tpu.memory_space<vmem>>, vector<160x512xf32>
    %cst = arith.constant dense<0.000000e+00> : vector<160xf32>
    %3 = vector.multi_reduction <add>, %2, %cst [1] : vector<160x512xf32> to vector<160xf32>
    %4 = vector.shape_cast %3 : vector<160xf32> to vector<160x1xf32>
    %5 = arith.mulf %2, %2 : vector<160x512xf32>
    %cst_5 = arith.constant dense<0.000000e+00> : vector<160xf32>
    %6 = vector.multi_reduction <add>, %5, %cst_5 [1] : vector<160x512xf32> to vector<160xf32>
    %7 = vector.shape_cast %6 : vector<160xf32> to vector<160x1xf32>
    %cst_6 = arith.constant 0.001953125 : f32
    %8 = vector.broadcast %cst_6 : f32 to vector<160x1xf32>
    %9 = arith.mulf %4, %8 : vector<160x1xf32>
    %cst_7 = arith.constant 0.001953125 : f32
    %10 = vector.broadcast %cst_7 : f32 to vector<160x1xf32>
    %11 = arith.mulf %7, %10 : vector<160x1xf32>
    %12 = arith.mulf %9, %9 : vector<160x1xf32>
    %13 = arith.subf %11, %12 : vector<160x1xf32>
    %cst_8 = arith.constant 0.000000e+00 : f32
    %14 = vector.broadcast %cst_8 : f32 to vector<160x1xf32>
    %15 = arith.maximumf %13, %14 : vector<160x1xf32>
    %16 = vector.broadcast %9 : vector<160x1xf32> to vector<160x512xf32>
    %17 = arith.subf %2, %16 : vector<160x512xf32>
    %cst_9 = arith.constant 9.99999974E-6 : f32
    %18 = vector.broadcast %cst_9 : f32 to vector<160x1xf32>
    %19 = arith.addf %15, %18 : vector<160x1xf32>
    %20 = math.rsqrt %19 : vector<160x1xf32>
    %21 = vector.broadcast %20 : vector<160x1xf32> to vector<160x512xf32>
    %22 = arith.mulf %17, %21 : vector<160x512xf32>
    %23 = arith.truncf %22 : vector<160x512xf32> to vector<160x512xbf16>
    %cst_10 = arith.constant dense<0.000000e+00> : vector<160x768xf32>
    %24 = tpu.matmul %23, %0, %cst_10 {dimension_numbers = #tpu.dot_dimension_numbers<[1], [0], [0], [1], [0, 0, 1, 1], [], []>} : vector<160x512xbf16>, vector<512x768xbf16>, vector<160x768xf32> -> vector<160x768xf32>
    %25 = vector.broadcast %1 : vector<1x768xf32> to vector<160x768xf32>
    %26 = arith.addf %24, %25 : vector<160x768xf32>
    %27 = arith.mulf %26, %26 : vector<160x768xf32>
    %cst_11 = arith.constant dense<0.000000e+00> : vector<160xf32>
    %28 = vector.multi_reduction <add>, %27, %cst_11 [1] : vector<160x768xf32> to vector<160xf32>
    %29 = vector.shape_cast %28 : vector<160xf32> to vector<160x1xf32>
    %cst_12 = arith.constant 1.000000e-24 : f32
    %30 = vector.broadcast %cst_12 : f32 to vector<160x1xf32>
    %31 = arith.maximumf %29, %30 : vector<160x1xf32>
    %32 = math.rsqrt %31 : vector<160x1xf32>
    %33 = vector.broadcast %32 : vector<160x1xf32> to vector<160x768xf32>
    %34 = arith.mulf %26, %33 : vector<160x768xf32>
    %c0_13 = arith.constant 0 : index
    %c0_14 = arith.constant 0 : index
    %35 = vector.load %arg5[%c0_13, %c0_14] : memref<160x768xf32, #tpu.memory_space<vmem>>, vector<160x768xf32>
    tpu.vector_store %arg5[%c0_13, %c0_14], %34 {strides = array<i32>} : memref<160x768xf32, #tpu.memory_space<vmem>>, vector<160x768xf32>,
    %c0_i32 = arith.constant 0 : i32
    %36 = arith.cmpi eq, %arg0, %c0_i32 : i32
    %37 = arith.extui %36 : i1 to i32
    %c0_i32_15 = arith.constant 0 : i32
    %38 = arith.cmpi ne, %37, %c0_i32_15 : i32
    scf.if %38 {
      %c0_16 = arith.constant 0 : index
      %c0_17 = arith.constant 0 : index
      %39 = vector.load %arg2[%c0_16, %c0_17] : memref<2x512xf32, #tpu.memory_space<vmem>>, vector<2x512xf32>
      %cst_18 = arith.constant dense<0.000000e+00> : vector<2xf32>
      %40 = vector.multi_reduction <add>, %39, %cst_18 [1] : vector<2x512xf32> to vector<2xf32>
      %41 = vector.shape_cast %40 : vector<2xf32> to vector<2x1xf32>
      %42 = arith.mulf %39, %39 : vector<2x512xf32>
      %cst_19 = arith.constant dense<0.000000e+00> : vector<2xf32>
      %43 = vector.multi_reduction <add>, %42, %cst_19 [1] : vector<2x512xf32> to vector<2xf32>
      %44 = vector.shape_cast %43 : vector<2xf32> to vector<2x1xf32>
      %cst_20 = arith.constant 0.001953125 : f32
      %45 = vector.broadcast %cst_20 : f32 to vector<2x1xf32>
      %46 = arith.mulf %41, %45 : vector<2x1xf32>
      %cst_21 = arith.constant 0.001953125 : f32
      %47 = vector.broadcast %cst_21 : f32 to vector<2x1xf32>
      %48 = arith.mulf %44, %47 : vector<2x1xf32>
      %49 = arith.mulf %46, %46 : vector<2x1xf32>
      %50 = arith.subf %48, %49 : vector<2x1xf32>
      %cst_22 = arith.constant 0.000000e+00 : f32
      %51 = vector.broadcast %cst_22 : f32 to vector<2x1xf32>
      %52 = arith.maximumf %50, %51 : vector<2x1xf32>
      %53 = vector.broadcast %46 : vector<2x1xf32> to vector<2x512xf32>
      %54 = arith.subf %39, %53 : vector<2x512xf32>
      %cst_23 = arith.constant 9.99999974E-6 : f32
      %55 = vector.broadcast %cst_23 : f32 to vector<2x1xf32>
      %56 = arith.addf %52, %55 : vector<2x1xf32>
      %57 = math.rsqrt %56 : vector<2x1xf32>
      %58 = vector.broadcast %57 : vector<2x1xf32> to vector<2x512xf32>
      %59 = arith.mulf %54, %58 : vector<2x512xf32>
      %60 = arith.truncf %59 : vector<2x512xf32> to vector<2x512xbf16>
      %cst_24 = arith.constant dense<0.000000e+00> : vector<2x768xf32>
      %61 = tpu.matmul %60, %0, %cst_24 {dimension_numbers = #tpu.dot_dimension_numbers<[1], [0], [0], [1], [0, 0, 1, 1], [], []>} : vector<2x512xbf16>, vector<512x768xbf16>, vector<2x768xf32> -> vector<2x768xf32>
      %62 = vector.broadcast %1 : vector<1x768xf32> to vector<2x768xf32>
      %63 = arith.addf %61, %62 : vector<2x768xf32>
      %64 = arith.mulf %63, %63 : vector<2x768xf32>
      %cst_25 = arith.constant dense<0.000000e+00> : vector<2xf32>
      %65 = vector.multi_reduction <add>, %64, %cst_25 [1] : vector<2x768xf32> to vector<2xf32>
      %66 = vector.shape_cast %65 : vector<2xf32> to vector<2x1xf32>
      %cst_26 = arith.constant 1.000000e-24 : f32
      %67 = vector.broadcast %cst_26 : f32 to vector<2x1xf32>
      %68 = arith.maximumf %66, %67 : vector<2x1xf32>
      %69 = math.rsqrt %68 : vector<2x1xf32>
      %70 = vector.broadcast %69 : vector<2x1xf32> to vector<2x768xf32>
      %71 = arith.mulf %63, %70 : vector<2x768xf32>
      %c0_27 = arith.constant 0 : index
      %c0_28 = arith.constant 0 : index
      %72 = vector.load %arg6[%c0_27, %c0_28] : memref<2x768xf32, #tpu.memory_space<vmem>>, vector<2x768xf32>
      tpu.vector_store %arg6[%c0_27, %c0_28], %71 {strides = array<i32>} : memref<2x768xf32, #tpu.memory_space<vmem>>, vector<2x768xf32>,
    } else {
    }
    return
  }
  func.func @transform_0(%arg0: i32) -> (i32, i32) {
    %c0_i32 = arith.constant 0 : i32
    %c0_i32_0 = arith.constant 0 : i32
    return %arg0, %c0_i32 : i32, i32
  }
  func.func @transform_1(%arg0: i32) -> (i32, i32) {
    %c0_i32 = arith.constant 0 : i32
    %c0_i32_0 = arith.constant 0 : i32
    %c0_i32_1 = arith.constant 0 : i32
    return %c0_i32, %c0_i32_0 : i32, i32
  }
  func.func @transform_2(%arg0: i32) -> (i32, i32) {
    %c0_i32 = arith.constant 0 : i32
    %c0_i32_0 = arith.constant 0 : i32
    %c0_i32_1 = arith.constant 0 : i32
    return %c0_i32, %c0_i32_0 : i32, i32
  }
  func.func @transform_3(%arg0: i32) -> (i32, i32) {
    %c0_i32 = arith.constant 0 : i32
    %c0_i32_0 = arith.constant 0 : i32
    %c0_i32_1 = arith.constant 0 : i32
    return %c0_i32, %c0_i32_0 : i32, i32
  }
  func.func @transform_4(%arg0: i32) -> (i32, i32) {
    %c0_i32 = arith.constant 0 : i32
    %c0_i32_0 = arith.constant 0 : i32
    return %arg0, %c0_i32 : i32, i32
  }
  func.func @transform_5(%arg0: i32) -> (i32, i32) {
    %c0_i32 = arith.constant 0 : i32
    %c0_i32_0 = arith.constant 0 : i32
    %c0_i32_1 = arith.constant 0 : i32
    return %c0_i32, %c0_i32_0 : i32, i32
  }
}

</mosaic_0001>

<bundles_post_ra>
// kernel: text_clip_forward.1
= control target key start
LH: loop header
LB: loop body
LE: loop exit
PB: predicated region body
PF: predicated region fallthrough
CT: control target
= control target key end

     0   :  { %vm3269_vm0 = vcmask 1041408   ;;  %s8050_s0 = inlined_call_operand.vmem [shape: f32[154,512], index: 0, kind: input, shape index: {}]   ;;  %s8051_s1 = inlined_call_operand.vmem [shape: f32[2,512], index: 1, kind: input, shape index: {}]   ;;  %s8052_s2 = inlined_call_operand.vmem [shape: bf16[512,768], index: 2, kind: input, shape index: {}]   ;;  %s8053_s3 = inlined_call_operand.vmem [shape: f32[1,768], index: 3, kind: input, shape index: {}]   ;;  %s8054_s4 = inlined_call_operand.vmem [shape: f32[154,768], index: 4, kind: output, shape index: {0}]   ;;  %s8055_s5 = inlined_call_operand.hbm [shape: f32[2,768], index: 5, kind: output, shape index: {1}]  }
   0x1   :  { %v213_v0 = vld [vmem:[%s8050_s0] sm:$0xff]  ;;  %v214_v1 = vld [vmem:[%s8050_s0 + $0x8] sm:$0xff]  ;;  %v215_v2 = vld [vmem:[%s8050_s0 + $0x10] sm:$0xff] }
   0x2   :  { %v216_v3 = vld [vmem:[%s8050_s0 + $0x18] sm:$0xff]  ;;  %v293_v4 = vadd.f32 %v214_v1, %v213_v0  ;;  %v393_v5 = vmul.f32 %v213_v0, %v213_v0  ;;  %v394_v6 = vmul.f32 %v214_v1, %v214_v1  ;;  %v395_v7 = vmul.f32 %v215_v2, %v215_v2  ;;  %v217_v8 = vld [vmem:[%s8050_s0 + $0x20] sm:$0xff]  ;;  %v218_v9 = vld [vmem:[%s8050_s0 + $0x28] sm:$0xff] }
   0x3   :  { %v396_v10 = vmul.f32 %v216_v3, %v216_v3  ;;  %v219_v11 = vld [vmem:[%s8050_s0 + $0x30] sm:$0xff]  ;;  %v220_v12 = vld [vmem:[%s8050_s0 + $0x38] sm:$0xff]  ;;  %v298_v13 = vadd.f32 %v218_v9, %v217_v8  ;;  %v397_v14 = vmul.f32 %v217_v8, %v217_v8  ;;  %v398_v15 = vmul.f32 %v218_v9, %v218_v9  ;;  %v221_v16 = vld [vmem:[%s8050_s0 + $0x40] sm:$0xff] }
   0x4   :  { %v294_v17 = vadd.f32 %v293_v4, %v215_v2  ;;  %v473_v18 = vadd.f32 %v394_v6, %v393_v5  ;;  %v399_v19 = vmul.f32 %v219_v11, %v219_v11  ;;  %v400_v20 = vmul.f32 %v220_v12, %v220_v12  ;;  %v222_v21 = vld [vmem:[%s8050_s0 + $0x48] sm:$0xff]  ;;  %v223_v24 = vld [vmem:[%s8050_s0 + $0x50] sm:$0xff]  ;;  %v225_v26 = vld [vmem:[%s8050_s0 + $0x60] sm:$0xff] }
   0x5   :  { %v299_v22 = vadd.f32 %v298_v13, %v219_v11  ;;  %v478_v23 = vadd.f32 %v398_v15, %v397_v14  ;;  %v303_v25 = vadd.f32 %v222_v21, %v221_v16  ;;  %v226_v27 = vld [vmem:[%s8050_s0 + $0x68] sm:$0xff]  ;;  %v401_v28 = vmul.f32 %v221_v16, %v221_v16  ;;  %v227_v31 = vld [vmem:[%s8050_s0 + $0x70] sm:$0xff]  ;;  %v229_v40 = vld [vmem:[%s8050_s0 + $0x80] sm:$0xff] }
   0x6   :  { %v295_v29 = vadd.f32 %v294_v17, %v216_v3  ;;  %v474_v30 = vadd.f32 %v473_v18, %v395_v7  ;;  %v308_v32 = vadd.f32 %v226_v27, %v225_v26  ;;  %v402_v33 = vmul.f32 %v222_v21, %v222_v21  ;;  %v230_v41 = vld [vmem:[%s8050_s0 + $0x88] sm:$0xff]  ;;  %v224_v42 = vld [vmem:[%s8050_s0 + $0x58] sm:$0xff]  ;;  %v233_v52 = vld [vmem:[%s8050_s0 + $0xa0] sm:$0xff] }
   0x7   :  { %v300_v34 = vadd.f32 %v299_v22, %v220_v12  ;;  %v479_v35 = vadd.f32 %v478_v23, %v399_v19  ;;  %v304_v37 = vadd.f32 %v303_v25, %v223_v24  ;;  %v403_v38 = vmul.f32 %v223_v24, %v223_v24  ;;  %v228_v47 = vld [vmem:[%s8050_s0 + $0x78] sm:$0xff]  ;;  %v234_v53 = vld [vmem:[%s8050_s0 + $0xa8] sm:$0xff]  ;;  %v231_v56 = vld [vmem:[%s8050_s0 + $0x90] sm:$0xff] }
   0x8   :  { %296 = vadd.xlane.f32.xlu0 %v295_v29  ;;  %v475_v36 = vadd.f32 %v474_v30, %v396_v10  ;;  %v483_v39 = vadd.f32 %v402_v33, %v401_v28  ;;  %v309_v43 = vadd.f32 %v308_v32, %v227_v31  ;;  %v405_v44 = vmul.f32 %v225_v26, %v225_v26  ;;  %v235_v2 = vld [vmem:[%s8050_s0 + $0xb0] sm:$0xff]  ;;  %v232_v4 = vld [vmem:[%s8050_s0 + $0x98] sm:$0xff]  ;;  %v237_v7 = vld [vmem:[%s8050_s0 + $0xc0] sm:$0xff] }
   0x9   :  { %v406_v45 = vmul.f32 %v226_v27, %v226_v27  ;;  %v480_v46 = vadd.f32 %v479_v35, %v400_v20  ;;  %v407_v48 = vmul.f32 %v227_v31, %v227_v31  ;;  %v404_v49 = vmul.f32 %v224_v42, %v224_v42  ;;  %v238_v8 = vld [vmem:[%s8050_s0 + $0xc8] sm:$0xff]  ;;  %v241_v13 = vld [vmem:[%s8050_s0 + $0xe0] sm:$0xff]  ;;  %v236_v16 = vld [vmem:[%s8050_s0 + $0xb8] sm:$0xff] }
   0xa   :  { %476 = vadd.xlane.f32.xlu1 %v475_v36  ;;  %v313_v51 = vadd.f32 %v230_v41, %v229_v40  ;;  %v305_v54 = vadd.f32 %v304_v37, %v224_v42  ;;  %v484_v55 = vadd.f32 %v483_v39, %v403_v38  ;;  %v409_v57 = vmul.f32 %v229_v40, %v229_v40  ;;  %v242_v14 = vld [vmem:[%s8050_s0 + $0xe8] sm:$0xff]  ;;  %v239_v23 = vld [vmem:[%s8050_s0 + $0xd0] sm:$0xff]  ;;  %v240_v36 = vld [vmem:[%s8050_s0 + $0xd8] sm:$0xff] }
   0xb   :  { %v488_v50 = vadd.f32 %v406_v45, %v405_v44  ;;  %v410_v58 = vmul.f32 %v230_v41, %v230_v41  ;;  %v310_v59 = vadd.f32 %v309_v43, %v228_v47  ;;  %v408_v60 = vmul.f32 %v228_v47, %v228_v47  ;;  %v243_v27 = vld [vmem:[%s8050_s0 + $0xf0] sm:$0xff]  ;;  %v246_v35 = vld [vmem:[%s8050_s0 + $0x108] sm:$0xff]  ;;  %v244_v39 = vld [vmem:[%s8050_s0 + $0xf8] sm:$0xff] }
   0xc   :  { %301 = vadd.xlane.f32.xlu0 %v300_v34  ;;  %v318_v62 = vadd.f32 %v234_v53, %v233_v52  ;;  %v413_v63 = vmul.f32 %v233_v52, %v233_v52  ;;  %v414_v0 = vmul.f32 %v234_v53, %v234_v53  ;;  %v314_v1 = vadd.f32 %v313_v51, %v231_v56  ;;  %v245_v34 = vld [vmem:[%s8050_s0 + $0x100] sm:$0xff]  ;;  %v250_v43 = vld [vmem:[%s8050_s0 + $0x128] sm:$0xff] }
   0xd   :  { %v489_v61 = vadd.f32 %v488_v50, %v407_v48  ;;  %v485_v3 = vadd.f32 %v484_v55, %v404_v49  ;;  %v411_v5 = vmul.f32 %v231_v56, %v231_v56  ;;  %v493_v6 = vadd.f32 %v410_v58, %v409_v57  ;;  %v249_v42 = vld [vmem:[%s8050_s0 + $0x120] sm:$0xff]  ;;  %v247_v48 = vld [vmem:[%s8050_s0 + $0x110] sm:$0xff]  ;;  %v248_v57 = vld [vmem:[%s8050_s0 + $0x118] sm:$0xff] }
   0xe   :  { %481 = vadd.xlane.f32.xlu1 %v480_v46  ;;  %v319_v10 = vadd.f32 %v318_v62, %v235_v2  ;;  %v415_v11 = vmul.f32 %v235_v2, %v235_v2  ;;  %v498_v12 = vadd.f32 %v414_v0, %v413_v63  ;;  %v315_v15 = vadd.f32 %v314_v1, %v232_v4  ;;  %v3886_v51 = vld [vmem:[%s8052_s2 + $0x154] ss:$24 sps:$4 sm:$0xff]   ;;  %v253_v62 = vld [vmem:[%s8050_s0 + $0x140] sm:$0xff]  ;;  %v252_v1 = vld [vmem:[%s8050_s0 + $0x138] sm:$0xff] }
   0xf   :  { %v490_v9 = vadd.f32 %v489_v61, %v408_v60  ;;  %v412_v17 = vmul.f32 %v232_v4, %v232_v4  ;;  %v494_v18 = vadd.f32 %v493_v6, %v411_v5  ;;  %v323_v19 = vadd.f32 %v238_v8, %v237_v7  ;;  %v251_v58 = vld [vmem:[%s8050_s0 + $0x130] sm:$0xff]  ;;  %1904 = vmatprep.subr.bf16.mxu0 %v3886_v51  ;;  %v254_v4 = vld [vmem:[%s8050_s0 + $0x148] sm:$0xff]  ;;  %v257_v5 = vld [vmem:[%s8050_s0 + $0x160] sm:$0xff] }
  0x10   :  { %306 = vadd.xlane.f32.xlu0 %v305_v54  ;;  %v417_v20 = vmul.f32 %v237_v7, %v237_v7  ;;  %v418_v21 = vmul.f32 %v238_v8, %v238_v8  ;;  %v416_v22 = vmul.f32 %v236_v16, %v236_v16  ;;  %v328_v24 = vadd.f32 %v242_v14, %v241_v13  ;;  %v3888_v54 = vld [vmem:[%s8052_s2 + $0x150] ss:$24 sps:$4 sm:$0xff]   ;;  %v3889_v63 = vld [vmem:[%s8052_s2 + $0x454] ss:$24 sps:$4 sm:$0xff]  }
  0x11   :  { %v320_v25 = vadd.f32 %v319_v10, %v236_v16  ;;  %v499_v26 = vadd.f32 %v498_v12, %v415_v11  ;;  %v421_v28 = vmul.f32 %v241_v13, %v241_v13  ;;  %v422_v29 = vmul.f32 %v242_v14, %v242_v14  ;;  %1905 = vmatpush1.bf16.msra.mxu0 %v3888_v54  ;;  %v3891_v7 = vld [vmem:[%s8052_s2 + $0x450] ss:$24 sps:$4 sm:$0xff]   ;;  %v3892_v14 = vld [vmem:[%s8052_s2 + $0x124] ss:$24 sps:$4 sm:$0xff]  }
  0x12   :  { %311 = vadd.xlane.f32.xlu1 %v310_v59  ;;  %v495_v30 = vadd.f32 %v494_v18, %v412_v17  ;;  %v324_v31 = vadd.f32 %v323_v19, %v239_v23  ;;  %v419_v32 = vmul.f32 %v239_v23, %v239_v23  ;;  %v503_v33 = vadd.f32 %v418_v21, %v417_v20  ;;  %v258_v11 = vld [vmem:[%s8050_s0 + $0x168] sm:$0xff]  ;;  %v255_v16 = vld [vmem:[%s8050_s0 + $0x150] sm:$0xff] }
  0x13   :  { %v329_v37 = vadd.f32 %v328_v24, %v243_v27  ;;  %v500_v38 = vadd.f32 %v499_v26, %v416_v22  ;;  %v423_v40 = vmul.f32 %v243_v27, %v243_v27  ;;  %v508_v41 = vadd.f32 %v422_v29, %v421_v28  ;;  %2037 = vmatprep.subr.bf16.mxu1 %v3889_v63  ;;  %v3894_v22 = vld [vmem:[%s8052_s2 + $0x120] ss:$24 sps:$4 sm:$0xff]   ;;  %v3901_v63 = vld [vmem:[%s8052_s2 + $0x3f4] ss:$24 sps:$4 sm:$0xff]  }
  0x14   :  { %486 = vadd.xlane.f32.xlu0 %v485_v3  ;;  %v420_v44 = vmul.f32 %v240_v36, %v240_v36  ;;  %v333_v45 = vadd.f32 %v246_v35, %v245_v34  ;;  %v325_v46 = vadd.f32 %v324_v31, %v240_v36  ;;  %v504_v47 = vadd.f32 %v503_v33, %v419_v32  ;;  %v256_v28 = vld [vmem:[%s8050_s0 + $0x158] sm:$0xff]  ;;  %v261_v29 = vld [vmem:[%s8050_s0 + $0x180] sm:$0xff]  ;;  %v262_v36 = vld [vmem:[%s8050_s0 + $0x188] sm:$0xff] }
  0x15   :  { %v425_v49 = vmul.f32 %v245_v34, %v245_v34  ;;  %v426_v50 = vmul.f32 %v246_v35, %v246_v35  ;;  %v330_v52 = vadd.f32 %v329_v37, %v244_v39  ;;  %v338_v53 = vadd.f32 %v250_v43, %v249_v42  ;;  %2038 = vmatpush1.bf16.msra.mxu1 %v3891_v7  ;;  %v260_v33 = vld [vmem:[%s8050_s0 + $0x178] sm:$0xff]  ;;  %v265_v37 = vld [vmem:[%s8050_s0 + $0x1a0] sm:$0xff] }
  0x16   :  { %491 = vadd.xlane.f32.xlu1 %v490_v9  ;;  %v424_v55 = vmul.f32 %v244_v39, %v244_v39  ;;  %v509_v56 = vadd.f32 %v508_v41, %v423_v40  ;;  %v429_v59 = vmul.f32 %v249_v42, %v249_v42  ;;  %v430_v60 = vmul.f32 %v250_v43, %v250_v43  ;;  %v3897_v39 = vld [vmem:[%s8052_s2 + $0x420] ss:$24 sps:$4 sm:$0xff]   ;;  %v266_v43 = vld [vmem:[%s8050_s0 + $0x1a8] sm:$0xff] }
  0x17   :  { %v334_v61 = vadd.f32 %v333_v45, %v247_v48  ;;  %v505_v0 = vadd.f32 %v504_v47, %v420_v44  ;;  %v427_v2 = vmul.f32 %v247_v48, %v247_v48  ;;  %v513_v3 = vadd.f32 %v426_v50, %v425_v49  ;;  %1906 = vmatprep.subr.bf16.mxu0 %v3892_v14  ;;  %v263_v49 = vld [vmem:[%s8050_s0 + $0x190] sm:$0xff]  ;;  %v273_v7 = vld [vmem:[%s8050_s0 + $0x1e0] sm:$0xff] }
  0x18   :  { %316 = vadd.xlane.f32.xlu0 %v315_v15  ;;  %v339_v6 = vadd.f32 %v338_v53, %v251_v58  ;;  %v510_v8 = vadd.f32 %v509_v56, %v424_v55  ;;  %v431_v9 = vmul.f32 %v251_v58, %v251_v58  ;;  %v518_v10 = vadd.f32 %v430_v60, %v429_v59  ;;  %v267_v50 = vld [vmem:[%s8050_s0 + $0x1b0] sm:$0xff]  ;;  %v264_v58 = vld [vmem:[%s8050_s0 + $0x198] sm:$0xff] }
  0x19   :  { %v335_v12 = vadd.f32 %v334_v61, %v248_v57  ;;  %v428_v13 = vmul.f32 %v248_v57, %v248_v57  ;;  %v514_v15 = vadd.f32 %v513_v3, %v427_v2  ;;  %v343_v17 = vadd.f32 %v254_v4, %v253_v62  ;;  %1907 = vmatpush1.bf16.msra.mxu0 %v3894_v22  ;;  %v3900_v55 = vld [vmem:[%s8052_s2 + $0xf0] ss:$24 sps:$4 sm:$0xff]   ;;  %v269_v61 = vld [vmem:[%s8050_s0 + $0x1c0] sm:$0xff] }
  0x1a   :  { %321 = vadd.xlane.f32.xlu1 %v320_v25  ;;  %v433_v18 = vmul.f32 %v253_v62, %v253_v62  ;;  %v434_v19 = vmul.f32 %v254_v4, %v254_v4  ;;  %v340_v20 = vadd.f32 %v339_v6, %v252_v1  ;;  %v348_v21 = vadd.f32 %v258_v11, %v257_v5  ;;  %v259_v25 = vld [vmem:[%s8050_s0 + $0x170] sm:$0xff]  ;;  %v270_v62 = vld [vmem:[%s8050_s0 + $0x1c8] sm:$0xff]  ;;  %v3904_v2 = vld [vmem:[%s8052_s2 + $0xc4] ss:$24 sps:$4 sm:$0xff]  }
  0x1b   :  { %v432_v23 = vmul.f32 %v252_v1, %v252_v1  ;;  %v519_v24 = vadd.f32 %v518_v10, %v431_v9  ;;  %v437_v26 = vmul.f32 %v257_v5, %v257_v5  ;;  %v438_v27 = vmul.f32 %v258_v11, %v258_v11  ;;  %v3903_v1 = vld [vmem:[%s8052_s2 + $0x3f0] ss:$24 sps:$4 sm:$0xff]   ;;  %v268_v4 = vld [vmem:[%s8050_s0 + $0x1b8] sm:$0xff] }
  0x1c   :  { %496 = vadd.xlane.f32.xlu0 %v495_v30  ;;  %v3895_v30 = vld [vmem:[%s8052_s2 + $0x424] ss:$24 sps:$4 sm:$0xff]   ;;  %v515_v31 = vadd.f32 %v514_v15, %v428_v13  ;;  %v344_v32 = vadd.f32 %v343_v17, %v255_v16  ;;  %v435_v34 = vmul.f32 %v255_v16, %v255_v16  ;;  %v523_v35 = vadd.f32 %v434_v19, %v433_v18  ;;  %v3906_v11 = vld [vmem:[%s8052_s2 + $0xc0] ss:$24 sps:$4 sm:$0xff]   ;;  %v3910_v15 = vld [vmem:[%s8052_s2 + $0x94] ss:$24 sps:$4 sm:$0xff]  }
  0x1d   :  { %v520_v40 = vadd.f32 %v519_v24, %v432_v23  ;;  %v439_v41 = vmul.f32 %v259_v25, %v259_v25  ;;  %v528_v42 = vadd.f32 %v438_v27, %v437_v26  ;;  %v436_v44 = vmul.f32 %v256_v28, %v256_v28  ;;  %2039 = vmatprep.subr.bf16.mxu1 %v3895_v30  ;;  %v3907_v9 = vld [vmem:[%s8052_s2 + $0x3c4] ss:$24 sps:$4 sm:$0xff]   ;;  %v271_v18 = vld [vmem:[%s8050_s0 + $0x1d0] sm:$0xff] }
  0x1e   :  { %501 = vadd.xlane.f32.xlu1 %v500_v38  ;;  %v349_v38 = vadd.f32 %v348_v21, %v259_v25  ;;  %v353_v45 = vadd.f32 %v262_v36, %v261_v29  ;;  %v345_v47 = vadd.f32 %v344_v32, %v256_v28  ;;  %v524_v48 = vadd.f32 %v523_v35, %v435_v34  ;;  %v275_v22 = vld [vmem:[%s8050_s0 + $0x1f0] sm:$0xff]  ;;  %v277_v34 = vld [vmem:[%s8050_s0 + $0x200] sm:$0xff] }
  0x1f   :  { %v441_v51 = vmul.f32 %v261_v29, %v261_v29  ;;  %v358_v54 = vadd.f32 %v266_v43, %v265_v37  ;;  %2040 = vmatpush1.bf16.msra.mxu1 %v3897_v39  ;;  %v440_v56 = vmul.f32 %v260_v33, %v260_v33  ;;  %v529_v57 = vadd.f32 %v528_v42, %v439_v41  ;;  %v3913_v25 = vld [vmem:[%s8052_s2 + $0x394] ss:$24 sps:$4 sm:$0xff]   ;;  %v3912_v29 = vld [vmem:[%s8052_s2 + $0x90] ss:$24 sps:$4 sm:$0xff]   ;;  %v3916_v35 = vld [vmem:[%s8052_s2 + $0x64] ss:$24 sps:$4 sm:$0xff]  }
  0x20   :  { %326 = vadd.xlane.f32.xlu0 %v325_v46  ;;  %v3898_v46 = vld [vmem:[%s8052_s2 + $0xf4] ss:$24 sps:$4 sm:$0xff]   ;;  %v350_v53 = vadd.f32 %v349_v38, %v260_v33  ;;  %v445_v59 = vmul.f32 %v265_v37, %v265_v37  ;;  %v446_v60 = vmul.f32 %v266_v43, %v266_v43  ;;  %v525_v3 = vadd.f32 %v524_v48, %v436_v44  ;;  %v3915_v38 = vld [vmem:[%s8052_s2 + $0x390] ss:$24 sps:$4 sm:$0xff]   ;;  %v281_v43 = vld [vmem:[%s8050_s0 + $0x220] sm:$0xff] }
  0x21   :  { %1908 = vmatprep.subr.bf16.mxu0 %v3898_v46  ;;  %v443_v5 = vmul.f32 %v263_v49, %v263_v49  ;;  %v359_v10 = vadd.f32 %v358_v54, %v267_v50  ;;  %v447_v13 = vmul.f32 %v267_v50, %v267_v50  ;;  %2041 = vmatprep.subr.bf16.mxu1 %v3901_v63  ;;  %v278_v37 = vld [vmem:[%s8050_s0 + $0x208] sm:$0xff]  ;;  %v279_v54 = vld [vmem:[%s8050_s0 + $0x210] sm:$0xff] }
  0x22   :  { %331 = vadd.xlane.f32.xlu1 %v330_v52  ;;  %v442_v52 = vmul.f32 %v262_v36, %v262_v36  ;;  %1909 = vmatpush1.bf16.msra.mxu0 %v3900_v55  ;;  %v538_v14 = vadd.f32 %v446_v60, %v445_v59  ;;  %v444_v17 = vmul.f32 %v264_v58, %v264_v58  ;;  %v282_v44 = vld [vmem:[%s8050_s0 + $0x228] sm:$0xff] }
  0x23   :  { %v363_v19 = vadd.f32 %v270_v62, %v269_v61  ;;  %2042 = vmatpush1.bf16.msra.mxu1 %v3903_v1  ;;  %1910 = vmatprep.subr.bf16.mxu0 %v3904_v2  ;;  %v449_v23 = vmul.f32 %v269_v61, %v269_v61  ;;  %v450_v24 = vmul.f32 %v270_v62, %v270_v62  ;;  %v3925_v61 = vld [vmem:[%s8052_s2 + $0x334] ss:$24 sps:$4 sm:$0xff]   ;;  %v3924_v1 = vld [vmem:[%s8052_s2 + $0x30] ss:$24 sps:$4 sm:$0xff]  }
  0x24   :  { %506 = vadd.xlane.f32.xlu0 %v505_v0  ;;  %v354_v0 = vadd.f32 %v353_v45, %v263_v49  ;;  %v533_v6 = vadd.f32 %v442_v52, %v441_v51  ;;  %2043 = vmatprep.subr.bf16.mxu1 %v3907_v9  ;;  %v360_v26 = vadd.f32 %v359_v10, %v268_v4  ;;  %v3919_v45 = vld [vmem:[%s8052_s2 + $0x364] ss:$24 sps:$4 sm:$0xff]   ;;  %v3922_v51 = vld [vmem:[%s8052_s2 + $0x34] ss:$24 sps:$4 sm:$0xff]   ;;  %v3927_v10 = vld [vmem:[%s8052_s2 + $0x330] ss:$24 sps:$4 sm:$0xff]  }
  0x25   :  { %v448_v27 = vmul.f32 %v268_v4, %v268_v4  ;;  %v539_v30 = vadd.f32 %v538_v14, %v447_v13  ;;  %v453_v32 = vmul.f32 %v273_v7, %v273_v7  ;;  %v364_v36 = vadd.f32 %v363_v19, %v271_v18  ;;  %v286_v9 = vld [vmem:[%s8050_s0 + $0x248] sm:$0xff]  ;;  %v3930_v19 = vld [vmem:[%s8052_s2] ss:$24 sps:$4 sm:$0xff]  }
  0x26   :  { %511 = vadd.xlane.f32.xlu1 %v510_v8  ;;  %v274_v8 = vld [vmem:[%s8050_s0 + $0x1e8] sm:$0xff]  ;;  %v355_v16 = vadd.f32 %v354_v0, %v264_v58  ;;  %v534_v21 = vadd.f32 %v533_v6, %v443_v5  ;;  %1911 = vmatpush1.bf16.msra.mxu0 %v3906_v11  ;;  %v451_v41 = vmul.f32 %v271_v18, %v271_v18  ;;  %v283_v58 = vld [vmem:[%s8050_s0 + $0x230] sm:$0xff]  ;;  %v285_v6 = vld [vmem:[%s8050_s0 + $0x240] sm:$0xff] }
  0x27   :  { %v368_v28 = vadd.f32 %v274_v8, %v273_v7  ;;  %v454_v33 = vmul.f32 %v274_v8, %v274_v8  ;;  %1912 = vmatprep.subr.bf16.mxu0 %v3910_v15  ;;  %v543_v42 = vadd.f32 %v450_v24, %v449_v23  ;;  %v540_v48 = vadd.f32 %v539_v30, %v448_v27  ;;  %v3928_v7 = vld [vmem:[%s8052_s2 + $0x4] ss:$24 sps:$4 sm:$0xff]   ;;  %v3934_v23 = vld [vmem:[%s8052_s2 + $0x2d4] ss:$24 sps:$4 sm:$0xff]  }
  0x28   :  { %336 = vadd.xlane.f32.xlu0 %v335_v12  ;;  %v530_v12 = vadd.f32 %v529_v57, %v440_v56  ;;  %v535_v39 = vadd.f32 %v534_v21, %v444_v17  ;;  %v455_v49 = vmul.f32 %v275_v22, %v275_v22  ;;  %v373_v55 = vadd.f32 %v278_v37, %v277_v34  ;;  %v3921_v56 = vld [vmem:[%s8052_s2 + $0x360] ss:$24 sps:$4 sm:$0xff]   ;;  %v3931_v17 = vld [vmem:[%s8052_s2 + $0x304] ss:$24 sps:$4 sm:$0xff]   ;;  %v291_v30 = vld [vmem:[%s8050_s0 + $0x270] sm:$0xff] }
  0x29   :  { %v369_v46 = vadd.f32 %v368_v28, %v275_v22  ;;  %v548_v50 = vadd.f32 %v454_v33, %v453_v32  ;;  %v544_v57 = vadd.f32 %v543_v42, %v451_v41  ;;  %v457_v59 = vmul.f32 %v277_v34, %v277_v34  ;;  %v289_v15 = vld [vmem:[%s8050_s0 + $0x260] sm:$0xff]  ;;  %v3937_v33 = vld [vmem:[%s8052_s2 + $0x5d4] ss:$24 sps:$4 sm:$0xff]  }
  0x2a   :  { %341 = vadd.xlane.f32.xlu1 %v340_v20  ;;  %v3909_v20 = vld [vmem:[%s8052_s2 + $0x3c0] ss:$24 sps:$4 sm:$0xff]   ;;  %1913 = vmatpush1.bf16.msra.mxu0 %v3912_v29  ;;  %v458_v60 = vmul.f32 %v278_v37, %v278_v37  ;;  %v378_v0 = vadd.f32 %v282_v44, %v281_v43  ;;  %v461_v4 = vmul.f32 %v281_v43, %v281_v43  ;;  %v3936_v37 = vld [vmem:[%s8052_s2 + $0x2d0] ss:$24 sps:$4 sm:$0xff]   ;;  %v3940_v41 = vld [vmem:[%s8052_s2 + $0x2a4] ss:$24 sps:$4 sm:$0xff]  }
  0x2b   :  { %2044 = vmatpush1.bf16.msra.mxu1 %v3909_v20  ;;  %1914 = vmatprep.subr.bf16.mxu0 %v3916_v35  ;;  %v549_v2 = vadd.f32 %v548_v50, %v455_v49  ;;  %v462_v5 = vmul.f32 %v282_v44, %v282_v44  ;;  %v374_v8 = vadd.f32 %v373_v55, %v279_v54  ;;  %v3933_v28 = vld [vmem:[%s8052_s2 + $0x300] ss:$24 sps:$4 sm:$0xff]   ;;  %v3939_v43 = vld [vmem:[%s8052_s2 + $0x5d0] ss:$24 sps:$4 sm:$0xff]  }
  0x2c   :  { %516 = vadd.xlane.f32.xlu0 %v515_v31  ;;  %v272_v31 = vld [vmem:[%s8050_s0 + $0x1d8] sm:$0xff]  ;;  %2045 = vmatprep.subr.bf16.mxu1 %v3913_v25  ;;  %v459_v13 = vmul.f32 %v279_v54, %v279_v54  ;;  %v553_v14 = vadd.f32 %v458_v60, %v457_v59  ;;  %v379_v18 = vadd.f32 %v378_v0, %v283_v58  ;;  %v3946_v54 = vld [vmem:[%s8052_s2 + $0x274] ss:$24 sps:$4 sm:$0xff]  }
  0x2d   :  { %v365_v52 = vadd.f32 %v364_v36, %v272_v31  ;;  %v463_v21 = vmul.f32 %v283_v58, %v283_v58  ;;  %v558_v22 = vadd.f32 %v462_v5, %v461_v4  ;;  %v383_v27 = vadd.f32 %v286_v9, %v285_v6  ;;  %v3942_v50 = vld [vmem:[%s8052_s2 + $0x2a0] ss:$24 sps:$4 sm:$0xff]   ;;  %v3949_v60 = vld [vmem:[%s8052_s2 + $0x574] ss:$24 sps:$4 sm:$0xff]   ;;  %v3955_v4 = vld [vmem:[%s8052_s2 + $0x544] ss:$24 sps:$4 sm:$0xff]  }
  0x2e   :  { %521 = vadd.xlane.f32.xlu1 %v520_v40  ;;  %v276_v40 = vld [vmem:[%s8050_s0 + $0x1f8] sm:$0xff]  ;;  %v554_v29 = vadd.f32 %v553_v14, %v459_v13  ;;  %v466_v32 = vmul.f32 %v286_v9, %v286_v9  ;;  %v3960_v9 = vld [vmem:[%s8052_s2 + $0x210] ss:$24 sps:$4 sm:$0xff]  }
  0x2f   :  { %2046 = vmatpush1.bf16.msra.mxu1 %v3915_v38  ;;  %v370_v62 = vadd.f32 %v369_v46, %v276_v40  ;;  %v456_v63 = vmul.f32 %v276_v40, %v276_v40  ;;  %v559_v38 = vadd.f32 %v558_v22, %v463_v21  ;;  %v292_v55 = vld [vmem:[%s8050_s0 + $0x278] sm:$0xff] }
  0x30   :  { %346 = vadd.xlane.f32.xlu0 %v345_v47  ;;  %v3918_v47 = vld [vmem:[%s8052_s2 + $0x60] ss:$24 sps:$4 sm:$0xff]   ;;  %2047 = vmatprep.subr.bf16.mxu1 %v3919_v45  ;;  %v3967_v14 = vld [vmem:[%s8052_s2 + $0x4e4] ss:$24 sps:$4 sm:$0xff]  }
  0x31   :  { %1915 = vmatpush1.bf16.msra.mxu0 %v3918_v47  ;;  %v550_v20 = vadd.f32 %v549_v2, %v456_v63  ;;  %v288_v45 = vld [vmem:[%s8050_s0 + $0x258] sm:$0xff]  ;;  %v472_v63 = vmul.f32 %v292_v55, %v292_v55  ;;  %v3951_v2 = vld [vmem:[%s8052_s2 + $0x570] ss:$24 sps:$4 sm:$0xff]  }
  0x32   :  { %351 = vadd.xlane.f32.xlu1 %v350_v53  ;;  %v452_v53 = vmul.f32 %v272_v31, %v272_v31  ;;  %1916 = vmatprep.subr.bf16.mxu0 %v3922_v51  ;;  %v465_v31 = vmul.f32 %v285_v6, %v285_v6  ;;  %v468_v58 = vmul.f32 %v288_v45, %v288_v45  ;;  %v3954_v5 = vld [vmem:[%s8052_s2 + $0x240] ss:$24 sps:$4 sm:$0xff]   ;;  %v3979_v21 = vld [vmem:[%s8052_s2 + $0x484] ss:$24 sps:$4 sm:$0xff]  }
  0x33   :  { %2048 = vmatpush1.bf16.msra.mxu1 %v3921_v56  ;;  %v3945_v56 = vld [vmem:[%s8052_s2 + $0x5a0] ss:$24 sps:$4 sm:$0xff]  }
  0x34   :  { %526 = vadd.xlane.f32.xlu0 %v525_v3  ;;  %v280_v3 = vld [vmem:[%s8050_s0 + $0x218] sm:$0xff]  ;;  %v545_v11 = vadd.f32 %v544_v57, %v452_v53  ;;  %2049 = vmatprep.subr.bf16.mxu1 %v3925_v61  ;;  %v563_v47 = vadd.f32 %v466_v32, %v465_v31  ;;  %v3948_v61 = vld [vmem:[%s8052_s2 + $0x270] ss:$24 sps:$4 sm:$0xff]  }
  0x35   :  { %1917 = vmatpush1.bf16.msra.mxu0 %v3924_v1  ;;  %v375_v24 = vadd.f32 %v374_v8, %v280_v3  ;;  %v460_v25 = vmul.f32 %v280_v3, %v280_v3  ;;  %v3952_v1 = vld [vmem:[%s8052_s2 + $0x244] ss:$24 sps:$4 sm:$0xff]   ;;  %v3957_v8 = vld [vmem:[%s8052_s2 + $0x540] ss:$24 sps:$4 sm:$0xff]  }
  0x36   :  { %531 = vadd.xlane.f32.xlu1 %v530_v12  ;;  %v284_v12 = vld [vmem:[%s8050_s0 + $0x238] sm:$0xff]  ;;  %1918 = vmatprep.subr.bf16.mxu0 %v3928_v7  ;;  %v3958_v7 = vld [vmem:[%s8052_s2 + $0x214] ss:$24 sps:$4 sm:$0xff]  }
  0x37   :  { %2050 = vmatpush1.bf16.msra.mxu1 %v3927_v10  ;;  %v380_v34 = vadd.f32 %v379_v18, %v284_v12  ;;  %v464_v35 = vmul.f32 %v284_v12, %v284_v12  ;;  %v555_v44 = vadd.f32 %v554_v29, %v460_v25  ;;  %v3961_v10 = vld [vmem:[%s8052_s2 + $0x514] ss:$24 sps:$4 sm:$0xff]   ;;  %v3964_v12 = vld [vmem:[%s8052_s2 + $0x1e4] ss:$24 sps:$4 sm:$0xff]   ;;  %v3966_v13 = vld [vmem:[%s8052_s2 + $0x1e0] ss:$24 sps:$4 sm:$0xff]  }
  0x38   :  { %356 = vadd.xlane.f32.xlu0 %v355_v16  ;;  %v290_v16 = vld [vmem:[%s8050_s0 + $0x268] sm:$0xff]  ;;  %2051 = vmatprep.subr.bf16.mxu1 %v3931_v17  ;;  %v3978_v22 = vld [vmem:[%s8052_s2 + $0x180] ss:$24 sps:$4 sm:$0xff]   ;;  %v3987_v25 = vld [vmem:[%s8052_s2 + $0x45c] ss:$24 sps:$4 sm:$0xff]  }
  0x39   :  { %v388_v36 = vadd.f32 %v290_v16, %v289_v15  ;;  %1919 = vmatpush1.bf16.msra.mxu0 %v3930_v19  ;;  %v470_v40 = vmul.f32 %v290_v16, %v290_v16  ;;  %v560_v51 = vadd.f32 %v559_v38, %v464_v35  ;;  %v3970_v16 = vld [vmem:[%s8052_s2 + $0x1b4] ss:$24 sps:$4 sm:$0xff]   ;;  %v3972_v18 = vld [vmem:[%s8052_s2 + $0x1b0] ss:$24 sps:$4 sm:$0xff]   ;;  %v4555_v29 = vmov 1983009808  }
  0x3a   :  { %361 = vadd.xlane.f32.xlu1 %v360_v26  ;;  %v287_v26 = vld [vmem:[%s8050_s0 + $0x250] sm:$0xff]  ;;  %1920 = vmatprep.subr.bf16.mxu0 %v3934_v23  ;;  %v3981_v23 = vld [vmem:[%s8052_s2 + $0x480] ss:$24 sps:$4 sm:$0xff]  }
  0x3b   :  { %v384_v42 = vadd.f32 %v383_v27, %v287_v26  ;;  %2052 = vmatpush1.bf16.msra.mxu1 %v3933_v28  ;;  %v467_v46 = vmul.f32 %v287_v26, %v287_v26  ;;  %v389_v49 = vadd.f32 %v388_v36, %v291_v30  ;;  %v3973_v17 = vld [vmem:[%s8052_s2 + $0x4b4] ss:$24 sps:$4 sm:$0xff]   ;;  %v3975_v19 = vld [vmem:[%s8052_s2 + $0x4b0] ss:$24 sps:$4 sm:$0xff]   ;;  %v914_v26 = vlaneseq  ;;  %v3246_v27 = vld [vmem:[%s8051_s1] sm:$0xff] }
  0x3c   :  { %536 = vadd.xlane.f32.xlu0 %v535_v39  ;;  %v469_v39 = vmul.f32 %v289_v15, %v289_v15  ;;  %2053 = vmatprep.subr.bf16.mxu1 %v3937_v33  ;;  %v3969_v15 = vld [vmem:[%s8052_s2 + $0x4e0] ss:$24 sps:$4 sm:$0xff]   ;;  %v3279_v31 = vmul.f32 %v3246_v27, %v3246_v27  ;;  %v3248_v32 = vcombine.high %v3246_v27, %v3246_v27 }
  0x3d   :  { %1921 = vmatpush2.bf16.msra.mxu0 %v3936_v37  ;;  %v385_v57 = vadd.f32 %v384_v42, %v288_v45  ;;  %v564_v59 = vadd.f32 %v563_v47, %v467_v46  ;;  %v5029_v28 = vshrl.u32 %v914_v26, 7 }
  0x3e   :  { %541 = vadd.xlane.f32.xlu1 %v540_v48  ;;  %v3943_v48 = vld [vmem:[%s8052_s2 + $0x5a4] ss:$24 sps:$4 sm:$0xff]   ;;  %v568_v53 = vadd.f32 %v470_v40, %v469_v39  ;;  %1922 = vmatprep.subr.bf16.mxu0 %v3940_v41 }
  0x3f   :  { %2054 = vmatpush2.bf16.msra.mxu1 %v3939_v43  ;;  %v565_v3 = vadd.f32 %v564_v59, %v468_v58 }
  0x40   :  { %366 = vadd.xlane.f32.xlu0 %v365_v52  ;;  %v471_v52 = vmul.f32 %v291_v30, %v291_v30  ;;  %2055 = vmatprep.subr.bf16.mxu1 %v3943_v48  ;;  %v3250_v30 = vunpack.c.l.s4 %v4555_v29 }
  0x41   :  { %1923 = vmatpush2.bf16.msra.mxu0 %v3942_v50 }
  0x42   :  { %371 = vadd.xlane.f32.xlu1 %v370_v62  ;;  %v390_v62 = vadd.f32 %v389_v49, %v292_v55  ;;  %v569_v0 = vadd.f32 %v568_v53, %v471_v52  ;;  %1924 = vmatprep.subr.bf16.mxu0 %v3946_v54  ;;  %v3251_v33 = vunpack.c.0.s8 %v3250_v30 }
  0x43   :  { %2056 = vmatpush2.bf16.msra.mxu1 %v3945_v56 }
  0x44   :  { %546 = vadd.xlane.f32.xlu0 %v545_v11  ;;  %2057 = vmatprep.subr.bf16.mxu1 %v3949_v60  ;;  %v570_v6 = vadd.f32 %v569_v0, %v472_v63  ;;  %v3963_v11 = vld [vmem:[%s8052_s2 + $0x510] ss:$24 sps:$4 sm:$0xff]   ;;  %v5032_v35 = vsub.s32 %v3251_v33, %v5029_v28 }
  0x45   :  { %1925 = vmatpush2.bf16.msra.mxu0 %v3948_v61 }
  0x46   :  { %551 = vadd.xlane.f32.xlu1 %v550_v20  ;;  %1926 = vmatprep.subr.bf16.mxu0 %v3952_v1  ;;  %v3976_v20 = vld [vmem:[%s8052_s2 + $0x184] ss:$24 sps:$4 sm:$0xff]   ;;  %8142 = vst [vmem:[#allocation5_spill] sm:$0xff] %v5032_v35  ;;  %v3255_v36 = vrot.slane %v3246_v27, %v5032_v35  ;;  %v3262_v37 = vrot.slane %v3248_v32, %v5032_v35 }
  0x47   :  { %2058 = vmatpush2.bf16.msra.mxu1 %v3951_v2  ;;  %v3288_v38 = vrot.slane %v3279_v31, %v5032_v35 }
  0x48   :  { %376 = vadd.xlane.f32.xlu0 %v375_v24  ;;  %2059 = vmatprep.subr.bf16.mxu1 %v3955_v4  ;;  %v3984_v24 = vld [vmem:[%s8052_s2 + $0x15c] ss:$24 sps:$4 sm:$0xff]   ;;  %v3263_v40 = vcombine.high %v3255_v36, %v3255_v36  ;;  %v3264_v41 = vcombine.high %v3262_v37, %v3262_v37  ;;  %v3270_v42 = vsel %vm3269_vm0, %v3255_v36, 0.0  ;;  %v3273_v47 = vsel %vm3269_vm0, %v3262_v37, 0.0 }
  0x49   :  { %1927 = vmatpush2.bf16.msra.mxu0 %v3954_v5  ;;  %v3296_v43 = vcombine.high %v3288_v38, %v3288_v38  ;;  %v3302_v45 = vsel %vm3269_vm0, %v3288_v38, 0.0 }
  0x4a   :  { %381 = vadd.xlane.f32.xlu1 %v380_v34  ;;  %1928 = vmatprep.subr.bf16.mxu0 %v3958_v7  ;;  %v3281_v34 = vcombine.high %v3279_v31, %v3279_v31  ;;  %v3271_v46 = vsel %vm3269_vm0, %v3263_v40, 0.0 }
  0x4b   :  { %2060 = vmatpush2.bf16.msra.mxu1 %v3957_v8  ;;  %v3272_v48 = vadd.f32 %v3271_v46, %v3270_v42  ;;  %v3303_v49 = vsel %vm3269_vm0, %v3296_v43, 0.0 }
  0x4c   :  { %556 = vadd.xlane.f32.xlu0 %v555_v44  ;;  %2061 = vmatprep.subr.bf16.mxu1 %v3961_v10  ;;  %v3295_v39 = vrot.slane %v3281_v34, %v5032_v35  ;;  %v3304_v52 = vadd.f32 %v3303_v49, %v3302_v45 }
  0x4d   :  { %1929 = vmatpush2.bf16.msra.mxu0 %v3960_v9  ;;  %v3274_v53 = vadd.f32 %v3273_v47, %v3272_v48 }
  0x4e   :  { %561 = vadd.xlane.f32.xlu1 %v560_v51  ;;  %1930 = vmatprep.subr.bf16.mxu0 %v3964_v12  ;;  %v3297_v44 = vcombine.high %v3295_v39, %v3295_v39  ;;  %v3305_v50 = vsel %vm3269_vm0, %v3295_v39, 0.0  ;;  %v3275_v51 = vsel %vm3269_vm0, %v3264_v41, 0.0 }
  0x4f   :  { %2062 = vmatpush2.bf16.msra.mxu1 %v3963_v11  ;;  %v3306_v55 = vadd.f32 %v3305_v50, %v3304_v52  ;;  %v3276_v56 = vadd.f32 %v3275_v51, %v3274_v53 }
  0x50   :  { %386 = vadd.xlane.f32.xlu0 %v385_v57  ;;  %2063 = vmatprep.subr.bf16.mxu1 %v3967_v14  ;;  %v3307_v54 = vsel %vm3269_vm0, %v3297_v44, 0.0 }
  0x51   :  { %1931 = vmatpush2.bf16.msra.mxu0 %v3966_v13  ;;  %v3308_v57 = vadd.f32 %v3307_v54, %v3306_v55 }
  0x52   :  { %391 = vadd.xlane.f32.xlu1 %v390_v62  ;;  %1932 = vmatprep.subr.bf16.mxu0 %v3970_v16 }
  0x53   :  { %2064 = vmatpush2.bf16.msra.mxu1 %v3969_v15 }
  0x54   :  { %566 = vadd.xlane.f32.xlu0 %v565_v3  ;;  %2065 = vmatprep.subr.bf16.mxu1 %v3973_v17 }
  0x55   :  { %1933 = vmatpush2.bf16.msra.mxu0 %v3972_v18 }
  0x56   :  { %571 = vadd.xlane.f32.xlu1 %v570_v6  ;;  %1934 = vmatprep.subr.bf16.mxu0 %v3976_v20 }
  0x57   :  { %2066 = vmatpush2.bf16.msra.mxu1 %v3975_v19 }
  0x58   :  { %2067 = vmatprep.subr.bf16.mxu1 %v3979_v21  ;;  %3277 = vadd.xlane.f32.xlu0 %v3276_v56 }
  0x59   :  { %1935 = vmatpush2.bf16.msra.mxu0 %v3978_v22 }
  0x5a   :  { %2170 = vmatprep.subr.bf16.mxu0 %v3984_v24  ;;  %3309 = vadd.xlane.f32.xlu1 %v3308_v57 }
  0x5b   :  { %2068 = vmatpush2.bf16.msra.mxu1 %v3981_v23 }
  0x5c   :  { %2303 = vmatprep.subr.bf16.mxu1 %v3987_v25 }
  0x5d   :  { %11 = vsyncpa [#allocation3], 0  ;;  %v5065_v22 = vld [vmem:[%s8050_s0 + $0x8] sm:$0xff]  ;;  %v5072_v24 = vld [vmem:[%s8050_s0 + $0x18] sm:$0xff]  ;;  %s4557_s18 = smov [#allocation2]  }
  0x5e   :  { %v5079_v26 = vld [vmem:[%s8050_s0] sm:$0xff]  ;;  %v5086_v29 = vld [vmem:[%s8050_s0 + $0x10] sm:$0xff]  ;;  %v5095_v34 = vld [vmem:[%s8050_s0 + $0x28] sm:$0xff]  ;;  %s3680_s19 = sshll.u32 %s4557_s18, 4  ;;  %s3681_s19 = int_to_ptr.vmem [resolvable:$true] %s3680_s19 }
  0x5f   :  { %v5102_v38 = vld [vmem:[%s8050_s0 + $0x38] sm:$0xff]  ;;  %v5109_v40 = vld [vmem:[%s8050_s0 + $0x20] sm:$0xff]  ;;  %v5116_v42 = vld [vmem:[%s8050_s0 + $0x30] sm:$0xff]  ;;  %s4533_s11 = scalar_lea.vmem %s3681_s19, 192  ;;  %p4538_p1 = scmp.lt.s32.totalorder %s3681_s19, %s3681_s19 }
  0x60   :  { %v5123_v44 = vld [vmem:[%s8050_s0 + $0x48] sm:$0xff]  ;;  %v5141_v53 = vld [vmem:[%s8050_s0 + $0x58] sm:$0xff]  ;;  %v5148_v55 = vld [vmem:[%s8050_s0 + $0x40] sm:$0xff]  ;;  %p4534_p0 = scmp.ne.s32.totalorder %s3681_s19, %s4533_s11  ;;  %p4539_p2 = scmp.lt.s32.totalorder %s4533_s11, %s4533_s11 }
  0x61   :  { %v5134_v51 = vld [vmem:[%s8050_s0 + $0x68] sm:$0xff]  ;;  %v5155_v57 = vld [vmem:[%s8050_s0 + $0x50] sm:$0xff] }
  0x62   :  { %p4540_p3 = por %p4539_p2, %p4538_p1 }
  0x64   :  { %p4541_p4 = pnand %p4540_p3, %p4534_p0 }
  0x91   :  { %v297_v58 = vpop.xlane.xlu0 %296 }
  0x92   :  { %v5046_v59 = vmul.f32 0.001953125, %v297_v58 }
  0x93   :  { %v477_v60 = vpop.xlane.xlu1 %476 }
  0x94   :  { %v593_v61 = vmul.f32 0.001953125, %v477_v60  ;;  %v613_v62 = vmul.f32 %v5046_v59, %v5046_v59  ;;  %v674_v23 = vsub.f32 %v5065_v22, %v5046_v59  ;;  %v676_v25 = vsub.f32 %v5072_v24, %v5046_v59 }
  0x95   :  { %v302_v63 = vpop.xlane.xlu0 %301  ;;  %v673_v27 = vsub.f32 %v5079_v26, %v5046_v59  ;;  %v675_v30 = vsub.f32 %v5086_v29, %v5046_v59  ;;  %v5273_v59 = vld [vmem:[%s8050_s0 + $0xc0] sm:$0xff] }
  0x96   :  { %v633_v0 = vsub.f32 %v593_v61, %v613_v62  ;;  %v5050_v1 = vmul.f32 0.001953125, %v302_v63  ;;  %v5162_v62 = vld [vmem:[%s8050_s0 + $0x78] sm:$0xff] }
  0x97   :  { %v482_v2 = vpop.xlane.xlu1 %481 }
  0x98   :  { %v653_v3 = vmax.f32 %v633_v0, 0.0  ;;  %v594_v4 = vmul.f32 0.001953125, %v482_v2  ;;  %v614_v5 = vmul.f32 %v5050_v1, %v5050_v1  ;;  %v678_v36 = vsub.f32 %v5095_v34, %v5050_v1  ;;  %v5169_v2 = vld [vmem:[%s8050_s0 + $0x60] sm:$0xff] }
  0x99   :  { %v307_v6 = vpop.xlane.xlu0 %306  ;;  %v680_v39 = vsub.f32 %v5102_v38, %v5050_v1  ;;  %v677_v41 = vsub.f32 %v5109_v40, %v5050_v1  ;;  %v679_v43 = vsub.f32 %v5116_v42, %v5050_v1  ;;  %v3982_v38 = vld [vmem:[%s8052_s2 + $0x158] ss:$24 sps:$4 sm:$0xff]  }
  0x9a   :  { %v753_v7 = vadd.f32 1e-05, %v653_v3  ;;  %v634_v8 = vsub.f32 %v594_v4, %v614_v5  ;;  %v5054_v9 = vmul.f32 0.001953125, %v307_v6  ;;  %v5176_v4 = vld [vmem:[%s8050_s0 + $0x70] sm:$0xff]  ;;  %v5183_v6 = vld [vmem:[%s8050_s0 + $0x88] sm:$0xff] }
  0x9b   :  { %v312_v10 = vpop.xlane.xlu1 %311  ;;  %v3985_v1 = vld [vmem:[%s8052_s2 + $0x458] ss:$24 sps:$4 sm:$0xff]  }
  0x9c   :  { %4175 = vrsqrt.f32 %v753_v7  ;;  %v654_v11 = vmax.f32 %v634_v8, 0.0  ;;  %v5056_v12 = vmul.f32 0.001953125, %v312_v10  ;;  %v615_v13 = vmul.f32 %v5054_v9, %v5054_v9  ;;  %v5190_v8 = vld [vmem:[%s8050_s0 + $0x98] sm:$0xff] }
  0x9d   :  { %v487_v14 = vpop.xlane.xlu0 %486  ;;  %v682_v45 = vsub.f32 %v5123_v44, %v5054_v9  ;;  %v684_v54 = vsub.f32 %v5141_v53, %v5054_v9  ;;  %v681_v56 = vsub.f32 %v5148_v55, %v5054_v9  ;;  %v683_v58 = vsub.f32 %v5155_v57, %v5054_v9  ;;  %v3999_v44 = vld [vmem:[%s8052_s2 + $0x3fc] ss:$24 sps:$4 sm:$0xff]   ;;  %v3994_v9 = vld [vmem:[%s8052_s2 + $0xf8] ss:$24 sps:$4 sm:$0xff]  }
  0x9e   :  { %v754_v15 = vadd.f32 1e-05, %v654_v11  ;;  %v595_v16 = vmul.f32 0.001953125, %v487_v14  ;;  %v616_v19 = vmul.f32 %v5056_v12, %v5056_v12  ;;  %v686_v52 = vsub.f32 %v5134_v51, %v5056_v12  ;;  %v3997_v57 = vld [vmem:[%s8052_s2 + $0x3f8] ss:$24 sps:$4 sm:$0xff]  }
  0x9f   :  { %v492_v17 = vpop.xlane.xlu1 %491  ;;  %v688_v63 = vsub.f32 %v5162_v62, %v5056_v12  ;;  %v685_v3 = vsub.f32 %v5169_v2, %v5056_v12  ;;  %v687_v5 = vsub.f32 %v5176_v4, %v5056_v12  ;;  %v4002_v4 = vld [vmem:[%s8052_s2 + $0xcc] ss:$24 sps:$4 sm:$0xff]  }
  0xa0   :  { %4177 = vrsqrt.f32 %v754_v15  ;;  %v635_v18 = vsub.f32 %v595_v16, %v615_v13  ;;  %v596_v20 = vmul.f32 0.001953125, %v492_v17  ;;  %v5199_v17 = vld [vmem:[%s8050_s0 + $0xa8] sm:$0xff] }
  0xa1   :  { %v317_v21 = vpop.xlane.xlu0 %316 }
  0xa2   :  { %v655_v31 = vmax.f32 %v635_v18, 0.0  ;;  %v636_v32 = vsub.f32 %v596_v20, %v616_v19  ;;  %v5090_v33 = vmul.f32 0.001953125, %v317_v21  ;;  %v5206_v19 = vld [vmem:[%s8050_s0 + $0xb8] sm:$0xff]  ;;  %v5213_v21 = vld [vmem:[%s8050_s0 + $0x80] sm:$0xff] }
  0xa3   :  { %v322_v37 = vpop.xlane.xlu1 %321 }
  0xa4   :  { %v755_v46 = vadd.f32 1e-05, %v655_v31  ;;  %v656_v47 = vmax.f32 %v636_v32, 0.0  ;;  %v5127_v48 = vmul.f32 0.001953125, %v322_v37  ;;  %v617_v49 = vmul.f32 %v5090_v33, %v5090_v33  ;;  %v5220_v32 = vld [vmem:[%s8050_s0 + $0x90] sm:$0xff] }
  0xa5   :  { %v497_v50 = vpop.xlane.xlu0 %496  ;;  %v690_v7 = vsub.f32 %v5183_v6, %v5090_v33 }
  0xa6   :  { %4179 = vrsqrt.f32 %v755_v46  ;;  %v756_v60 = vadd.f32 1e-05, %v656_v47  ;;  %v597_v61 = vmul.f32 0.001953125, %v497_v50  ;;  %v618_v13 = vmul.f32 %v5127_v48, %v5127_v48  ;;  %v5229_v50 = vld [vmem:[%s8050_s0 + $0xa0] sm:$0xff] }
  0xa7   :  { %v502_v0 = vpop.xlane.xlu1 %501 }
  0xa8   :  { %4181 = vrsqrt.f32 %v756_v60  ;;  %v637_v11 = vsub.f32 %v597_v61, %v617_v49  ;;  %v598_v14 = vmul.f32 0.001953125, %v502_v0 }
  0xa9   :  { %v4176_v15 = vpop.eup %4175  ;;  %v327_v16 = vpop.xlane.xlu0 %326 }
  0xaa   :  { %v657_v46 = vmax.f32 %v637_v11, 0.0  ;;  %v638_v47 = vsub.f32 %v598_v14, %v618_v13  ;;  %v5224_v49 = vmul.f32 0.001953125, %v327_v16  ;;  %v794_v0 = vmul.f32 %v4176_v15, %v674_v23  ;;  %v5245_v14 = vld [vmem:[%s8050_s0 + $0xb0] sm:$0xff] }
  0xab   :  { %v332_v61 = vpop.xlane.xlu1 %331  ;;  %v796_v11 = vmul.f32 %v4176_v15, %v676_v25  ;;  %v793_v13 = vmul.f32 %v4176_v15, %v673_v27  ;;  %v795_v26 = vmul.f32 %v4176_v15, %v675_v30  ;;  %v5259_v27 = vld [vmem:[%s8050_s0 + $0xc8] sm:$0xff] }
  0xac   :  { %v757_v37 = vadd.f32 1e-05, %v657_v46  ;;  %v658_v60 = vmax.f32 %v638_v47, 0.0  ;;  %v5249_v22 = vmul.f32 0.001953125, %v332_v61  ;;  %v619_v23 = vmul.f32 %v5224_v49, %v5224_v49  ;;  %v5266_v47 = vld [vmem:[%s8050_s0 + $0xd8] sm:$0xff]  ;;  %v5280_v46 = vld [vmem:[%s8050_s0 + $0xd0] sm:$0xff] }
  0xad   :  { %v4178_v24 = vpop.eup %4177  ;;  %v507_v25 = vpop.xlane.xlu0 %506 }
  0xae   :  { %4183 = vrsqrt.f32 %v757_v37  ;;  %v758_v30 = vadd.f32 1e-05, %v658_v60  ;;  %v599_v15 = vmul.f32 0.001953125, %v507_v25  ;;  %v798_v20 = vmul.f32 %v4178_v24, %v678_v36 }
  0xaf   :  { %v512_v61 = vpop.xlane.xlu1 %511  ;;  %v800_v29 = vmul.f32 %v4178_v24, %v680_v39  ;;  %v797_v37 = vmul.f32 %v4178_v24, %v677_v41  ;;  %v799_v60 = vmul.f32 %v4178_v24, %v679_v43  ;;  %v620_v16 = vmul.f32 %v5249_v22, %v5249_v22  ;;  %v3988_v24 = vld [vmem:[%s8052_s2 + $0x128] ss:$24 sps:$4 sm:$0xff]  }
  0xb0   :  { %4185 = vrsqrt.f32 %v758_v30  ;;  %v639_v25 = vsub.f32 %v599_v15, %v619_v23  ;;  %v600_v18 = vmul.f32 0.001953125, %v512_v61  ;;  %v5298_v36 = vpack.c.bf16 %v798_v20, %v794_v0  ;;  %v3990_v20 = vld [vmem:[%s8052_s2 + $0x12c] ss:$24 sps:$4 sm:$0xff]  }
  0xb1   :  { %v337_v34 = vpop.xlane.xlu0 %336  ;;  %v5300_v31 = vpack.c.bf16 %v800_v29, %v796_v11  ;;  %v5305_v39 = vpack.c.bf16 %v797_v37, %v793_v13  ;;  %v5307_v40 = vpack.c.bf16 %v799_v60, %v795_v26  ;;  %v3993_v0 = vld [vmem:[%s8052_s2 + $0x42c] ss:$24 sps:$4 sm:$0xff]   ;;  %v5346_v29 = vld [vmem:[%s8050_s0 + $0xf0] sm:$0xff] }
  0xb2   :  { %v659_v41 = vmax.f32 %v639_v25, 0.0  ;;  %v640_v42 = vsub.f32 %v600_v18, %v620_v16  ;;  %v5312_v43 = vmul.f32 0.001953125, %v337_v34  ;;  %v5323_v11 = vld [vmem:[%s8050_s0 + $0xe8] sm:$0xff]  ;;  %1936 = vmatprep.mubr.bf16.mxu0 %v5298_v36  ;;  %v5332_v16 = vld [vmem:[%s8050_s0 + $0xf8] sm:$0xff]  ;;  %v5339_v26 = vld [vmem:[%s8050_s0 + $0xe0] sm:$0xff] }
  0xb3   :  { %v4180_v23 = vpop.eup %4179  ;;  %2069 = vmatprep.mubr.bf16.mxu1 %v5300_v31  ;;  %v342_v18 = vpop.xlane.xlu1 %341  ;;  %1937 = vmatmul.mubr.bf16.vlgmr.msra.gmra.mxu0 %v5305_v39 }
  0xb4   :  { %v759_v15 = vadd.f32 1e-05, %v659_v41  ;;  %v660_v37 = vmax.f32 %v640_v42, 0.0  ;;  %v5350_v60 = vmul.f32 0.001953125, %v342_v18  ;;  %2070 = vmatmul.mubr.bf16.vlgmr.msra.gmra.mxu1 %v5307_v40  ;;  %v621_v25 = vmul.f32 %v5312_v43, %v5312_v43  ;;  %2171 = vmatpush1.bf16.msra.mxu0 %v3982_v38  ;;  %v3991_v41 = vld [vmem:[%s8052_s2 + $0x428] ss:$24 sps:$4 sm:$0xff]  }
  0xb5   :  { %v4182_v34 = vpop.eup %4181  ;;  %v517_v61 = vpop.xlane.xlu0 %516  ;;  %2304 = vmatpush1.bf16.msra.mxu1 %v3985_v1  ;;  %v802_v42 = vmul.f32 %v4180_v23, %v682_v45  ;;  %v804_v18 = vmul.f32 %v4180_v23, %v684_v54  ;;  %v801_v38 = vmul.f32 %v4180_v23, %v681_v56  ;;  %v3996_v1 = vld [vmem:[%s8052_s2 + $0xfc] ss:$24 sps:$4 sm:$0xff]   ;;  %2172 = vmatprep.subr.bf16.mxu0 %v3990_v20 }
  0xb6   :  { %4187 = vrsqrt.f32 %v759_v15  ;;  %v760_v30 = vadd.f32 1e-05, %v660_v37  ;;  %v601_v13 = vmul.f32 0.001953125, %v517_v61  ;;  %v622_v10 = vmul.f32 %v5350_v60, %v5350_v60  ;;  %2305 = vmatprep.subr.bf16.mxu1 %v3993_v0  ;;  %v5435_v37 = vld [vmem:[%s8050_s0 + $0x118] sm:$0xff] }
  0xb7   :  { %v522_v45 = vpop.xlane.xlu1 %521  ;;  %v806_v53 = vmul.f32 %v4182_v34, %v686_v52  ;;  %v808_v54 = vmul.f32 %v4182_v34, %v688_v63  ;;  %v805_v55 = vmul.f32 %v4182_v34, %v685_v3  ;;  %v803_v56 = vmul.f32 %v4180_v23, %v683_v58  ;;  %v5421_v23 = vld [vmem:[%s8050_s0 + $0x108] sm:$0xff] }
  0xb8   :  { %4189 = vrsqrt.f32 %v760_v30  ;;  %v641_v20 = vsub.f32 %v601_v13, %v621_v25  ;;  %v602_v0 = vmul.f32 0.001953125, %v522_v45  ;;  %v807_v51 = vmul.f32 %v4182_v34, %v687_v5  ;;  %2173 = vmatpush1.bf16.msra.mxu0 %v3988_v24  ;;  %v4005_v5 = vld [vmem:[%s8052_s2 + $0x3cc] ss:$24 sps:$4 sm:$0xff]  }
  0xb9   :  { %v347_v52 = vpop.xlane.xlu0 %346  ;;  %v5394_v61 = vpack.c.bf16 %v806_v53, %v802_v42  ;;  %v5396_v62 = vpack.c.bf16 %v808_v54, %v804_v18  ;;  %2306 = vmatpush1.bf16.msra.mxu1 %v3991_v41  ;;  %v5398_v63 = vpack.c.bf16 %v805_v55, %v801_v38  ;;  %2174 = vmatprep.subr.bf16.mxu0 %v3996_v1  ;;  %v5428_v30 = vld [vmem:[%s8050_s0 + $0x128] sm:$0xff] }
  0xba   :  { %v661_v58 = vmax.f32 %v641_v20, 0.0  ;;  %v642_v12 = vsub.f32 %v602_v0, %v622_v10  ;;  %v5406_v2 = vmul.f32 0.001953125, %v347_v52  ;;  %v5408_v3 = vpack.c.bf16 %v807_v51, %v803_v56  ;;  %2307 = vmatprep.subr.bf16.mxu1 %v3999_v44  ;;  %v4000_v44 = vld [vmem:[%s8052_s2 + $0xc8] ss:$24 sps:$4 sm:$0xff]   ;;  %v4008_v0 = vld [vmem:[%s8052_s2 + $0x9c] ss:$24 sps:$4 sm:$0xff]  }
  0xbb   :  { %v4184_v13 = vpop.eup %4183  ;;  %1946 = vmatprep.mubr.bf16.mxu0 %v5394_v61  ;;  %2079 = vmatprep.mubr.bf16.mxu1 %v5396_v62  ;;  %v352_v10 = vpop.xlane.xlu1 %351  ;;  %v706_v24 = vsub.f32 %v5421_v23, %v5312_v43  ;;  %v710_v15 = vsub.f32 %v5428_v30, %v5350_v60  ;;  %v708_v25 = vsub.f32 %v5435_v37, %v5312_v43  ;;  %v4003_v20 = vld [vmem:[%s8052_s2 + $0x3c8] ss:$24 sps:$4 sm:$0xff]  }
  0xbc   :  { %v761_v34 = vadd.f32 1e-05, %v661_v58  ;;  %v662_v41 = vmax.f32 %v642_v12, 0.0  ;;  %v5439_v42 = vmul.f32 0.001953125, %v352_v10  ;;  %1947 = vmatmul.mubr.bf16.gmra.mxu0 %v5398_v63  ;;  %2080 = vmatmul.mubr.bf16.gmra.mxu1 %v5408_v3  ;;  %v623_v18 = vmul.f32 %v5406_v2, %v5406_v2 }
  0xbd   :  { %v4186_v38 = vpop.eup %4185  ;;  %v527_v1 = vpop.xlane.xlu0 %526  ;;  %2175 = vmatpush1.bf16.msra.mxu0 %v3994_v9  ;;  %2308 = vmatpush1.bf16.msra.mxu1 %v3997_v57  ;;  %v810_v45 = vmul.f32 %v4184_v13, %v690_v7  ;;  %v8143_v53 = vsub.f32 %v5190_v8, %v5090_v33  ;;  %v8144_v55 = vsub.f32 %v5213_v21, %v5090_v33  ;;  %v4011_v8 = vld [vmem:[%s8052_s2 + $0x39c] ss:$24 sps:$4 sm:$0xff]  }
  0xbe   :  { %4191 = vrsqrt.f32 %v761_v34  ;;  %v762_v51 = vadd.f32 1e-05, %v662_v41  ;;  %v603_v6 = vmul.f32 0.001953125, %v527_v1  ;;  %v624_v7 = vmul.f32 %v5439_v42, %v5439_v42  ;;  %2176 = vmatprep.subr.bf16.mxu0 %v4002_v4  ;;  %2309 = vmatprep.subr.bf16.mxu1 %v4005_v5 }
  0xbf   :  { %v812_v54 = vmul.f32 %v4184_v13, %v8143_v53  ;;  %v809_v56 = vmul.f32 %v4184_v13, %v8144_v55  ;;  %v532_v21 = vpop.xlane.xlu1 %531  ;;  %v8145_v52 = vsub.f32 %v5199_v17, %v5127_v48  ;;  %v8146_v57 = vsub.f32 %v5206_v19, %v5127_v48 }
  0xc0   :  { %v8147_v12 = vsub.f32 %v5229_v50, %v5127_v48  ;;  %v8148_v4 = vsub.f32 %v5220_v32, %v5090_v33  ;;  %4193 = vrsqrt.f32 %v762_v51  ;;  %v643_v34 = vsub.f32 %v603_v6, %v623_v18  ;;  %v4006_v33 = vld [vmem:[%s8052_s2 + $0x98] ss:$24 sps:$4 sm:$0xff]   ;;  %v4014_v18 = vld [vmem:[%s8052_s2 + $0x6c] ss:$24 sps:$4 sm:$0xff]  }
  0xc1   :  { %v814_v9 = vmul.f32 %v4186_v38, %v8145_v52  ;;  %v816_v58 = vmul.f32 %v4186_v38, %v8146_v57  ;;  %v604_v41 = vmul.f32 0.001953125, %v532_v21  ;;  %v8149_v1 = vsub.f32 %v5245_v14, %v5127_v48  ;;  %v357_v53 = vpop.xlane.xlu0 %356  ;;  %2177 = vmatpush1.bf16.msra.mxu0 %v4000_v44  ;;  %2310 = vmatpush1.bf16.msra.mxu1 %v4003_v20  ;;  %v4009_v32 = vld [vmem:[%s8052_s2 + $0x398] ss:$24 sps:$4 sm:$0xff]   ;;  %v5517_v20 = vld [vmem:[%s8050_s0 + $0x100] sm:$0xff] }
  0xc2   :  { %v813_v10 = vmul.f32 %v4186_v38, %v8147_v12  ;;  %v811_v5 = vmul.f32 %v4184_v13, %v8148_v4  ;;  %v663_v50 = vmax.f32 %v643_v34, 0.0  ;;  %v5495_v14 = vmul.f32 0.001953125, %v357_v53  ;;  %2178 = vmatprep.subr.bf16.mxu0 %v4008_v0  ;;  %2311 = vmatprep.subr.bf16.mxu1 %v4011_v8  ;;  %v5524_v51 = vld [vmem:[%s8050_s0 + $0x120] sm:$0xff] }
  0xc3   :  { %v815_v17 = vmul.f32 %v4186_v38, %v8149_v1  ;;  %v5483_v55 = vpack.c.bf16 %v814_v9, %v810_v45  ;;  %v5485_v19 = vpack.c.bf16 %v816_v58, %v812_v54  ;;  %v644_v48 = vsub.f32 %v604_v41, %v624_v7  ;;  %v4017_v38 = vld [vmem:[%s8052_s2 + $0x36c] ss:$24 sps:$4 sm:$0xff]   ;;  %v4188_v44 = vpop.eup %4187  ;;  %v362_v45 = vpop.xlane.xlu1 %361  ;;  %v5510_v54 = vld [vmem:[%s8050_s0 + $0x138] sm:$0xff]  ;;  %v4012_v1 = vld [vmem:[%s8052_s2 + $0x68] ss:$24 sps:$4 sm:$0xff]  }
  0xc4   :  { %v5487_v52 = vpack.c.bf16 %v813_v10, %v809_v56  ;;  %v712_v56 = vsub.f32 %v5510_v54, %v5350_v60  ;;  %v705_v0 = vsub.f32 %v5517_v20, %v5312_v43  ;;  %v763_v7 = vadd.f32 1e-05, %v663_v50 }
  0xc5   :  { %v5497_v13 = vpack.c.bf16 %v815_v17, %v811_v5  ;;  %1956 = vmatprep.mubr.bf16.mxu0 %v5483_v55  ;;  %2089 = vmatprep.mubr.bf16.mxu1 %v5485_v19  ;;  %v664_v8 = vmax.f32 %v644_v48, 0.0  ;;  %v5528_v21 = vmul.f32 0.001953125, %v362_v45  ;;  %v625_v9 = vmul.f32 %v5495_v14, %v5495_v14  ;;  %v4190_v57 = vpop.eup %4189  ;;  %v537_v58 = vpop.xlane.xlu0 %536  ;;  %v4015_v17 = vld [vmem:[%s8052_s2 + $0x368] ss:$24 sps:$4 sm:$0xff]  }
  0xc6   :  { %1957 = vmatmul.mubr.bf16.gmra.mxu0 %v5487_v52  ;;  %2312 = vmatpush1.bf16.msra.mxu1 %v4009_v32  ;;  %v8150_v12 = vsub.f32 %v5259_v27, %v5224_v49  ;;  %v8151_v4 = vsub.f32 %v5266_v47, %v5224_v49  ;;  %v8152_v34 = vsub.f32 %v5273_v59, %v5224_v49  ;;  %v4020_v27 = vld [vmem:[%s8052_s2 + $0x3c] ss:$24 sps:$4 sm:$0xff]   ;;  %4195 = vrsqrt.f32 %v763_v7 }
  0xc7   :  { %2090 = vmatmul.mubr.bf16.gmra.mxu1 %v5497_v13  ;;  %2179 = vmatpush1.bf16.msra.mxu0 %v4006_v33  ;;  %v764_v53 = vadd.f32 1e-05, %v664_v8  ;;  %v605_v47 = vmul.f32 0.001953125, %v537_v58  ;;  %v626_v33 = vmul.f32 %v5528_v21, %v5528_v21  ;;  %v4023_v59 = vld [vmem:[%s8052_s2 + $0x33c] ss:$24 sps:$4 sm:$0xff]   ;;  %v542_v32 = vpop.xlane.xlu1 %541  ;;  %v8153_v50 = vsub.f32 %v5323_v11, %v5249_v22 }
  0xc8   :  { %v818_v10 = vmul.f32 %v4188_v44, %v8150_v12  ;;  %v820_v5 = vmul.f32 %v4188_v44, %v8151_v4  ;;  %v817_v41 = vmul.f32 %v4188_v44, %v8152_v34  ;;  %2180 = vmatprep.subr.bf16.mxu0 %v4014_v18  ;;  %2313 = vmatprep.subr.bf16.mxu1 %v4017_v38  ;;  %v606_v4 = vmul.f32 0.001953125, %v542_v32 }
  0xc9   :  { %v822_v48 = vmul.f32 %v4190_v57, %v8153_v50  ;;  %v8154_v45 = vsub.f32 %v5332_v16, %v5249_v22  ;;  %v8155_v8 = vsub.f32 %v5339_v26, %v5249_v22  ;;  %v8156_v18 = vsub.f32 %v5280_v46, %v5224_v49  ;;  %v367_v50 = vpop.xlane.xlu0 %366  ;;  %v4018_v49 = vld [vmem:[%s8052_s2 + $0x38] ss:$24 sps:$4 sm:$0xff]  }
  0xca   :  { %4197 = vrsqrt.f32 %v764_v53  ;;  %v645_v12 = vsub.f32 %v605_v47, %v625_v9  ;;  %v8157_v34 = vsub.f32 %v5346_v29, %v5249_v22  ;;  %2314 = vmatpush1.bf16.msra.mxu1 %v4015_v17  ;;  %v646_v26 = vsub.f32 %v606_v4, %v626_v33  ;;  %v4021_v22 = vld [vmem:[%s8052_s2 + $0x338] ss:$24 sps:$4 sm:$0xff]   ;;  %v4026_v29 = vld [vmem:[%s8052_s2 + $0xc] ss:$24 sps:$4 sm:$0xff]   ;;  %v4024_v4 = vld [vmem:[%s8052_s2 + $0x8] ss:$24 sps:$4 sm:$0xff]  }
  0xcb   :  { %v824_v7 = vmul.f32 %v4190_v57, %v8154_v45  ;;  %v821_v58 = vmul.f32 %v4190_v57, %v8155_v8  ;;  %v819_v38 = vmul.f32 %v4188_v44, %v8156_v18  ;;  %v5572_v6 = vpack.c.bf16 %v822_v48, %v818_v10  ;;  %2181 = vmatpush1.bf16.msra.mxu0 %v4012_v1  ;;  %v372_v10 = vpop.xlane.xlu1 %371  ;;  %v4298_v1 = vld [vmem:[%s8050_s0 + $0x130] sm:$0xff]  ;;  %v5607_v53 = vld [vmem:[%s8050_s0 + $0x148] sm:$0xff] }
  0xcc   :  { %v823_v11 = vmul.f32 %v4190_v57, %v8157_v34  ;;  %v665_v46 = vmax.f32 %v645_v12, 0.0  ;;  %v5581_v44 = vmul.f32 0.001953125, %v367_v50  ;;  %2182 = vmatprep.subr.bf16.mxu0 %v4020_v27  ;;  %2315 = vmatprep.subr.bf16.mxu1 %v4023_v59  ;;  %v4192_v57 = vpop.eup %4191  ;;  %v711_v17 = vsub.f32 %v4298_v1, %v5350_v60  ;;  %v4029_v27 = vld [vmem:[%s8052_s2 + $0x30c] ss:$24 sps:$4 sm:$0xff]   ;;  %v4027_v34 = vld [vmem:[%s8052_s2 + $0x308] ss:$24 sps:$4 sm:$0xff]  }
  0xcd   :  { %v5574_v16 = vpack.c.bf16 %v824_v7, %v820_v5  ;;  %v5576_v45 = vpack.c.bf16 %v821_v58, %v817_v41  ;;  %1966 = vmatprep.mubr.bf16.mxu0 %v5572_v6  ;;  %v4297_v5 = vld [vmem:[%s8050_s0 + $0x110] sm:$0xff]  ;;  %v714_v47 = vsub.f32 %v5607_v53, %v5406_v2  ;;  %v666_v59 = vmax.f32 %v646_v26, 0.0  ;;  %v4194_v7 = vpop.eup %4193  ;;  %v547_v8 = vpop.xlane.xlu0 %546 }
  0xce   :  { %v5583_v9 = vpack.c.bf16 %v823_v11, %v819_v38  ;;  %v707_v41 = vsub.f32 %v4297_v5, %v5312_v43  ;;  %v765_v33 = vadd.f32 1e-05, %v665_v46  ;;  %v5611_v32 = vmul.f32 0.001953125, %v372_v10  ;;  %2316 = vmatpush1.bf16.msra.mxu1 %v4021_v22  ;;  %v4032_v43 = vld [vmem:[%s8052_s2 + $0x2dc] ss:$24 sps:$4 sm:$0xff]   ;;  %v4300_v22 = vld [vmem:[%s8050_s0 + $0x168] sm:$0xff] }
  0xcf   :  { %2099 = vmatprep.mubr.bf16.mxu1 %v5574_v16  ;;  %1967 = vmatmul.mubr.bf16.gmra.mxu0 %v5576_v45  ;;  %v627_v48 = vmul.f32 %v5581_v44, %v5581_v44  ;;  %v826_v58 = vmul.f32 %v4192_v57, %v706_v24  ;;  %v828_v18 = vmul.f32 %v4192_v57, %v708_v25  ;;  %v766_v23 = vadd.f32 1e-05, %v666_v59  ;;  %v552_v25 = vpop.xlane.xlu1 %551 }
  0xd0   :  { %2100 = vmatmul.mubr.bf16.gmra.mxu1 %v5583_v9  ;;  %2183 = vmatpush1.bf16.msra.mxu0 %v4018_v49  ;;  %v825_v38 = vmul.f32 %v4192_v57, %v705_v0  ;;  %v827_v12 = vmul.f32 %v4192_v57, %v707_v41  ;;  %4199 = vrsqrt.f32 %v765_v33  ;;  %v607_v24 = vmul.f32 0.001953125, %v547_v8  ;;  %v4301_v41 = vld [vmem:[%s8050_s0 + $0x158] sm:$0xff]  ;;  %v4303_v8 = vld [vmem:[%s8050_s0 + $0x140] sm:$0xff] }
  0xd1   :  { %v628_v37 = vmul.f32 %v5611_v32, %v5611_v32  ;;  %2184 = vmatprep.subr.bf16.mxu0 %v4026_v29  ;;  %v830_v20 = vmul.f32 %v4194_v7, %v710_v15  ;;  %v832_v0 = vmul.f32 %v4194_v7, %v712_v56  ;;  %v8158_v11 = vsub.f32 %v5524_v51, %v5350_v60  ;;  %v377_v15 = vpop.xlane.xlu0 %376  ;;  %v4030_v51 = vld [vmem:[%s8052_s2 + $0x2d8] ss:$24 sps:$4 sm:$0xff]  }
  0xd2   :  { %v831_v49 = vmul.f32 %v4194_v7, %v711_v17  ;;  %2317 = vmatprep.subr.bf16.mxu1 %v4029_v27  ;;  %4201 = vrsqrt.f32 %v766_v23  ;;  %v647_v46 = vsub.f32 %v607_v24, %v627_v48  ;;  %v608_v26 = vmul.f32 0.001953125, %v552_v25  ;;  %v4035_v17 = vld [vmem:[%s8052_s2 + $0x5dc] ss:$24 sps:$4 sm:$0xff]   ;;  %v4038_v27 = vld [vmem:[%s8052_s2 + $0x2ac] ss:$24 sps:$4 sm:$0xff]  }
  0xd3   :  { %v829_v50 = vmul.f32 %v4194_v7, %v8158_v11  ;;  %v718_v30 = vsub.f32 %v4300_v22, %v5439_v42  ;;  %v5650_v29 = vpack.c.bf16 %v830_v20, %v826_v58  ;;  %v5652_v54 = vpack.c.bf16 %v832_v0, %v828_v18  ;;  %2318 = vmatpush1.bf16.msra.mxu1 %v4027_v34  ;;  %v4196_v33 = vpop.eup %4195  ;;  %v382_v59 = vpop.xlane.xlu1 %381  ;;  %v4302_v48 = vld [vmem:[%s8050_s0 + $0x178] sm:$0xff]  ;;  %v4304_v18 = vld [vmem:[%s8050_s0 + $0x160] sm:$0xff] }
  0xd4   :  { %v5656_v60 = vpack.c.bf16 %v831_v49, %v827_v12  ;;  %2185 = vmatpush1.bf16.msra.mxu0 %v4024_v4  ;;  %v667_v57 = vmax.f32 %v647_v46, 0.0  ;;  %v648_v10 = vsub.f32 %v608_v26, %v628_v37  ;;  %v5661_v5 = vmul.f32 0.001953125, %v377_v15  ;;  %v4033_v12 = vld [vmem:[%s8052_s2 + $0x5d8] ss:$24 sps:$4 sm:$0xff]   ;;  %v4041_v37 = vld [vmem:[%s8052_s2 + $0x5ac] ss:$24 sps:$4 sm:$0xff]   ;;  %2319 = vmatprep.subr.bf16.mxu1 %v4035_v17 }
  0xd5   :  { %v5654_v56 = vpack.c.bf16 %v829_v50, %v825_v38  ;;  %v716_v1 = vsub.f32 %v4301_v41, %v5406_v2  ;;  %2186 = vmatprep.subr.bf16.mxu0 %v4032_v43  ;;  %1976 = vmatprep.mubr.bf16.mxu0 %v5650_v29  ;;  %v720_v7 = vsub.f32 %v4302_v48, %v5439_v42  ;;  %v5690_v23 = vmul.f32 0.001953125, %v382_v59  ;;  %v557_v25 = vpop.xlane.xlu0 %556  ;;  %v4305_v50 = vld [vmem:[%s8050_s0 + $0x150] sm:$0xff]  ;;  %v4036_v46 = vld [vmem:[%s8052_s2 + $0x2a8] ss:$24 sps:$4 sm:$0xff]  }
  0xd6   :  { %2109 = vmatprep.mubr.bf16.mxu1 %v5652_v54  ;;  %v713_v58 = vsub.f32 %v4303_v8, %v5406_v2  ;;  %v717_v38 = vsub.f32 %v4304_v18, %v5439_v42  ;;  %v767_v4 = vadd.f32 1e-05, %v667_v57  ;;  %v668_v34 = vmax.f32 %v648_v10, 0.0  ;;  %v4306_v10 = vld [vmem:[%s8050_s0 + $0x170] sm:$0xff] }
  0xd7   :  { %1977 = vmatmul.mubr.bf16.gmra.mxu0 %v5654_v56  ;;  %v629_v24 = vmul.f32 %v5661_v5, %v5661_v5  ;;  %v4198_v43 = vpop.eup %4197  ;;  %v834_v20 = vmul.f32 %v4196_v33, %v714_v47  ;;  %v836_v0 = vmul.f32 %v4196_v33, %v716_v1  ;;  %v715_v49 = vsub.f32 %v4305_v50, %v5406_v2  ;;  %v4045_v47 = vld [vmem:[%s8052_s2 + $0x27c] ss:$24 sps:$4 sm:$0xff]   ;;  %v562_v15 = vpop.xlane.xlu1 %561  ;;  %v4051_v50 = vld [vmem:[%s8052_s2 + $0x24c] ss:$24 sps:$4 sm:$0xff]  }
  0xd8   :  { %2110 = vmatmul.mubr.bf16.gmra.mxu1 %v5656_v60  ;;  %v833_v11 = vmul.f32 %v4196_v33, %v713_v58  ;;  %2187 = vmatpush2.bf16.msra.mxu0 %v4030_v51  ;;  %4203 = vrsqrt.f32 %v767_v4  ;;  %v768_v26 = vadd.f32 1e-05, %v668_v34  ;;  %v609_v22 = vmul.f32 0.001953125, %v557_v25  ;;  %v4043_v4 = vld [vmem:[%s8052_s2 + $0x278] ss:$24 sps:$4 sm:$0xff]   ;;  %v4308_v25 = vld [vmem:[%s8050_s0 + $0x1a8] sm:$0xff] }
  0xd9   :  { %v630_v53 = vmul.f32 %v5690_v23, %v5690_v23  ;;  %2188 = vmatprep.subr.bf16.mxu0 %v4038_v27  ;;  %v838_v57 = vmul.f32 %v4198_v43, %v718_v30  ;;  %v840_v2 = vmul.f32 %v4198_v43, %v720_v7  ;;  %v837_v51 = vmul.f32 %v4198_v43, %v717_v38  ;;  %v4039_v27 = vld [vmem:[%s8052_s2 + $0x5a8] ss:$24 sps:$4 sm:$0xff]   ;;  %v387_v48 = vpop.xlane.xlu0 %386  ;;  %v4048_v34 = vld [vmem:[%s8052_s2 + $0x57c] ss:$24 sps:$4 sm:$0xff]  }
  0xda   :  { %v719_v41 = vsub.f32 %v4306_v10, %v5439_v42  ;;  %2320 = vmatpush2.bf16.msra.mxu1 %v4033_v12  ;;  %4205 = vrsqrt.f32 %v768_v26  ;;  %v649_v1 = vsub.f32 %v609_v22, %v629_v24  ;;  %v610_v59 = vmul.f32 0.001953125, %v562_v15 }
  0xdb   :  { %v835_v17 = vmul.f32 %v4196_v33, %v715_v49  ;;  %2321 = vmatprep.subr.bf16.mxu1 %v4041_v37  ;;  %v5721_v30 = vpack.c.bf16 %v838_v57, %v834_v20  ;;  %v5723_v7 = vpack.c.bf16 %v840_v2, %v836_v0  ;;  %v5725_v8 = vpack.c.bf16 %v837_v51, %v833_v11  ;;  %v4307_v33 = vld [vmem:[%s8050_s0 + $0x188] sm:$0xff]  ;;  %v392_v37 = vpop.xlane.xlu1 %391  ;;  %v4309_v0 = vld [vmem:[%s8050_s0 + $0x198] sm:$0xff] }
  0xdc   :  { %v839_v58 = vmul.f32 %v4198_v43, %v719_v41  ;;  %2189 = vmatpush2.bf16.msra.mxu0 %v4036_v46  ;;  %v669_v42 = vmax.f32 %v649_v1, 0.0  ;;  %v650_v18 = vsub.f32 %v610_v59, %v630_v53  ;;  %v5727_v38 = vmul.f32 0.001953125, %v387_v48  ;;  %v4046_v53 = vld [vmem:[%s8052_s2 + $0x578] ss:$24 sps:$4 sm:$0xff]   ;;  %v4311_v41 = vld [vmem:[%s8050_s0 + $0x180] sm:$0xff] }
  0xdd   :  { %v722_v12 = vsub.f32 %v4307_v33, %v5495_v14  ;;  %2190 = vmatprep.subr.bf16.mxu0 %v4045_v47  ;;  %v4200_v24 = vpop.eup %4199  ;;  %1986 = vmatprep.mubr.bf16.mxu0 %v5721_v30  ;;  %v726_v20 = vsub.f32 %v4308_v25, %v5528_v21  ;;  %v724_v11 = vsub.f32 %v4309_v0, %v5495_v14  ;;  %v5754_v26 = vmul.f32 0.001953125, %v392_v37  ;;  %v567_v15 = vpop.xlane.xlu0 %566  ;;  %v4310_v2 = vld [vmem:[%s8050_s0 + $0x1b8] sm:$0xff]  ;;  %v4054_v59 = vld [vmem:[%s8052_s2 + $0x54c] ss:$24 sps:$4 sm:$0xff]  }
  0xde   :  { %2119 = vmatprep.mubr.bf16.mxu1 %v5723_v7  ;;  %v5741_v43 = vpack.c.bf16 %v839_v58, %v835_v17  ;;  %v769_v49 = vadd.f32 1e-05, %v669_v42  ;;  %v670_v46 = vmax.f32 %v650_v18, 0.0  ;;  %v631_v22 = vmul.f32 %v5727_v38, %v5727_v38  ;;  %2322 = vmatpush2.bf16.msra.mxu1 %v4039_v27  ;;  %v4049_v58 = vld [vmem:[%s8052_s2 + $0x248] ss:$24 sps:$4 sm:$0xff]  }
  0xdf   :  { %1987 = vmatmul.mubr.bf16.gmra.mxu0 %v5725_v8  ;;  %v4202_v47 = vpop.eup %4201  ;;  %v842_v57 = vmul.f32 %v4200_v24, %v722_v12  ;;  %v728_v51 = vsub.f32 %v4310_v2, %v5528_v21  ;;  %v844_v10 = vmul.f32 %v4200_v24, %v724_v11  ;;  %v721_v1 = vsub.f32 %v4311_v41, %v5495_v14  ;;  %v572_v42 = vpop.xlane.xlu1 %571  ;;  %v4312_v12 = vld [vmem:[%s8050_s0 + $0x1a0] sm:$0xff]  ;;  %v4055_v41 = vld [vmem:[%s8052_s2 + $0x218] ss:$24 sps:$4 sm:$0xff]  }
  0xe0   :  { %2120 = vmatmul.mubr.bf16.gmra.mxu1 %v5741_v43  ;;  %4207 = vrsqrt.f32 %v769_v49  ;;  %v770_v17 = vadd.f32 1e-05, %v670_v46  ;;  %v611_v27 = vmul.f32 0.001953125, %v567_v15  ;;  %v632_v48 = vmul.f32 %v5754_v26, %v5754_v26  ;;  %2191 = vmatpush2.bf16.msra.mxu0 %v4043_v4  ;;  %v4313_v4 = vld [vmem:[%s8050_s0 + $0x190] sm:$0xff] }
  0xe1   :  { %2323 = vmatprep.subr.bf16.mxu1 %v4048_v34  ;;  %v846_v18 = vmul.f32 %v4202_v47, %v726_v20  ;;  %v848_v33 = vmul.f32 %v4202_v47, %v728_v51  ;;  %v725_v37 = vsub.f32 %v4312_v12, %v5528_v21  ;;  %v841_v25 = vmul.f32 %v4200_v24, %v721_v1  ;;  %v4052_v20 = vld [vmem:[%s8052_s2 + $0x548] ss:$24 sps:$4 sm:$0xff]   ;;  %v4057_v49 = vld [vmem:[%s8052_s2 + $0x21c] ss:$24 sps:$4 sm:$0xff]  }
  0xe2   :  { %2192 = vmatprep.subr.bf16.mxu0 %v4051_v50  ;;  %4209 = vrsqrt.f32 %v770_v17  ;;  %v651_v0 = vsub.f32 %v611_v27, %v631_v22  ;;  %v612_v11 = vmul.f32 0.001953125, %v572_v42  ;;  %v723_v34 = vsub.f32 %v4313_v4, %v5495_v14  ;;  %2324 = vmatpush2.bf16.msra.mxu1 %v4046_v53  ;;  %v4314_v15 = vld [vmem:[%s8050_s0 + $0x1b0] sm:$0xff] }
  0xe3   :  { %v5793_v46 = vpack.c.bf16 %v846_v18, %v842_v57  ;;  %v5795_v50 = vpack.c.bf16 %v848_v33, %v844_v10  ;;  %v845_v22 = vmul.f32 %v4202_v47, %v725_v37  ;;  %v727_v14 = vsub.f32 %v4314_v15, %v5528_v21  ;;  %2325 = vmatprep.subr.bf16.mxu1 %v4054_v59  ;;  %v4060_v57 = vld [vmem:[%s8052_s2 + $0x51c] ss:$24 sps:$4 sm:$0xff]   ;;  %v4058_v17 = vld [vmem:[%s8052_s2 + $0x518] ss:$24 sps:$4 sm:$0xff]   ;;  %v4063_v33 = vld [vmem:[%s8052_s2 + $0x1ec] ss:$24 sps:$4 sm:$0xff]  }
  0xe4   :  { %v671_v53 = vmax.f32 %v651_v0, 0.0  ;;  %v652_v2 = vsub.f32 %v612_v11, %v632_v48  ;;  %v843_v51 = vmul.f32 %v4200_v24, %v723_v34  ;;  %2193 = vmatpush2.bf16.msra.mxu0 %v4049_v58  ;;  %v4315_v24 = vld [vmem:[%s8050_s0 + $0x1c8] sm:$0xff]  ;;  %v4319_v11 = vld [vmem:[%s8050_s0 + $0x1c0] sm:$0xff] }
  0xe5   :  { %v4204_v10 = vpop.eup %4203  ;;  %1996 = vmatprep.mubr.bf16.mxu0 %v5793_v46  ;;  %2129 = vmatprep.mubr.bf16.mxu1 %v5795_v50  ;;  %v5809_v1 = vpack.c.bf16 %v845_v22, %v841_v25  ;;  %v847_v21 = vmul.f32 %v4202_v47, %v727_v14  ;;  %v730_v59 = vsub.f32 %v4315_v24, %v5581_v44  ;;  %v4316_v58 = vld [vmem:[%s8050_s0 + $0x1e8] sm:$0xff]  ;;  %v4317_v47 = vld [vmem:[%s8050_s0 + $0x1d8] sm:$0xff]  ;;  %v4320_v34 = vld [vmem:[%s8050_s0 + $0x1e0] sm:$0xff] }
  0xe6   :  { %v771_v27 = vadd.f32 1e-05, %v671_v53  ;;  %v672_v48 = vmax.f32 %v652_v2, 0.0  ;;  %v734_v42 = vsub.f32 %v4316_v58, %v5611_v32  ;;  %v732_v18 = vsub.f32 %v4317_v47, %v5581_v44  ;;  %2326 = vmatpush2.bf16.msra.mxu1 %v4052_v20  ;;  %2194 = vmatprep.subr.bf16.mxu0 %v4057_v49  ;;  %v4318_v25 = vld [vmem:[%s8050_s0 + $0x1f8] sm:$0xff]  ;;  %v4066_v49 = vld [vmem:[%s8052_s2 + $0x4ec] ss:$24 sps:$4 sm:$0xff]  }
  0xe7   :  { %v4206_v12 = vpop.eup %4205  ;;  %1997 = vmatmul.mubr.bf16.gmra.mxu0 %v5809_v1  ;;  %v5830_v37 = vpack.c.bf16 %v847_v21, %v843_v51  ;;  %v736_v0 = vsub.f32 %v4318_v25, %v5611_v32  ;;  %v729_v4 = vsub.f32 %v4319_v11, %v5581_v44  ;;  %v733_v20 = vsub.f32 %v4320_v34, %v5611_v32  ;;  %v4061_v24 = vld [vmem:[%s8052_s2 + $0x1e8] ss:$24 sps:$4 sm:$0xff]   ;;  %v4325_v34 = vld [vmem:[%s8050_s0 + $0x218] sm:$0xff] }
  0xe8   :  { %4211 = vrsqrt.f32 %v771_v27  ;;  %v772_v22 = vadd.f32 1e-05, %v672_v48  ;;  %v850_v15 = vmul.f32 %v4204_v10, %v730_v59  ;;  %v854_v14 = vmul.f32 %v4206_v12, %v734_v42  ;;  %2195 = vmatpush2.bf16.msra.mxu0 %v4055_v41  ;;  %2327 = vmatprep.subr.bf16.mxu1 %v4060_v57  ;;  %v4321_v59 = vld [vmem:[%s8050_s0 + $0x1d0] sm:$0xff]  ;;  %v4064_v48 = vld [vmem:[%s8052_s2 + $0x4e8] ss:$24 sps:$4 sm:$0xff]  }
  0xe9   :  { %2130 = vmatmul.mubr.bf16.gmra.mxu1 %v5830_v37  ;;  %v852_v53 = vmul.f32 %v4204_v10, %v732_v18  ;;  %v856_v2 = vmul.f32 %v4206_v12, %v736_v0  ;;  %v849_v51 = vmul.f32 %v4204_v10, %v729_v4  ;;  %v853_v21 = vmul.f32 %v4206_v12, %v733_v20  ;;  %v4322_v57 = vld [vmem:[%s8050_s0 + $0x1f0] sm:$0xff]  ;;  %v4324_v11 = vld [vmem:[%s8050_s0 + $0x228] sm:$0xff] }
  0xea   :  { %4213 = vrsqrt.f32 %v772_v22  ;;  %v5851_v58 = vpack.c.bf16 %v854_v14, %v850_v15  ;;  %v731_v41 = vsub.f32 %v4321_v59, %v5581_v44  ;;  %v735_v27 = vsub.f32 %v4322_v57, %v5611_v32  ;;  %2328 = vmatpush2.bf16.msra.mxu1 %v4058_v17  ;;  %2196 = vmatprep.subr.bf16.mxu0 %v4063_v33  ;;  %v4069_v44 = vld [vmem:[%s8052_s2 + $0x1bc] ss:$24 sps:$4 sm:$0xff]   ;;  %v4323_v33 = vld [vmem:[%s8050_s0 + $0x208] sm:$0xff]  ;;  %v4327_v15 = vld [vmem:[%s8050_s0 + $0x220] sm:$0xff] }
  0xeb   :  { %v5864_v42 = vpack.c.bf16 %v856_v2, %v852_v53  ;;  %v5866_v47 = vpack.c.bf16 %v853_v21, %v849_v51  ;;  %2329 = vmatprep.subr.bf16.mxu1 %v4066_v49  ;;  %v4072_v32 = vld [vmem:[%s8052_s2 + $0x4bc] ss:$24 sps:$4 sm:$0xff]   ;;  %v738_v0 = vsub.f32 %v4323_v33, %v5661_v5  ;;  %v740_v20 = vsub.f32 %v4325_v34, %v5661_v5  ;;  %v4070_v53 = vld [vmem:[%s8052_s2 + $0x4b8] ss:$24 sps:$4 sm:$0xff]   ;;  %v4328_v21 = vld [vmem:[%s8050_s0 + $0x200] sm:$0xff] }
  0xec   :  { %2006 = vmatprep.mubr.bf16.mxu0 %v5851_v58  ;;  %v851_v18 = vmul.f32 %v4204_v10, %v731_v41  ;;  %v855_v25 = vmul.f32 %v4206_v12, %v735_v27  ;;  %v742_v10 = vsub.f32 %v4324_v11, %v5690_v23  ;;  %2197 = vmatpush2.bf16.msra.mxu0 %v4061_v24  ;;  %v4067_v12 = vld [vmem:[%s8052_s2 + $0x1b8] ss:$24 sps:$4 sm:$0xff]   ;;  %v4075_v57 = vld [vmem:[%s8052_s2 + $0x18c] ss:$24 sps:$4 sm:$0xff]   ;;  %v4073_v34 = vld [vmem:[%s8052_s2 + $0x188] ss:$24 sps:$4 sm:$0xff]  }
  0xed   :  { %v4208_v17 = vpop.eup %4207  ;;  %2139 = vmatprep.mubr.bf16.mxu1 %v5864_v42  ;;  %v4326_v49 = vld [vmem:[%s8050_s0 + $0x238] sm:$0xff]  ;;  %v741_v14 = vsub.f32 %v4327_v15, %v5690_v23  ;;  %v737_v24 = vsub.f32 %v4328_v21, %v5661_v5  ;;  %v4329_v59 = vld [vmem:[%s8050_s0 + $0x230] sm:$0xff]  ;;  %2198 = vmatprep.subr.bf16.mxu0 %v4069_v44  ;;  %v4078_v27 = vld [vmem:[%s8052_s2 + $0x48c] ss:$24 sps:$4 sm:$0xff]  }
  0xee   :  { %v5887_v4 = vpack.c.bf16 %v855_v25, %v851_v18  ;;  %v744_v22 = vsub.f32 %v4326_v49, %v5690_v23  ;;  %2330 = vmatpush2.bf16.msra.mxu1 %v4064_v48  ;;  %v858_v51 = vmul.f32 %v4208_v17, %v738_v0  ;;  %v743_v41 = vsub.f32 %v4329_v59, %v5690_v23  ;;  %v4330_v23 = vld [vmem:[%s8050_s0 + $0x210] sm:$0xff]  ;;  %v4333_v21 = vld [vmem:[%s8050_s0 + $0x258] sm:$0xff] }
  0xef   :  { %v4210_v2 = vpop.eup %4209  ;;  %2007 = vmatmul.mubr.bf16.gmra.mxu0 %v5866_v47  ;;  %v860_v18 = vmul.f32 %v4208_v17, %v740_v20  ;;  %2331 = vmatprep.subr.bf16.mxu1 %v4072_v32  ;;  %v857_v0 = vmul.f32 %v4208_v17, %v737_v24  ;;  %v739_v44 = vsub.f32 %v4330_v23, %v5661_v5  ;;  %v4076_v32 = vld [vmem:[%s8052_s2 + $0x488] ss:$24 sps:$4 sm:$0xff]   ;;  %v4081_v5 = vld [vmem:[%s8052_s2 + $0x164] ss:$24 sps:$4 sm:$0xff]  }
  0xf0   :  { %v862_v48 = vmul.f32 %v4210_v2, %v742_v10  ;;  %v864_v25 = vmul.f32 %v4210_v2, %v744_v22  ;;  %v861_v33 = vmul.f32 %v4210_v2, %v741_v14  ;;  %v863_v11 = vmul.f32 %v4210_v2, %v743_v41  ;;  %2199 = vmatpush2.bf16.msra.mxu0 %v4067_v12  ;;  %v4084_v12 = vld [vmem:[%s8052_s2 + $0x464] ss:$24 sps:$4 sm:$0xff]   ;;  %v4332_v2 = vld [vmem:[%s8050_s0 + $0x268] sm:$0xff] }
  0xf1   :  { %2140 = vmatmul.mubr.bf16.gmra.mxu1 %v5887_v4  ;;  %v859_v22 = vmul.f32 %v4208_v17, %v739_v44  ;;  %2200 = vmatprep.subr.bf16.mxu0 %v4075_v57  ;;  %v4331_v17 = vld [vmem:[%s8050_s0 + $0x248] sm:$0xff]  ;;  %v748_v24 = vsub.f32 %v4333_v21, %v5727_v38  ;;  %v4334_v59 = vld [vmem:[%s8050_s0 + $0x278] sm:$0xff]  ;;  %v4335_v57 = vld [vmem:[%s8050_s0 + $0x260] sm:$0xff] }
  0xf2   :  { %v5927_v10 = vpack.c.bf16 %v862_v48, %v858_v51  ;;  %v5929_v20 = vpack.c.bf16 %v864_v25, %v860_v18  ;;  %2332 = vmatpush2.bf16.msra.mxu1 %v4070_v53  ;;  %v5934_v49 = vpack.c.bf16 %v861_v33, %v857_v0  ;;  %v746_v53 = vsub.f32 %v4331_v17, %v5727_v38  ;;  %v4336_v25 = vld [vmem:[%s8050_s0 + $0x240] sm:$0xff]  ;;  %v4337_v0 = vld [vmem:[%s8050_s0 + $0x270] sm:$0xff] }
  0xf3   :  { %2333 = vmatprep.subr.bf16.mxu1 %v4078_v27  ;;  %v5944_v14 = vpack.c.bf16 %v863_v11, %v859_v22  ;;  %v750_v51 = vsub.f32 %v4332_v2, %v5754_v26  ;;  %v752_v41 = vsub.f32 %v4334_v59, %v5754_v26  ;;  %v749_v27 = vsub.f32 %v4335_v57, %v5754_v26  ;;  %v4338_v17 = vld [vmem:[%s8050_s0 + $0x250] sm:$0xff]  ;;  %v4093_v57 = vld [vmem:[%s8052_s2 + $0x104] ss:$24 sps:$4 sm:$0xff]  }
  0xf4   :  { %2016 = vmatprep.mubr.bf16.mxu0 %v5927_v10  ;;  %2149 = vmatprep.mubr.bf16.mxu1 %v5929_v20  ;;  %v745_v33 = vsub.f32 %v4336_v25, %v5727_v38  ;;  %v751_v23 = vsub.f32 %v4337_v0, %v5754_v26  ;;  %v4099_v25 = vld [vmem:[%s8052_s2 + $0xd4] ss:$24 sps:$4 sm:$0xff]  }
  0xf5   :  { %v4212_v15 = vpop.eup %4211  ;;  %2201 = vmatpush2.bf16.msra.mxu0 %v4073_v34  ;;  %v4102_v0 = vld [vmem:[%s8052_s2 + $0x3d4] ss:$24 sps:$4 sm:$0xff]  }
  0xf6   :  { %2334 = vmatpush2.bf16.msra.mxu1 %v4076_v32  ;;  %v866_v18 = vmul.f32 %v4212_v15, %v746_v53  ;;  %2436 = vmatprep.subr.bf16.mxu0 %v4081_v5  ;;  %v868_v11 = vmul.f32 %v4212_v15, %v748_v24  ;;  %v865_v22 = vmul.f32 %v4212_v15, %v745_v33  ;;  %v4090_v24 = vld [vmem:[%s8052_s2 + $0x434] ss:$24 sps:$4 sm:$0xff]   ;;  %v4094_v33 = vld [vmem:[%s8052_s2 + $0x400] ss:$24 sps:$4 sm:$0xff]  }
  0xf7   :  { %v4214_v48 = vpop.eup %4213  ;;  %2017 = vmatmul.mubr.bf16.gmra.mxu0 %v5934_v49  ;;  %2569 = vmatprep.subr.bf16.mxu1 %v4084_v12  ;;  %v747_v53 = vsub.f32 %v4338_v17, %v5727_v38  ;;  %v4079_v38 = vld [vmem:[%s8052_s2 + $0x160] ss:$24 sps:$4 sm:$0xff]  }
  0xf8   :  { %v870_v44 = vmul.f32 %v4214_v48, %v750_v51  ;;  %v872_v34 = vmul.f32 %v4214_v48, %v752_v41  ;;  %v869_v32 = vmul.f32 %v4214_v48, %v749_v27  ;;  %v871_v2 = vmul.f32 %v4214_v48, %v751_v23  ;;  %v4082_v51 = vld [vmem:[%s8052_s2 + $0x460] ss:$24 sps:$4 sm:$0xff]   ;;  %v4085_v41 = vld [vmem:[%s8052_s2 + $0x130] ss:$24 sps:$4 sm:$0xff]   ;;  %v4096_v48 = vld [vmem:[%s8052_s2 + $0x404] ss:$24 sps:$4 sm:$0xff]  }
  0xf9   :  { %2150 = vmatmul.mubr.bf16.gmra.mxu1 %v5944_v14  ;;  %v867_v5 = vmul.f32 %v4212_v15, %v747_v53  ;;  %v4087_v15 = vld [vmem:[%s8052_s2 + $0x134] ss:$24 sps:$4 sm:$0xff]   ;;  %v4088_v27 = vld [vmem:[%s8052_s2 + $0x430] ss:$24 sps:$4 sm:$0xff]   ;;  %v4106_v17 = vld [vmem:[%s8052_s2 + $0x3a0] ss:$24 sps:$4 sm:$0xff]  }
  0xfa   :  { %v5980_v21 = vpack.c.bf16 %v870_v44, %v866_v18  ;;  %v5982_v59 = vpack.c.bf16 %v872_v34, %v868_v11  ;;  %v5984_v26 = vpack.c.bf16 %v869_v32, %v865_v22  ;;  %v4091_v18 = vld [vmem:[%s8052_s2 + $0x100] ss:$24 sps:$4 sm:$0xff]   ;;  %v4097_v23 = vld [vmem:[%s8052_s2 + $0xd0] ss:$24 sps:$4 sm:$0xff]   ;;  %v4105_v44 = vld [vmem:[%s8052_s2 + $0xa4] ss:$24 sps:$4 sm:$0xff]  }
  0xfb   :  { %v5988_v12 = vpack.c.bf16 %v871_v2, %v867_v5  ;;  %v4100_v11 = vld [vmem:[%s8052_s2 + $0x3d0] ss:$24 sps:$4 sm:$0xff]   ;;  %v4108_v34 = vld [vmem:[%s8052_s2 + $0x3a4] ss:$24 sps:$4 sm:$0xff]   ;;  %v4103_v32 = vld [vmem:[%s8052_s2 + $0xa0] ss:$24 sps:$4 sm:$0xff]  }
  0xfc   :  { %2026 = vmatprep.mubr.bf16.mxu0 %v5980_v21  ;;  %2159 = vmatprep.mubr.bf16.mxu1 %v5982_v59  ;;  %v4111_v22 = vld [vmem:[%s8052_s2 + $0x74] ss:$24 sps:$4 sm:$0xff]   ;;  %v4109_v2 = vld [vmem:[%s8052_s2 + $0x70] ss:$24 sps:$4 sm:$0xff]   ;;  %v4117_v5 = vld [vmem:[%s8052_s2 + $0x44] ss:$24 sps:$4 sm:$0xff]  }
  0xfd   :  { %v4114_v53 = vld [vmem:[%s8052_s2 + $0x374] ss:$24 sps:$4 sm:$0xff]  }
  0xff   :  { %2027 = vmatmul.mubr.bf16.gmra.mxu0 %v5984_v26 }
 0x100   :  { %2202 = vmatprep.mubr.bf16.mxu0 %v5298_v36 }
 0x101   :  { %2160 = vmatmul.mubr.bf16.gmra.mxu1 %v5988_v12 }
 0x102   :  { %2335 = vmatprep.mubr.bf16.mxu1 %v5300_v31 }
 0x107   :  { %2203 = vmatmul.mubr.bf16.vlgmr.msra.gmra.mxu0 %v5305_v39 }
 0x108   :  { %2437 = vmatpush1.bf16.msra.mxu0 %v4079_v38  ;;  %2212 = vmatprep.mubr.bf16.mxu0 %v5394_v61  ;;  %v4112_v38 = vld [vmem:[%s8052_s2 + $0x370] ss:$24 sps:$4 sm:$0xff]  }
 0x109   :  { %2336 = vmatmul.mubr.bf16.vlgmr.msra.gmra.mxu1 %v5307_v40  ;;  %2438 = vmatprep.subr.bf16.mxu0 %v4087_v15  ;;  %v4120_v15 = vld [vmem:[%s8052_s2 + $0x344] ss:$24 sps:$4 sm:$0xff]  }
 0x10a   :  { %2345 = vmatprep.mubr.bf16.mxu1 %v5396_v62  ;;  %2570 = vmatpush1.bf16.msra.mxu1 %v4082_v51  ;;  %v4115_v51 = vld [vmem:[%s8052_s2 + $0x40] ss:$24 sps:$4 sm:$0xff]  }
 0x10b   :  { %2571 = vmatprep.subr.bf16.mxu1 %v4090_v24  ;;  %v4123_v24 = vld [vmem:[%s8052_s2 + $0x14] ss:$24 sps:$4 sm:$0xff]  }
 0x10c   :  { %2439 = vmatpush1.bf16.msra.mxu0 %v4085_v41  ;;  %v4118_v41 = vld [vmem:[%s8052_s2 + $0x340] ss:$24 sps:$4 sm:$0xff]  }
 0x10d   :  { %2440 = vmatprep.subr.bf16.mxu0 %v4093_v57  ;;  %v4126_v57 = vld [vmem:[%s8052_s2 + $0x314] ss:$24 sps:$4 sm:$0xff]  }
 0x10e   :  { %2572 = vmatpush1.bf16.msra.mxu1 %v4088_v27  ;;  %v4121_v27 = vld [vmem:[%s8052_s2 + $0x10] ss:$24 sps:$4 sm:$0xff]  }
 0x10f   :  { %2213 = vmatmul.mubr.bf16.gmra.mxu0 %v5398_v63  ;;  %2573 = vmatprep.subr.bf16.mxu1 %v4096_v48  ;;  %v4129_v48 = vld [vmem:[%s8052_s2 + $0x2e4] ss:$24 sps:$4 sm:$0xff]  }
 0x110   :  { %2222 = vmatprep.mubr.bf16.mxu0 %v5483_v55  ;;  %2441 = vmatpush1.bf16.msra.mxu0 %v4091_v18  ;;  %v4124_v18 = vld [vmem:[%s8052_s2 + $0x310] ss:$24 sps:$4 sm:$0xff]  }
 0x111   :  { %2346 = vmatmul.mubr.bf16.gmra.mxu1 %v5408_v3  ;;  %2442 = vmatprep.subr.bf16.mxu0 %v4099_v25  ;;  %v4132_v25 = vld [vmem:[%s8052_s2 + $0x5e4] ss:$24 sps:$4 sm:$0xff]  }
 0x112   :  { %2355 = vmatprep.mubr.bf16.mxu1 %v5485_v19  ;;  %2574 = vmatpush1.bf16.msra.mxu1 %v4094_v33  ;;  %v4127_v33 = vld [vmem:[%s8052_s2 + $0x2e0] ss:$24 sps:$4 sm:$0xff]  }
 0x113   :  { %2575 = vmatprep.subr.bf16.mxu1 %v4102_v0  ;;  %v4135_v0 = vld [vmem:[%s8052_s2 + $0x2b4] ss:$24 sps:$4 sm:$0xff]  }
 0x114   :  { %2443 = vmatpush1.bf16.msra.mxu0 %v4097_v23  ;;  %v4130_v23 = vld [vmem:[%s8052_s2 + $0x5e0] ss:$24 sps:$4 sm:$0xff]  }
 0x115   :  { %2444 = vmatprep.subr.bf16.mxu0 %v4105_v44  ;;  %v4138_v44 = vld [vmem:[%s8052_s2 + $0x5b4] ss:$24 sps:$4 sm:$0xff]  }
 0x116   :  { %2576 = vmatpush1.bf16.msra.mxu1 %v4100_v11  ;;  %v4133_v11 = vld [vmem:[%s8052_s2 + $0x2b0] ss:$24 sps:$4 sm:$0xff]  }
 0x117   :  { %2223 = vmatmul.mubr.bf16.gmra.mxu0 %v5487_v52  ;;  %2577 = vmatprep.subr.bf16.mxu1 %v4108_v34  ;;  %v4141_v34 = vld [vmem:[%s8052_s2 + $0x284] ss:$24 sps:$4 sm:$0xff]  }
 0x118   :  { %2232 = vmatprep.mubr.bf16.mxu0 %v5572_v6  ;;  %2445 = vmatpush1.bf16.msra.mxu0 %v4103_v32  ;;  %v4136_v32 = vld [vmem:[%s8052_s2 + $0x5b0] ss:$24 sps:$4 sm:$0xff]  }
 0x119   :  { %2356 = vmatmul.mubr.bf16.gmra.mxu1 %v5497_v13  ;;  %2446 = vmatprep.subr.bf16.mxu0 %v4111_v22  ;;  %v4144_v22 = vld [vmem:[%s8052_s2 + $0x584] ss:$24 sps:$4 sm:$0xff]  }
 0x11a   :  { %2365 = vmatprep.mubr.bf16.mxu1 %v5574_v16  ;;  %2578 = vmatpush1.bf16.msra.mxu1 %v4106_v17  ;;  %v4139_v17 = vld [vmem:[%s8052_s2 + $0x280] ss:$24 sps:$4 sm:$0xff]  }
 0x11b   :  { %2579 = vmatprep.subr.bf16.mxu1 %v4114_v53  ;;  %v4147_v53 = vld [vmem:[%s8052_s2 + $0x254] ss:$24 sps:$4 sm:$0xff]  }
 0x11c   :  { %2447 = vmatpush1.bf16.msra.mxu0 %v4109_v2  ;;  %v4142_v2 = vld [vmem:[%s8052_s2 + $0x580] ss:$24 sps:$4 sm:$0xff]  }
 0x11d   :  { %2448 = vmatprep.subr.bf16.mxu0 %v4117_v5  ;;  %v4150_v5 = vld [vmem:[%s8052_s2 + $0x554] ss:$24 sps:$4 sm:$0xff]  }
 0x11e   :  { %2580 = vmatpush1.bf16.msra.mxu1 %v4112_v38  ;;  %v4145_v38 = vld [vmem:[%s8052_s2 + $0x250] ss:$24 sps:$4 sm:$0xff]  }
 0x11f   :  { %2233 = vmatmul.mubr.bf16.gmra.mxu0 %v5576_v45  ;;  %2581 = vmatprep.subr.bf16.mxu1 %v4120_v15  ;;  %v4153_v15 = vld [vmem:[%s8052_s2 + $0x224] ss:$24 sps:$4 sm:$0xff]  }
 0x120   :  { %2242 = vmatprep.mubr.bf16.mxu0 %v5650_v29  ;;  %2449 = vmatpush1.bf16.msra.mxu0 %v4115_v51  ;;  %v4148_v51 = vld [vmem:[%s8052_s2 + $0x550] ss:$24 sps:$4 sm:$0xff]  }
 0x121   :  { %2366 = vmatmul.mubr.bf16.gmra.mxu1 %v5583_v9  ;;  %2450 = vmatprep.subr.bf16.mxu0 %v4123_v24  ;;  %v4156_v24 = vld [vmem:[%s8052_s2 + $0x524] ss:$24 sps:$4 sm:$0xff]  }
 0x122   :  { %2375 = vmatprep.mubr.bf16.mxu1 %v5652_v54  ;;  %2582 = vmatpush1.bf16.msra.mxu1 %v4118_v41  ;;  %v4151_v41 = vld [vmem:[%s8052_s2 + $0x220] ss:$24 sps:$4 sm:$0xff]  }
 0x123   :  { %2583 = vmatprep.subr.bf16.mxu1 %v4126_v57  ;;  %v4159_v57 = vld [vmem:[%s8052_s2 + $0x1f4] ss:$24 sps:$4 sm:$0xff]  }
 0x124   :  { %2451 = vmatpush1.bf16.msra.mxu0 %v4121_v27  ;;  %v4154_v27 = vld [vmem:[%s8052_s2 + $0x520] ss:$24 sps:$4 sm:$0xff]  }
 0x125   :  { %2452 = vmatprep.subr.bf16.mxu0 %v4129_v48  ;;  %v4162_v48 = vld [vmem:[%s8052_s2 + $0x4f4] ss:$24 sps:$4 sm:$0xff]  }
 0x126   :  { %2584 = vmatpush1.bf16.msra.mxu1 %v4124_v18  ;;  %v4157_v18 = vld [vmem:[%s8052_s2 + $0x1f0] ss:$24 sps:$4 sm:$0xff]  }
 0x127   :  { %2243 = vmatmul.mubr.bf16.gmra.mxu0 %v5654_v56  ;;  %2585 = vmatprep.subr.bf16.mxu1 %v4132_v25  ;;  %v4165_v25 = vld [vmem:[%s8052_s2 + $0x1c4] ss:$24 sps:$4 sm:$0xff]  }
 0x128   :  { %2252 = vmatprep.mubr.bf16.mxu0 %v5721_v30  ;;  %2453 = vmatpush2.bf16.msra.mxu0 %v4127_v33  ;;  %v4160_v33 = vld [vmem:[%s8052_s2 + $0x4f0] ss:$24 sps:$4 sm:$0xff]  }
 0x129   :  { %2376 = vmatmul.mubr.bf16.gmra.mxu1 %v5656_v60  ;;  %2454 = vmatprep.subr.bf16.mxu0 %v4135_v0  ;;  %v4168_v0 = vld [vmem:[%s8052_s2 + $0x4c4] ss:$24 sps:$4 sm:$0xff]  }
 0x12a   :  { %2385 = vmatprep.mubr.bf16.mxu1 %v5723_v7  ;;  %2586 = vmatpush2.bf16.msra.mxu1 %v4130_v23  ;;  %v4163_v23 = vld [vmem:[%s8052_s2 + $0x1c0] ss:$24 sps:$4 sm:$0xff]  }
 0x12b   :  { %2587 = vmatprep.subr.bf16.mxu1 %v4138_v44  ;;  %v4171_v44 = vld [vmem:[%s8052_s2 + $0x194] ss:$24 sps:$4 sm:$0xff]  }
 0x12c   :  { %2455 = vmatpush2.bf16.msra.mxu0 %v4133_v11  ;;  %v4166_v11 = vld [vmem:[%s8052_s2 + $0x4c0] ss:$24 sps:$4 sm:$0xff]  }
 0x12d   :  { %2456 = vmatprep.subr.bf16.mxu0 %v4141_v34  ;;  %v4174_v34 = vld [vmem:[%s8052_s2 + $0x494] ss:$24 sps:$4 sm:$0xff]  }
 0x12e   :  { %2588 = vmatpush2.bf16.msra.mxu1 %v4136_v32  ;;  %v4169_v32 = vld [vmem:[%s8052_s2 + $0x190] ss:$24 sps:$4 sm:$0xff]  }
 0x12f   :  { %2253 = vmatmul.mubr.bf16.gmra.mxu0 %v5725_v8  ;;  %2589 = vmatprep.subr.bf16.mxu1 %v4144_v22  ;;  %v4172_v22 = vld [vmem:[%s8052_s2 + $0x490] ss:$24 sps:$4 sm:$0xff]  }
 0x130   :  { %2262 = vmatprep.mubr.bf16.mxu0 %v5793_v46  ;;  %2457 = vmatpush2.bf16.msra.mxu0 %v4139_v17  ;;  %v4339_v17 = vld [vmem:[%s8052_s2 + $0x154] ss:$24 sps:$4 sm:$0xff]  }
 0x131   :  { %2386 = vmatmul.mubr.bf16.gmra.mxu1 %v5741_v43  ;;  %2458 = vmatprep.subr.bf16.mxu0 %v4147_v53  ;;  %v4340_v53 = vld [vmem:[%s8052_s2 + $0x454] ss:$24 sps:$4 sm:$0xff]  }
 0x132   :  { %2395 = vmatprep.mubr.bf16.mxu1 %v5795_v50  ;;  %2590 = vmatpush2.bf16.msra.mxu1 %v4142_v2  ;;  %v4341_v2 = vld [vmem:[%s8052_s2 + $0x150] ss:$24 sps:$4 sm:$0xff]  }
 0x133   :  { %2591 = vmatprep.subr.bf16.mxu1 %v4150_v5  ;;  %v4342_v5 = vld [vmem:[%s8052_s2 + $0x124] ss:$24 sps:$4 sm:$0xff]  }
 0x134   :  { %2459 = vmatpush2.bf16.msra.mxu0 %v4145_v38  ;;  %v4349_v38 = vld [vmem:[%s8052_s2 + $0xf0] ss:$24 sps:$4 sm:$0xff]  }
 0x135   :  { %2460 = vmatprep.subr.bf16.mxu0 %v4153_v15  ;;  %v4350_v15 = vld [vmem:[%s8052_s2 + $0xc4] ss:$24 sps:$4 sm:$0xff]  }
 0x136   :  { %2592 = vmatpush2.bf16.msra.mxu1 %v4148_v51  ;;  %v4354_v51 = vld [vmem:[%s8052_s2 + $0x94] ss:$24 sps:$4 sm:$0xff]  }
 0x137   :  { %2263 = vmatmul.mubr.bf16.gmra.mxu0 %v5809_v1  ;;  %2593 = vmatprep.subr.bf16.mxu1 %v4156_v24  ;;  %v4355_v24 = vld [vmem:[%s8052_s2 + $0x3c0] ss:$24 sps:$4 sm:$0xff]  }
 0x138   :  { %2272 = vmatprep.mubr.bf16.mxu0 %v5851_v58  ;;  %2461 = vmatpush2.bf16.msra.mxu0 %v4151_v41  ;;  %v4356_v41 = vld [vmem:[%s8052_s2 + $0x394] ss:$24 sps:$4 sm:$0xff]  }
 0x139   :  { %2396 = vmatmul.mubr.bf16.gmra.mxu1 %v5830_v37  ;;  %2462 = vmatprep.subr.bf16.mxu0 %v4159_v57  ;;  %v4357_v57 = vld [vmem:[%s8052_s2 + $0x90] ss:$24 sps:$4 sm:$0xff]  }
 0x13a   :  { %2405 = vmatprep.mubr.bf16.mxu1 %v5864_v42  ;;  %2594 = vmatpush2.bf16.msra.mxu1 %v4154_v27 }
 0x13b   :  { %2595 = vmatprep.subr.bf16.mxu1 %v4162_v48  ;;  %v3310_v48 = vpop.xlane.xlu1 %3309 }
 0x13c   :  { %2463 = vmatpush2.bf16.msra.mxu0 %v4157_v18  ;;  %v4360_v18 = vld [vmem:[%s8052_s2 + $0x364] ss:$24 sps:$4 sm:$0xff]  }
 0x13d   :  { %2464 = vmatprep.subr.bf16.mxu0 %v4165_v25  ;;  %v4361_v25 = vld [vmem:[%s8052_s2 + $0x60] ss:$24 sps:$4 sm:$0xff]  }
 0x13e   :  { %2596 = vmatpush2.bf16.msra.mxu1 %v4160_v33  ;;  %v3312_v33 = vmul.f32 0.001953125, %v3310_v48 }
 0x13f   :  { %2273 = vmatmul.mubr.bf16.gmra.mxu0 %v5866_v47  ;;  %2597 = vmatprep.subr.bf16.mxu1 %v4168_v0  ;;  %v4363_v0 = vld [vmem:[%s8052_s2 + $0x360] ss:$24 sps:$4 sm:$0xff]  }
 0x140   :  { %2282 = vmatprep.mubr.bf16.mxu0 %v5927_v10  ;;  %2465 = vmatpush2.bf16.msra.mxu0 %v4163_v23  ;;  %v4364_v23 = vld [vmem:[%s8052_s2 + $0x334] ss:$24 sps:$4 sm:$0xff]  }
 0x141   :  { %2406 = vmatmul.mubr.bf16.gmra.mxu1 %v5887_v4  ;;  %2466 = vmatprep.subr.bf16.mxu0 %v4171_v44  ;;  %v916_v44 = vsub.s32 0, %v5029_v28 }
 0x142   :  { %2415 = vmatprep.mubr.bf16.mxu1 %v5929_v20  ;;  %2598 = vmatpush2.bf16.msra.mxu1 %v4166_v11 }
 0x143   :  { %2599 = vmatprep.subr.bf16.mxu1 %v4174_v34  ;;  %v4365_v34 = vld [vmem:[%s8052_s2 + $0x30] ss:$24 sps:$4 sm:$0xff]  }
 0x144   :  { %2467 = vmatpush2.bf16.msra.mxu0 %v4169_v32  ;;  %v6323_v32 = vld [vmem:[%s8053_s3] sm:$0x3f] }
 0x145   :  { %3364 = vmatprep.subr.bf16.mxu0 %v4339_v17  ;;  %v6335_v17 = vrot.slane %v6323_v32, %v916_v44 }
 0x146   :  { %2600 = vmatpush2.bf16.msra.mxu1 %v4172_v22  ;;  %v4366_v22 = vld [vmem:[%s8052_s2 + $0x4] ss:$24 sps:$4 sm:$0xff]  }
 0x147   :  { %2283 = vmatmul.mubr.bf16.gmra.mxu0 %v5934_v49  ;;  %3405 = vmatprep.subr.bf16.mxu1 %v4340_v53  ;;  %8159 = vst [vmem:[#allocation6_spill] sm:$0xff] %v6335_v17 }
 0x148   :  { %2292 = vmatprep.mubr.bf16.mxu0 %v5980_v21 }
 0x149   :  { %2416 = vmatmul.mubr.bf16.gmra.mxu1 %v5944_v14 }
 0x14a   :  { %2425 = vmatprep.mubr.bf16.mxu1 %v5982_v59 }
 0x14f   :  { %2293 = vmatmul.mubr.bf16.gmra.mxu0 %v5984_v26 }
 0x150   :  { %2468 = vmatprep.mubr.bf16.mxu0 %v5298_v36  ;;  %v4344_v36 = vld [vmem:[%s8052_s2 + $0x424] ss:$24 sps:$4 sm:$0xff]  }
 0x151   :  { %2426 = vmatmul.mubr.bf16.gmra.mxu1 %v5988_v12 }
 0x152   :  { %2601 = vmatprep.mubr.bf16.mxu1 %v5300_v31  ;;  %v4343_v31 = vld [vmem:[%s8052_s2 + $0x450] ss:$24 sps:$4 sm:$0xff]  }
 0x157   :  { %2469 = vmatmul.mubr.bf16.vlgmr.msra.gmra.mxu0 %v5305_v39  ;;  %v4345_v39 = vld [vmem:[%s8052_s2 + $0x120] ss:$24 sps:$4 sm:$0xff]  }
 0x158   :  { %3365 = vmatpush1.bf16.msra.mxu0 %v4341_v2  ;;  %2478 = vmatprep.mubr.bf16.mxu0 %v5394_v61  ;;  %v4347_v61 = vld [vmem:[%s8052_s2 + $0x420] ss:$24 sps:$4 sm:$0xff]  }
 0x159   :  { %2602 = vmatmul.mubr.bf16.vlgmr.msra.gmra.mxu1 %v5307_v40  ;;  %3366 = vmatprep.subr.bf16.mxu0 %v4342_v5  ;;  %v4346_v40 = vld [vmem:[%s8052_s2 + $0xf4] ss:$24 sps:$4 sm:$0xff]   ;;  %v4369_v2 = vld [vmem:[%s8052_s2] ss:$24 sps:$4 sm:$0xff]  }
 0x15a   :  { %2611 = vmatprep.mubr.bf16.mxu1 %v5396_v62  ;;  %3406 = vmatpush1.bf16.msra.mxu1 %v4343_v31  ;;  %v4348_v62 = vld [vmem:[%s8052_s2 + $0x3f4] ss:$24 sps:$4 sm:$0xff]  }
 0x15b   :  { %3407 = vmatprep.subr.bf16.mxu1 %v4344_v36  ;;  %v4370_v5 = vld [vmem:[%s8052_s2 + $0x2d4] ss:$24 sps:$4 sm:$0xff]  }
 0x15c   :  { %3367 = vmatpush1.bf16.msra.mxu0 %v4345_v39  ;;  %v4371_v39 = vld [vmem:[%s8052_s2 + $0x300] ss:$24 sps:$4 sm:$0xff]  }
 0x15d   :  { %3368 = vmatprep.subr.bf16.mxu0 %v4346_v40 }
 0x15e   :  { %3408 = vmatpush1.bf16.msra.mxu1 %v4347_v61  ;;  %v4372_v61 = vld [vmem:[%s8052_s2 + $0x5d4] ss:$24 sps:$4 sm:$0xff]  }
 0x15f   :  { %2479 = vmatmul.mubr.bf16.gmra.mxu0 %v5398_v63  ;;  %3409 = vmatprep.subr.bf16.mxu1 %v4348_v62  ;;  %v4351_v63 = vld [vmem:[%s8052_s2 + $0x3f0] ss:$24 sps:$4 sm:$0xff]  }
 0x160   :  { %2488 = vmatprep.mubr.bf16.mxu0 %v5483_v55  ;;  %3369 = vmatpush1.bf16.msra.mxu0 %v4349_v38  ;;  %v4352_v55 = vld [vmem:[%s8052_s2 + $0x3c4] ss:$24 sps:$4 sm:$0xff]  }
 0x161   :  { %2612 = vmatmul.mubr.bf16.gmra.mxu1 %v5408_v3  ;;  %3370 = vmatprep.subr.bf16.mxu0 %v4350_v15  ;;  %v4353_v3 = vld [vmem:[%s8052_s2 + $0xc0] ss:$24 sps:$4 sm:$0xff]  }
 0x162   :  { %2621 = vmatprep.mubr.bf16.mxu1 %v5485_v19  ;;  %3410 = vmatpush1.bf16.msra.mxu1 %v4351_v63  ;;  %v3278_v19 = vpop.xlane.xlu0 %3277  ;;  %v4373_v63 = vld [vmem:[%s8052_s2 + $0x2d0] ss:$24 sps:$4 sm:$0xff]  }
 0x163   :  { %3411 = vmatprep.subr.bf16.mxu1 %v4352_v55  ;;  %v6287_v27 = vmul.f32 0.001953125, %v3278_v19  ;;  %v4375_v19 = vld [vmem:[%s8052_s2 + $0x5d0] ss:$24 sps:$4 sm:$0xff]  }
 0x164   :  { %3371 = vmatpush1.bf16.msra.mxu0 %v4353_v3  ;;  %v4374_v3 = vld [vmem:[%s8052_s2 + $0x2a4] ss:$24 sps:$4 sm:$0xff]  }
 0x165   :  { %3372 = vmatprep.subr.bf16.mxu0 %v4354_v51 }
 0x166   :  { %3412 = vmatpush1.bf16.msra.mxu1 %v4355_v24 }
 0x167   :  { %2489 = vmatmul.mubr.bf16.gmra.mxu0 %v5487_v52  ;;  %3413 = vmatprep.subr.bf16.mxu1 %v4356_v41  ;;  %v4358_v52 = vld [vmem:[%s8052_s2 + $0x64] ss:$24 sps:$4 sm:$0xff]  }
 0x168   :  { %2498 = vmatprep.mubr.bf16.mxu0 %v5572_v6  ;;  %3373 = vmatpush1.bf16.msra.mxu0 %v4357_v57  ;;  %v4359_v6 = vld [vmem:[%s8052_s2 + $0x390] ss:$24 sps:$4 sm:$0xff]   ;;  %v4376_v41 = vld [vmem:[%s8052_s2 + $0x5a4] ss:$24 sps:$4 sm:$0xff]   ;;  %v4556_v57 = vmov 269488144  }
 0x169   :  { %2622 = vmatmul.mubr.bf16.gmra.mxu1 %v5497_v13  ;;  %3374 = vmatprep.subr.bf16.mxu0 %v4358_v52  ;;  %v3313_v13 = vmul.f32 %v6287_v27, %v6287_v27  ;;  %v3318_v52 = vunpack.c.l.s4 %v4556_v57  ;;  %v4388_v57 = vld [vmem:[%s8052_s2 + $0x210] ss:$24 sps:$4 sm:$0xff]  }
 0x16a   :  { %2631 = vmatprep.mubr.bf16.mxu1 %v5574_v16  ;;  %3414 = vmatpush1.bf16.msra.mxu1 %v4359_v6  ;;  %v4362_v16 = vld [vmem:[%s8052_s2 + $0x34] ss:$24 sps:$4 sm:$0xff]   ;;  %v4377_v6 = vld [vmem:[%s8052_s2 + $0x2a0] ss:$24 sps:$4 sm:$0xff]  }
 0x16b   :  { %3415 = vmatprep.subr.bf16.mxu1 %v4360_v18  ;;  %v3314_v11 = vsub.f32 %v3312_v33, %v3313_v13 }
 0x16c   :  { %3375 = vmatpush1.bf16.msra.mxu0 %v4361_v25  ;;  %v4378_v25 = vld [vmem:[%s8052_s2 + $0x274] ss:$24 sps:$4 sm:$0xff]  }
 0x16d   :  { %3376 = vmatprep.subr.bf16.mxu0 %v4362_v16  ;;  %v3315_v53 = vmax.f32 %v3314_v11, 0.0  ;;  %v3319_v11 = vunpack.c.0.s8 %v3318_v52 }
 0x16e   :  { %3416 = vmatpush1.bf16.msra.mxu1 %v4363_v0  ;;  %v4379_v0 = vld [vmem:[%s8052_s2 + $0x5a0] ss:$24 sps:$4 sm:$0xff]  }
 0x16f   :  { %2499 = vmatmul.mubr.bf16.gmra.mxu0 %v5576_v45  ;;  %3417 = vmatprep.subr.bf16.mxu1 %v4364_v23  ;;  %v920_v45 = vsub.s32 1, %v5029_v28  ;;  %v3326_v62 = vadd.f32 1e-05, %v3315_v53 }
 0x170   :  { %2508 = vmatprep.mubr.bf16.mxu0 %v5650_v29  ;;  %3377 = vmatpush1.bf16.msra.mxu0 %v4365_v34  ;;  %v4367_v29 = vld [vmem:[%s8052_s2 + $0x330] ss:$24 sps:$4 sm:$0xff]  }
 0x171   :  { %2632 = vmatmul.mubr.bf16.gmra.mxu1 %v5583_v9  ;;  %3378 = vmatprep.subr.bf16.mxu0 %v4366_v22  ;;  %v4368_v9 = vld [vmem:[%s8052_s2 + $0x304] ss:$24 sps:$4 sm:$0xff]   ;;  %4215 = vrsqrt.f32 %v3326_v62  ;;  %v4380_v22 = vld [vmem:[%s8052_s2 + $0x270] ss:$24 sps:$4 sm:$0xff]  }
 0x172   :  { %2641 = vmatprep.mubr.bf16.mxu1 %v5652_v54  ;;  %3418 = vmatpush1.bf16.msra.mxu1 %v4367_v29  ;;  %v6344_v54 = vrot.slane %v6323_v32, %v920_v45 }
 0x173   :  { %3419 = vmatprep.subr.bf16.mxu1 %v4368_v9  ;;  %v1938_v31 = vpop.f32.mrf.mxu0 }
 0x174   :  { %3379 = vmatpush1.bf16.msra.mxu0 %v4369_v2  ;;  %v2071_v36 = vpop.f32.mrf.mxu1  ;;  %v1939_v40 = vadd.f32 %v1938_v31, %v6335_v17  ;;  %v4382_v2 = vld [vmem:[%s8052_s2 + $0x570] ss:$24 sps:$4 sm:$0xff]   ;;  %v4383_v31 = vld [vmem:[%s8052_s2 + $0x244] ss:$24 sps:$4 sm:$0xff]  }
 0x175   :  { %3380 = vmatprep.subr.bf16.mxu0 %v4370_v5  ;;  %v1940_v38 = vpop.f32.mrf.mxu0 }
 0x176   :  { %3420 = vmatpush1.bf16.msra.mxu1 %v4371_v39  ;;  %v2073_v15 = vpop.f32.mrf.mxu1  ;;  %v6361_v55 = vadd.f32 %v2071_v36, %v1939_v40  ;;  %v6416_v36 = vsub.s32 %v3319_v11, %v5029_v28  ;;  %v4384_v40 = vld [vmem:[%s8052_s2 + $0x240] ss:$24 sps:$4 sm:$0xff]   ;;  %v4394_v11 = vld [vmem:[%s8052_s2 + $0x4e4] ss:$24 sps:$4 sm:$0xff]  }
 0x177   :  { %2509 = vmatmul.mubr.bf16.gmra.mxu0 %v5654_v56  ;;  %3421 = vmatprep.subr.bf16.mxu1 %v4372_v61  ;;  %v1941_v56 = vadd.f32 %v1940_v38, %v6344_v54  ;;  %v4385_v61 = vld [vmem:[%s8052_s2 + $0x544] ss:$24 sps:$4 sm:$0xff]  }
 0x178   :  { %2518 = vmatprep.mubr.bf16.mxu0 %v5721_v30  ;;  %3381 = vmatpush2.bf16.msra.mxu0 %v4373_v63  ;;  %8160 = vst [vmem:[#allocation7_spill] sm:$0xff] %v6361_v55  ;;  %v1942_v30 = vpop.f32.mrf.mxu0  ;;  %v2075_v51 = vpop.f32.mrf.mxu1 }
 0x179   :  { %2642 = vmatmul.mubr.bf16.gmra.mxu1 %v5656_v60  ;;  %3382 = vmatprep.subr.bf16.mxu0 %v4374_v3  ;;  %v6372_v24 = vadd.f32 %v2073_v15, %v1941_v56  ;;  %v1943_v60 = vadd.f32 %v1942_v30, %v6335_v17  ;;  %v4386_v15 = vld [vmem:[%s8052_s2 + $0x214] ss:$24 sps:$4 sm:$0xff]   ;;  %v4387_v3 = vld [vmem:[%s8052_s2 + $0x540] ss:$24 sps:$4 sm:$0xff]  }
 0x17a   :  { %2651 = vmatprep.mubr.bf16.mxu1 %v5723_v7  ;;  %3422 = vmatpush2.bf16.msra.mxu1 %v4375_v19  ;;  %v1944_v7 = vpop.f32.mrf.mxu0  ;;  %v2077_v48 = vpop.f32.mrf.mxu1  ;;  %v3323_v19 = vrot.slane %v6287_v27, %v6416_v36 }
 0x17b   :  { %8161 = vst [vmem:[#allocation8_spill] sm:$0xff] %v6372_v24  ;;  %3423 = vmatprep.subr.bf16.mxu1 %v4376_v41  ;;  %v6381_v18 = vadd.f32 %v2075_v51, %v1943_v60  ;;  %v1945_v13 = vadd.f32 %v1944_v7, %v6344_v54 }
 0x17c   :  { %3383 = vmatpush2.bf16.msra.mxu0 %v4377_v6  ;;  %v1948_v33 = vpop.f32.mrf.mxu0  ;;  %v2081_v16 = vpop.f32.mrf.mxu1  ;;  %v4390_v6 = vld [vmem:[%s8052_s2 + $0x510] ss:$24 sps:$4 sm:$0xff]  }
 0x17d   :  { %3384 = vmatprep.subr.bf16.mxu0 %v4378_v25  ;;  %v6390_v23 = vadd.f32 %v2077_v48, %v1945_v13  ;;  %v1949_v44 = vadd.f32 %v1948_v33, %v6335_v17  ;;  %v4391_v25 = vld [vmem:[%s8052_s2 + $0x1e4] ss:$24 sps:$4 sm:$0xff]  }
 0x17e   :  { %3424 = vmatpush2.bf16.msra.mxu1 %v4379_v0  ;;  %v1950_v34 = vpop.f32.mrf.mxu0  ;;  %v2083_v45 = vpop.f32.mrf.mxu1 }
 0x17f   :  { %2519 = vmatmul.mubr.bf16.gmra.mxu0 %v5725_v8  ;;  %v6398_v29 = vadd.f32 %v2081_v16, %v1949_v44  ;;  %v1951_v9 = vadd.f32 %v1950_v34, %v6344_v54  ;;  %v4381_v8 = vld [vmem:[%s8052_s2 + $0x574] ss:$24 sps:$4 sm:$0xff]   ;;  %v4216_v52 = vpop.eup %4215  ;;  %v4393_v44 = vld [vmem:[%s8052_s2 + $0x1e0] ss:$24 sps:$4 sm:$0xff]  }
 0x180   :  { %2528 = vmatprep.mubr.bf16.mxu0 %v5793_v46  ;;  %3385 = vmatpush2.bf16.msra.mxu0 %v4380_v22  ;;  %v1952_v46 = vpop.f32.mrf.mxu0  ;;  %v2085_v53 = vpop.f32.mrf.mxu1  ;;  %v3335_v34 = vrot.slane %v4216_v52, %v6416_v36 }
 0x181   :  { %8162 = vst [vmem:[#allocation9_spill] sm:$0xff] %v6398_v29  ;;  %2652 = vmatmul.mubr.bf16.gmra.mxu1 %v5741_v43  ;;  %3425 = vmatprep.subr.bf16.mxu1 %v4381_v8  ;;  %v6409_v5 = vadd.f32 %v2083_v45, %v1951_v9  ;;  %v1953_v43 = vadd.f32 %v1952_v46, %v6335_v17  ;;  %v4395_v9 = vld [vmem:[%s8052_s2 + $0x1b4] ss:$24 sps:$4 sm:$0xff]  }
 0x182   :  { %2661 = vmatprep.mubr.bf16.mxu1 %v5795_v50  ;;  %3426 = vmatpush2.bf16.msra.mxu1 %v4382_v2  ;;  %v1954_v50 = vpop.f32.mrf.mxu0  ;;  %v2087_v39 = vpop.f32.mrf.mxu1 }
 0x183   :  { %8163 = vst [vmem:[#allocation10_spill] sm:$0xff] %v6409_v5  ;;  %3386 = vmatprep.subr.bf16.mxu0 %v4383_v31  ;;  %3427 = vmatprep.subr.bf16.mxu1 %v4385_v61  ;;  %v6424_v62 = vadd.f32 %v2085_v53, %v1953_v43  ;;  %v1955_v38 = vadd.f32 %v1954_v50, %v6344_v54  ;;  %v4396_v53 = vld [vmem:[%s8052_s2 + $0x4e0] ss:$24 sps:$4 sm:$0xff]   ;;  %v4397_v50 = vld [vmem:[%s8052_s2 + $0x1b0] ss:$24 sps:$4 sm:$0xff]  }
 0x184   :  { %3387 = vmatpush2.bf16.msra.mxu0 %v4384_v40 }
 0x185   :  { %8164 = vst [vmem:[#allocation11_spill] sm:$0xff] %v6424_v62  ;;  %3388 = vmatprep.subr.bf16.mxu0 %v4386_v15  ;;  %v6433_v30 = vadd.f32 %v2087_v39, %v1955_v38  ;;  %v4399_v15 = vld [vmem:[%s8052_s2 + $0x4b0] ss:$24 sps:$4 sm:$0xff]  }
 0x186   :  { %v1958_v63 = vpop.f32.mrf.mxu0  ;;  %3428 = vmatpush2.bf16.msra.mxu1 %v4387_v3 }
 0x187   :  { %v2091_v56 = vpop.f32.mrf.mxu1  ;;  %8165 = vst [vmem:[#allocation12_spill] sm:$0xff] %v6433_v30  ;;  %v1959_v51 = vadd.f32 %v1958_v63, %v6335_v17  ;;  %2529 = vmatmul.mubr.bf16.gmra.mxu0 %v5809_v1  ;;  %v4389_v1 = vld [vmem:[%s8052_s2 + $0x514] ss:$24 sps:$4 sm:$0xff]  }
 0x188   :  { %2538 = vmatprep.mubr.bf16.mxu0 %v5851_v58  ;;  %v1960_v60 = vpop.f32.mrf.mxu0  ;;  %3389 = vmatpush2.bf16.msra.mxu0 %v4388_v57  ;;  %v4403_v57 = vld [vmem:[%s8052_s2 + $0x15c] ss:$24 sps:$4 sm:$0xff]  }
 0x189   :  { %v2093_v41 = vpop.f32.mrf.mxu1  ;;  %v6443_v7 = vadd.f32 %v2091_v56, %v1959_v51  ;;  %2662 = vmatmul.mubr.bf16.gmra.mxu1 %v5830_v37  ;;  %v1961_v48 = vadd.f32 %v1960_v60, %v6344_v54  ;;  %3429 = vmatprep.subr.bf16.mxu1 %v4389_v1  ;;  %v4400_v56 = vld [vmem:[%s8052_s2 + $0x184] ss:$24 sps:$4 sm:$0xff]  }
 0x18a   :  { %2671 = vmatprep.mubr.bf16.mxu1 %v5864_v42  ;;  %v1962_v58 = vpop.f32.mrf.mxu0  ;;  %3430 = vmatpush2.bf16.msra.mxu1 %v4390_v6  ;;  %v4392_v42 = vld [vmem:[%s8051_s1] sm:$0xff] }
 0x18b   :  { %v2095_v27 = vpop.f32.mrf.mxu1  ;;  %v6454_v13 = vadd.f32 %v2093_v41, %v1961_v48  ;;  %v1963_v37 = vadd.f32 %v1962_v58, %v6335_v17  ;;  %3390 = vmatprep.subr.bf16.mxu0 %v4391_v25  ;;  %v3325_v33 = vsub.f32 %v4392_v42, %v3323_v19  ;;  %3431 = vmatprep.subr.bf16.mxu1 %v4394_v11  ;;  %v4401_v19 = vld [vmem:[%s8052_s2 + $0x180] ss:$24 sps:$4 sm:$0xff]   ;;  %v4402_v60 = vld [vmem:[%s8052_s2 + $0x484] ss:$24 sps:$4 sm:$0xff]  }
 0x18c   :  { %v1964_v16 = vpop.f32.mrf.mxu0  ;;  %3391 = vmatpush2.bf16.msra.mxu0 %v4393_v44  ;;  %v4404_v58 = vld [vmem:[%s8052_s2 + $0x480] ss:$24 sps:$4 sm:$0xff]   ;;  %v4405_v42 = vld [vmem:[%s8052_s2 + $0x45c] ss:$24 sps:$4 sm:$0xff]  }
 0x18d   :  { %8166 = vst [vmem:[#allocation13_spill] sm:$0xff] %v6454_v13  ;;  %v2097_v0 = vpop.f32.mrf.mxu1  ;;  %v6470_v45 = vadd.f32 %v2095_v27, %v1963_v37  ;;  %v1965_v22 = vadd.f32 %v1964_v16, %v6344_v54  ;;  %3392 = vmatprep.subr.bf16.mxu0 %v4395_v9  ;;  %v3337_v39 = vmul.f32 %v3335_v34, %v3325_v33 }
 0x18e   :  { %3432 = vmatpush2.bf16.msra.mxu1 %v4396_v53 }
 0x18f   :  { %8167 = vst [vmem:[#allocation14_spill] sm:$0xff] %v6470_v45  ;;  %v1968_v8 = vpop.f32.mrf.mxu0  ;;  %v6479_v2 = vadd.f32 %v2097_v0, %v1965_v22  ;;  %2539 = vmatmul.mubr.bf16.gmra.mxu0 %v5866_v47  ;;  %v4398_v47 = vld [vmem:[%s8052_s2 + $0x4b4] ss:$24 sps:$4 sm:$0xff]   ;;  %v3346_v1 = vrot.slane %v3337_v39, %v5032_v35 }
 0x190   :  { %v2101_v46 = vpop.f32.mrf.mxu1  ;;  %v1969_v43 = vadd.f32 %v1968_v8, %v6335_v17  ;;  %2548 = vmatprep.mubr.bf16.mxu0 %v5927_v10  ;;  %3393 = vmatpush2.bf16.msra.mxu0 %v4397_v50 }
 0x191   :  { %8168 = vst [vmem:[#allocation15_spill] sm:$0xff] %v6479_v2  ;;  %v1970_v31 = vpop.f32.mrf.mxu0  ;;  %2672 = vmatmul.mubr.bf16.gmra.mxu1 %v5887_v4  ;;  %3433 = vmatprep.subr.bf16.mxu1 %v4398_v47 }
 0x192   :  { %v2103_v36 = vpop.f32.mrf.mxu1  ;;  %v6487_v40 = vadd.f32 %v2101_v46, %v1969_v43  ;;  %v1971_v61 = vadd.f32 %v1970_v31, %v6344_v54  ;;  %2681 = vmatprep.mubr.bf16.mxu1 %v5929_v20  ;;  %3434 = vmatpush2.bf16.msra.mxu1 %v4399_v15  ;;  %v3339_v20 = vcombine.high %v3337_v39, %v3337_v39 }
 0x193   :  { %v1972_v10 = vpop.f32.mrf.mxu0  ;;  %3394 = vmatprep.subr.bf16.mxu0 %v4400_v56  ;;  %3435 = vmatprep.subr.bf16.mxu1 %v4402_v60  ;;  %v6559_v15 = vpack.c.bf16 %v3346_v1, %v3346_v1 }
 0x194   :  { %v2105_v38 = vpop.f32.mrf.mxu1  ;;  %v6498_v63 = vadd.f32 %v2103_v36, %v1971_v61  ;;  %v1973_v4 = vadd.f32 %v1972_v10, %v6335_v17  ;;  %3395 = vmatpush2.bf16.msra.mxu0 %v4401_v19  ;;  %v3353_v25 = vrot.slane %v3339_v20, %v5032_v35 }
 0x195   :  { %v6504_v3 = vpop.f32.mrf.mxu0  ;;  %3446 = vmatprep.subr.bf16.mxu0 %v4403_v57 }
 0x196   :  { %8169 = vst [vmem:[#allocation16_spill] sm:$0xff] %v6498_v63  ;;  %v6506_v51 = vpop.f32.mrf.mxu1  ;;  %v6514_v41 = vadd.f32 %v2105_v38, %v1973_v4  ;;  %3436 = vmatpush2.bf16.msra.mxu1 %v4404_v58  ;;  %v3355_v9 = vcombine.high %v3353_v25, %v3353_v25  ;;  %v4407_v58 = vld [vmem:[%s8052_s2 + $0x12c] ss:$24 sps:$4 sm:$0xff]  }
 0x197   :  { %v1978_v52 = vpop.f32.mrf.mxu0  ;;  %2549 = vmatmul.mubr.bf16.gmra.mxu0 %v5934_v49  ;;  %3487 = vmatprep.subr.bf16.mxu1 %v4405_v42  ;;  %v4409_v42 = vld [vmem:[%s8052_s2 + $0x42c] ss:$24 sps:$4 sm:$0xff]  }
 0x198   :  { %8170 = vst [vmem:[#allocation17_spill] sm:$0xff] %v6514_v41  ;;  %v2111_v48 = vpop.f32.mrf.mxu1  ;;  %v1979_v27 = vadd.f32 %v1978_v52, %v6335_v17  ;;  %2558 = vmatprep.mubr.bf16.mxu0 %v5980_v21  ;;  %v3354_v21 = vcombine.high %v3346_v1, %v3346_v1  ;;  %v6549_v43 = vpack.c.bf16 %v3355_v9, %v3355_v9  ;;  %v4406_v52 = vld [vmem:[%s8052_s2 + $0x158] ss:$24 sps:$4 sm:$0xff]  }
 0x199   :  { %v1980_v6 = vpop.f32.mrf.mxu0  ;;  %2682 = vmatmul.mubr.bf16.gmra.mxu1 %v5944_v14 }
 0x19a   :  { %v2113_v37 = vpop.f32.mrf.mxu1  ;;  %v6530_v33 = vadd.f32 %v2111_v48, %v1979_v27  ;;  %v1981_v16 = vadd.f32 %v1980_v6, %v6344_v54  ;;  %2691 = vmatprep.mubr.bf16.mxu1 %v5982_v59  ;;  %v6544_v14 = vpack.c.bf16 %v3354_v21, %v3354_v21  ;;  %v4408_v6 = vld [vmem:[%s8052_s2 + $0x458] ss:$24 sps:$4 sm:$0xff]   ;;  %v4410_v21 = vld [vmem:[%s8052_s2 + $0x128] ss:$24 sps:$4 sm:$0xff]  }
 0x19b   :  { %v1982_v49 = vpop.f32.mrf.mxu0 }
 0x19c   :  { %v2115_v0 = vpop.f32.mrf.mxu1  ;;  %v6535_v44 = vadd.f32 %v2113_v37, %v1981_v16  ;;  %v1983_v11 = vadd.f32 %v1982_v49, %v6335_v17 }
 0x19d   :  { %v6538_v34 = vpop.f32.mrf.mxu0 }
 0x19e   :  { %8171 = vst [vmem:[#allocation18_spill] sm:$0xff] %v6535_v44  ;;  %v6540_v22 = vpop.f32.mrf.mxu1  ;;  %v6542_v8 = vadd.f32 %v2115_v0, %v1983_v11 }
 0x19f   :  { %v1988_v46 = vpop.f32.mrf.mxu0  ;;  %2559 = vmatmul.mubr.bf16.gmra.mxu0 %v5984_v26 }
 0x1a0   :  { %8172 = vst [vmem:[#allocation19_spill] sm:$0xff] %v6542_v8  ;;  %v1989_v53 = vadd.f32 %v1988_v46, %v6335_v17  ;;  %v2121_v59 = vpop.f32.mrf.mxu1  ;;  %3396 = vmatprep.mubr.bf16.mxu0 %v6544_v14  ;;  %v4411_v46 = vld [vmem:[%s8052_s2 + $0xfc] ss:$24 sps:$4 sm:$0xff]  }
 0x1a1   :  { %v1990_v31 = vpop.f32.mrf.mxu0  ;;  %2692 = vmatmul.mubr.bf16.gmra.mxu1 %v5988_v12  ;;  %v6564_v12 = vpack.c.bf16 %v3353_v25, %v3353_v25 }
 0x1a2   :  { %v6551_v36 = vadd.f32 %v2121_v59, %v1989_v53  ;;  %v1991_v50 = vadd.f32 %v1990_v31, %v6344_v54  ;;  %v2123_v39 = vpop.f32.mrf.mxu1  ;;  %3437 = vmatprep.mubr.bf16.mxu1 %v6549_v43  ;;  %v4412_v59 = vld [vmem:[%s8052_s2 + $0x428] ss:$24 sps:$4 sm:$0xff]  }
 0x1a3   :  { %v1992_v61 = vpop.f32.mrf.mxu0 }
 0x1a4   :  { %8173 = vst [vmem:[#allocation20_spill] sm:$0xff] %v6551_v36  ;;  %v6556_v47 = vadd.f32 %v2123_v39, %v1991_v50  ;;  %v1993_v10 = vadd.f32 %v1992_v61, %v6335_v17  ;;  %v2125_v26 = vpop.f32.mrf.mxu1  ;;  %v4413_v39 = vld [vmem:[%s8052_s2 + $0x3fc] ss:$24 sps:$4 sm:$0xff]  }
 0x1a5   :  { %v1994_v38 = vpop.f32.mrf.mxu0 }
 0x1a6   :  { %8174 = vst [vmem:[#allocation21_spill] sm:$0xff] %v6556_v47  ;;  %v6561_v4 = vadd.f32 %v2125_v26, %v1993_v10  ;;  %v1995_v56 = vadd.f32 %v1994_v38, %v6344_v54  ;;  %v2127_v20 = vpop.f32.mrf.mxu1  ;;  %v4414_v38 = vld [vmem:[%s8052_s2 + $0xf8] ss:$24 sps:$4 sm:$0xff]  }
 0x1a7   :  { %v1998_v60 = vpop.f32.mrf.mxu0  ;;  %3397 = vmatmul.mubr.bf16.vlgmr.msra.gmra.mxu0 %v6559_v15 }
 0x1a8   :  { %8175 = vst [vmem:[#allocation22_spill] sm:$0xff] %v6561_v4  ;;  %v6566_v19 = vadd.f32 %v2127_v20, %v1995_v56  ;;  %v1999_v57 = vadd.f32 %v1998_v60, %v6335_v17  ;;  %3447 = vmatpush1.bf16.msra.mxu0 %v4406_v52  ;;  %3478 = vmatprep.mubr.bf16.mxu0 %v6544_v14  ;;  %v4415_v60 = vld [vmem:[%s8052_s2 + $0xcc] ss:$24 sps:$4 sm:$0xff]   ;;  %v4416_v52 = vld [vmem:[%s8052_s2 + $0x3f8] ss:$24 sps:$4 sm:$0xff]  }
 0x1a9   :  { %v2131_v48 = vpop.f32.mrf.mxu1  ;;  %3438 = vmatmul.mubr.bf16.vlgmr.msra.gmra.mxu1 %v6564_v12  ;;  %v2000_v1 = vpop.f32.mrf.mxu0  ;;  %3448 = vmatprep.subr.bf16.mxu0 %v4407_v58  ;;  %v4417_v58 = vld [vmem:[%s8052_s2 + $0x3cc] ss:$24 sps:$4 sm:$0xff]  }
 0x1aa   :  { %8176 = vst [vmem:[#allocation23_spill] sm:$0xff] %v6566_v19  ;;  %v6578_v27 = vadd.f32 %v2131_v48, %v1999_v57  ;;  %3488 = vmatpush1.bf16.msra.mxu1 %v4408_v6  ;;  %3519 = vmatprep.mubr.bf16.mxu1 %v6549_v43  ;;  %v2001_v37 = vadd.f32 %v2000_v1, %v6344_v54 }
 0x1ab   :  { %v2133_v25 = vpop.f32.mrf.mxu1  ;;  %3489 = vmatprep.subr.bf16.mxu1 %v4409_v42  ;;  %v2002_v16 = vpop.f32.mrf.mxu0  ;;  %v4418_v42 = vld [vmem:[%s8052_s2 + $0xc8] ss:$24 sps:$4 sm:$0xff]  }
 0x1ac   :  { %8177 = vst [vmem:[#allocation24_spill] sm:$0xff] %v6578_v27  ;;  %v6588_v49 = vadd.f32 %v2133_v25, %v2001_v37  ;;  %v2003_v0 = vadd.f32 %v2002_v16, %v6335_v17  ;;  %3449 = vmatpush1.bf16.msra.mxu0 %v4410_v21  ;;  %v4419_v21 = vld [vmem:[%s8052_s2 + $0x9c] ss:$24 sps:$4 sm:$0xff]  }
 0x1ad   :  { %v2135_v11 = vpop.f32.mrf.mxu1  ;;  %v2004_v9 = vpop.f32.mrf.mxu0  ;;  %3450 = vmatprep.subr.bf16.mxu0 %v4411_v46 }
 0x1ae   :  { %8178 = vst [vmem:[#allocation25_spill] sm:$0xff] %v6588_v49  ;;  %v6597_v53 = vadd.f32 %v2135_v11, %v2003_v0  ;;  %3490 = vmatpush1.bf16.msra.mxu1 %v4412_v59  ;;  %v2005_v31 = vadd.f32 %v2004_v9, %v6344_v54  ;;  %v4420_v9 = vld [vmem:[%s8052_s2 + $0x3c8] ss:$24 sps:$4 sm:$0xff]  }
 0x1af   :  { %v2137_v50 = vpop.f32.mrf.mxu1  ;;  %3491 = vmatprep.subr.bf16.mxu1 %v4413_v39  ;;  %v2008_v61 = vpop.f32.mrf.mxu0 }
 0x1b0   :  { %8179 = vst [vmem:[#allocation26_spill] sm:$0xff] %v6597_v53  ;;  %v6606_v10 = vadd.f32 %v2137_v50, %v2005_v31  ;;  %v2009_v26 = vadd.f32 %v2008_v61, %v6335_v17  ;;  %3451 = vmatpush1.bf16.msra.mxu0 %v4414_v38  ;;  %v4421_v31 = vld [vmem:[%s8052_s2 + $0x39c] ss:$24 sps:$4 sm:$0xff]  }
 0x1b1   :  { %v2141_v56 = vpop.f32.mrf.mxu1  ;;  %v2010_v20 = vpop.f32.mrf.mxu0  ;;  %3452 = vmatprep.subr.bf16.mxu0 %v4415_v60 }
 0x1b2   :  { %8180 = vst [vmem:[#allocation27_spill] sm:$0xff] %v6606_v10  ;;  %v6615_v57 = vadd.f32 %v2141_v56, %v2009_v26  ;;  %3492 = vmatpush1.bf16.msra.mxu1 %v4416_v52  ;;  %v2011_v48 = vadd.f32 %v2010_v20, %v6344_v54  ;;  %v4422_v26 = vld [vmem:[%s8052_s2 + $0x98] ss:$24 sps:$4 sm:$0xff]   ;;  %v4423_v20 = vld [vmem:[%s8052_s2 + $0x6c] ss:$24 sps:$4 sm:$0xff]  }
 0x1b3   :  { %v2143_v1 = vpop.f32.mrf.mxu1  ;;  %3493 = vmatprep.subr.bf16.mxu1 %v4417_v58  ;;  %v2012_v6 = vpop.f32.mrf.mxu0  ;;  %v4424_v52 = vld [vmem:[%s8052_s2 + $0x398] ss:$24 sps:$4 sm:$0xff]   ;;  %v4425_v58 = vld [vmem:[%s8052_s2 + $0x36c] ss:$24 sps:$4 sm:$0xff]  }
 0x1b4   :  { %8181 = vst [vmem:[#allocation28_spill] sm:$0xff] %v6615_v57  ;;  %v6624_v37 = vadd.f32 %v2143_v1, %v2011_v48  ;;  %v2013_v25 = vadd.f32 %v2012_v6, %v6335_v17  ;;  %3453 = vmatpush1.bf16.msra.mxu0 %v4418_v42 }
 0x1b5   :  { %v2145_v16 = vpop.f32.mrf.mxu1  ;;  %v2014_v0 = vpop.f32.mrf.mxu0  ;;  %3454 = vmatprep.subr.bf16.mxu0 %v4419_v21 }
 0x1b6   :  { %8182 = vst [vmem:[#allocation29_spill] sm:$0xff] %v6624_v37  ;;  %v6633_v11 = vadd.f32 %v2145_v16, %v2013_v25  ;;  %3494 = vmatpush1.bf16.msra.mxu1 %v4420_v9  ;;  %v2015_v46 = vadd.f32 %v2014_v0, %v6344_v54  ;;  %v4426_v16 = vld [vmem:[%s8052_s2 + $0x68] ss:$24 sps:$4 sm:$0xff]   ;;  %v4427_v9 = vld [vmem:[%s8052_s2 + $0x3c] ss:$24 sps:$4 sm:$0xff]  }
 0x1b7   :  { %v2147_v59 = vpop.f32.mrf.mxu1  ;;  %3495 = vmatprep.subr.bf16.mxu1 %v4421_v31  ;;  %v2018_v50 = vpop.f32.mrf.mxu0 }
 0x1b8   :  { %8183 = vst [vmem:[#allocation30_spill] sm:$0xff] %v6633_v11  ;;  %v6642_v39 = vadd.f32 %v2147_v59, %v2015_v46  ;;  %v2019_v61 = vadd.f32 %v2018_v50, %v6335_v17  ;;  %3455 = vmatpush1.bf16.msra.mxu0 %v4422_v26  ;;  %v4428_v59 = vld [vmem:[%s8052_s2 + $0x368] ss:$24 sps:$4 sm:$0xff]  }
 0x1b9   :  { %v2151_v38 = vpop.f32.mrf.mxu1  ;;  %v2020_v56 = vpop.f32.mrf.mxu0  ;;  %3456 = vmatprep.subr.bf16.mxu0 %v4423_v20  ;;  %v4430_v20 = vld [vmem:[%s8052_s2 + $0x38] ss:$24 sps:$4 sm:$0xff]  }
 0x1ba   :  { %8184 = vst [vmem:[#allocation31_spill] sm:$0xff] %v6642_v39  ;;  %v6651_v60 = vadd.f32 %v2151_v38, %v2019_v61  ;;  %3496 = vmatpush1.bf16.msra.mxu1 %v4424_v52  ;;  %v2021_v48 = vadd.f32 %v2020_v56, %v6344_v54  ;;  %v4429_v61 = vld [vmem:[%s8052_s2 + $0x33c] ss:$24 sps:$4 sm:$0xff]   ;;  %v924_v52 = vsub.s32 2, %v5029_v28 }
 0x1bb   :  { %v2153_v1 = vpop.f32.mrf.mxu1  ;;  %3497 = vmatprep.subr.bf16.mxu1 %v4425_v58  ;;  %v2022_v6 = vpop.f32.mrf.mxu0  ;;  %v4431_v58 = vld [vmem:[%s8052_s2 + $0xc] ss:$24 sps:$4 sm:$0xff]  }
 0x1bc   :  { %8185 = vst [vmem:[#allocation32_spill] sm:$0xff] %v6651_v60  ;;  %v6660_v25 = vadd.f32 %v2153_v1, %v2021_v48  ;;  %v2023_v42 = vadd.f32 %v2022_v6, %v6335_v17  ;;  %3457 = vmatpush1.bf16.msra.mxu0 %v4426_v16 }
 0x1bd   :  { %v2155_v0 = vpop.f32.mrf.mxu1  ;;  %v2024_v21 = vpop.f32.mrf.mxu0  ;;  %3458 = vmatprep.subr.bf16.mxu0 %v4427_v9  ;;  %v4433_v9 = vld [vmem:[%s8052_s2 + $0x30c] ss:$24 sps:$4 sm:$0xff]  }
 0x1be   :  { %8186 = vst [vmem:[#allocation33_spill] sm:$0xff] %v6660_v25  ;;  %v6669_v46 = vadd.f32 %v2155_v0, %v2023_v42  ;;  %3498 = vmatpush1.bf16.msra.mxu1 %v4428_v59  ;;  %v2025_v31 = vadd.f32 %v2024_v21, %v6344_v54  ;;  %v4432_v42 = vld [vmem:[%s8052_s2 + $0x338] ss:$24 sps:$4 sm:$0xff]   ;;  %v928_v0 = vsub.s32 3, %v5029_v28 }
 0x1bf   :  { %v2157_v50 = vpop.f32.mrf.mxu1  ;;  %3499 = vmatprep.subr.bf16.mxu1 %v4429_v61  ;;  %v2028_v26 = vpop.f32.mrf.mxu0  ;;  %v4434_v61 = vld [vmem:[%s8052_s2 + $0x8] ss:$24 sps:$4 sm:$0xff]  }
 0x1c0   :  { %8187 = vst [vmem:[#allocation34_spill] sm:$0xff] %v6669_v46  ;;  %v6678_v38 = vadd.f32 %v2157_v50, %v2025_v31  ;;  %v2029_v56 = vadd.f32 %v2028_v26, %v6335_v17  ;;  %3459 = vmatpush1.bf16.msra.mxu0 %v4430_v20  ;;  %v6705_v26 = vrot.slane %v6323_v32, %v924_v52 }
 0x1c1   :  { %v2161_v48 = vpop.f32.mrf.mxu1  ;;  %v2030_v1 = vpop.f32.mrf.mxu0  ;;  %3460 = vmatprep.subr.bf16.mxu0 %v4431_v58  ;;  %v4436_v58 = vld [vmem:[%s8052_s2 + $0x308] ss:$24 sps:$4 sm:$0xff]  }
 0x1c2   :  { %8188 = vst [vmem:[#allocation35_spill] sm:$0xff] %v6678_v38  ;;  %v6688_v6 = vadd.f32 %v2161_v48, %v2029_v56  ;;  %3500 = vmatpush1.bf16.msra.mxu1 %v4432_v42  ;;  %v2031_v16 = vadd.f32 %v2030_v1, %v6344_v54  ;;  %8191 = vst [vmem:[#allocation38_spill] sm:$0xff] %v6705_v26  ;;  %v4435_v48 = vld [vmem:[%s8052_s2 + $0x2dc] ss:$24 sps:$4 sm:$0xff]  }
 0x1c3   :  { %v2163_v21 = vpop.f32.mrf.mxu1  ;;  %3501 = vmatprep.subr.bf16.mxu1 %v4433_v9  ;;  %v2032_v59 = vpop.f32.mrf.mxu0 }
 0x1c4   :  { %8189 = vst [vmem:[#allocation36_spill] sm:$0xff] %v6688_v6  ;;  %v6698_v31 = vadd.f32 %v2163_v21, %v2031_v16  ;;  %v2033_v50 = vadd.f32 %v2032_v59, %v6335_v17  ;;  %3461 = vmatpush1.bf16.msra.mxu0 %v4434_v61  ;;  %v6717_v16 = vrot.slane %v6323_v32, %v928_v0  ;;  %v4437_v21 = vld [vmem:[%s8052_s2 + $0x5dc] ss:$24 sps:$4 sm:$0xff]   ;;  %v4438_v61 = vld [vmem:[%s8052_s2 + $0x2d8] ss:$24 sps:$4 sm:$0xff]  }
 0x1c5   :  { %v2165_v56 = vpop.f32.mrf.mxu1  ;;  %v2034_v20 = vpop.f32.mrf.mxu0  ;;  %3462 = vmatprep.subr.bf16.mxu0 %v4435_v48  ;;  %v4439_v32 = vld [vmem:[%s8052_s2 + $0x2ac] ss:$24 sps:$4 sm:$0xff]   ;;  %v4440_v48 = vld [vmem:[%s8052_s2 + $0x5d8] ss:$24 sps:$4 sm:$0xff]  }
 0x1c6   :  { %8190 = vst [vmem:[#allocation37_spill] sm:$0xff] %v6698_v31  ;;  %v6710_v1 = vadd.f32 %v2165_v56, %v2033_v50  ;;  %3502 = vmatpush1.bf16.msra.mxu1 %v4436_v58  ;;  %v2035_v42 = vadd.f32 %v2034_v20, %v6344_v54  ;;  %8193 = vst [vmem:[#allocation40_spill] sm:$0xff] %v6717_v16 }
 0x1c7   :  { %v2167_v52 = vpop.f32.mrf.mxu1  ;;  %3503 = vmatprep.subr.bf16.mxu1 %v4437_v21  ;;  %v2204_v9 = vpop.f32.mrf.mxu0 }
 0x1c8   :  { %8192 = vst [vmem:[#allocation39_spill] sm:$0xff] %v6710_v1  ;;  %v6722_v59 = vadd.f32 %v2167_v52, %v2035_v42  ;;  %v2205_v50 = vadd.f32 %v2204_v9, %v6705_v26  ;;  %3463 = vmatpush2.bf16.msra.mxu0 %v4438_v61  ;;  %v4441_v52 = vld [vmem:[%s8052_s2 + $0x5ac] ss:$24 sps:$4 sm:$0xff]  }
 0x1c9   :  { %v2337_v56 = vpop.f32.mrf.mxu1  ;;  %v2206_v20 = vpop.f32.mrf.mxu0  ;;  %3464 = vmatprep.subr.bf16.mxu0 %v4439_v32 }
 0x1ca   :  { %8194 = vst [vmem:[#allocation41_spill] sm:$0xff] %v6722_v59  ;;  %v6731_v0 = vadd.f32 %v2337_v56, %v2205_v50  ;;  %3504 = vmatpush2.bf16.msra.mxu1 %v4440_v48  ;;  %v2207_v58 = vadd.f32 %v2206_v20, %v6717_v16  ;;  %v4442_v50 = vld [vmem:[%s8052_s2 + $0x2a8] ss:$24 sps:$4 sm:$0xff]   ;;  %v4443_v20 = vld [vmem:[%s8052_s2 + $0x27c] ss:$24 sps:$4 sm:$0xff]  }
 0x1cb   :  { %v2339_v42 = vpop.f32.mrf.mxu1  ;;  %3505 = vmatprep.subr.bf16.mxu1 %v4441_v52  ;;  %v2208_v21 = vpop.f32.mrf.mxu0 }
 0x1cc   :  { %8195 = vst [vmem:[#allocation42_spill] sm:$0xff] %v6731_v0  ;;  %v6740_v9 = vadd.f32 %v2339_v42, %v2207_v58  ;;  %v2209_v61 = vadd.f32 %v2208_v21, %v6705_v26  ;;  %3465 = vmatpush2.bf16.msra.mxu0 %v4442_v50  ;;  %v4444_v58 = vld [vmem:[%s8052_s2 + $0x5a8] ss:$24 sps:$4 sm:$0xff]   ;;  %v4445_v21 = vld [vmem:[%s8052_s2 + $0x57c] ss:$24 sps:$4 sm:$0xff]  }
 0x1cd   :  { %v2341_v56 = vpop.f32.mrf.mxu1  ;;  %v2210_v32 = vpop.f32.mrf.mxu0  ;;  %3466 = vmatprep.subr.bf16.mxu0 %v4443_v20 }
 0x1ce   :  { %v6749_v48 = vadd.f32 %v2341_v56, %v2209_v61  ;;  %3506 = vmatpush2.bf16.msra.mxu1 %v4444_v58  ;;  %v2211_v42 = vadd.f32 %v2210_v32, %v6717_v16  ;;  %v4446_v61 = vld [vmem:[%s8052_s2 + $0x278] ss:$24 sps:$4 sm:$0xff]   ;;  %v4447_v32 = vld [vmem:[%s8052_s2 + $0x24c] ss:$24 sps:$4 sm:$0xff]  }
 0x1cf   :  { %v2343_v52 = vpop.f32.mrf.mxu1  ;;  %3507 = vmatprep.subr.bf16.mxu1 %v4445_v21  ;;  %v2214_v50 = vpop.f32.mrf.mxu0 }
 0x1d0   :  { %v6758_v35 = vadd.f32 %v2343_v52, %v2211_v42  ;;  %v2215_v20 = vadd.f32 %v2214_v50, %v6705_v26  ;;  %3467 = vmatpush2.bf16.msra.mxu0 %v4446_v61  ;;  %v4448_v42 = vld [vmem:[%s8052_s2 + $0x578] ss:$24 sps:$4 sm:$0xff]   ;;  %v4449_v50 = vld [vmem:[%s8052_s2 + $0x54c] ss:$24 sps:$4 sm:$0xff]  }
 0x1d1   :  { %v2347_v56 = vpop.f32.mrf.mxu1  ;;  %v2216_v58 = vpop.f32.mrf.mxu0  ;;  %3468 = vmatprep.subr.bf16.mxu0 %v4447_v32 }
 0x1d2   :  { %8196 = vst [vmem:[#allocation43_spill] sm:$0xff] %v6758_v35  ;;  %v6767_v1 = vadd.f32 %v2347_v56, %v2215_v20  ;;  %3508 = vmatpush2.bf16.msra.mxu1 %v4448_v42  ;;  %v2217_v52 = vadd.f32 %v2216_v58, %v6717_v16  ;;  %v4450_v20 = vld [vmem:[%s8052_s2 + $0x248] ss:$24 sps:$4 sm:$0xff]   ;;  %v4451_v58 = vld [vmem:[%s8052_s2 + $0x21c] ss:$24 sps:$4 sm:$0xff]  }
 0x1d3   :  { %v2349_v21 = vpop.f32.mrf.mxu1  ;;  %3509 = vmatprep.subr.bf16.mxu1 %v4449_v50  ;;  %v2218_v61 = vpop.f32.mrf.mxu0 }
 0x1d4   :  { %8197 = vst [vmem:[#allocation44_spill] sm:$0xff] %v6767_v1  ;;  %v6776_v59 = vadd.f32 %v2349_v21, %v2217_v52  ;;  %v2219_v32 = vadd.f32 %v2218_v61, %v6705_v26  ;;  %3469 = vmatpush2.bf16.msra.mxu0 %v4450_v20  ;;  %v4452_v52 = vld [vmem:[%s8052_s2 + $0x548] ss:$24 sps:$4 sm:$0xff]   ;;  %v4453_v61 = vld [vmem:[%s8052_s2 + $0x51c] ss:$24 sps:$4 sm:$0xff]  }
 0x1d5   :  { %v2351_v56 = vpop.f32.mrf.mxu1  ;;  %v2220_v42 = vpop.f32.mrf.mxu0  ;;  %3470 = vmatprep.subr.bf16.mxu0 %v4451_v58 }
 0x1d6   :  { %8198 = vst [vmem:[#allocation45_spill] sm:$0xff] %v6776_v59  ;;  %v6785_v38 = vadd.f32 %v2351_v56, %v2219_v32  ;;  %3510 = vmatpush2.bf16.msra.mxu1 %v4452_v52  ;;  %v2221_v21 = vadd.f32 %v2220_v42, %v6717_v16  ;;  %v4454_v32 = vld [vmem:[%s8052_s2 + $0x218] ss:$24 sps:$4 sm:$0xff]   ;;  %v4455_v42 = vld [vmem:[%s8052_s2 + $0x1ec] ss:$24 sps:$4 sm:$0xff]  }
 0x1d7   :  { %v2353_v50 = vpop.f32.mrf.mxu1  ;;  %3511 = vmatprep.subr.bf16.mxu1 %v4453_v61  ;;  %v2224_v20 = vpop.f32.mrf.mxu0 }
 0x1d8   :  { %8199 = vst [vmem:[#allocation46_spill] sm:$0xff] %v6785_v38  ;;  %v6794_v46 = vadd.f32 %v2353_v50, %v2221_v21  ;;  %v2225_v58 = vadd.f32 %v2224_v20, %v6705_v26  ;;  %3471 = vmatpush2.bf16.msra.mxu0 %v4454_v32  ;;  %v4456_v21 = vld [vmem:[%s8052_s2 + $0x518] ss:$24 sps:$4 sm:$0xff]   ;;  %v4457_v20 = vld [vmem:[%s8052_s2 + $0x4ec] ss:$24 sps:$4 sm:$0xff]  }
 0x1d9   :  { %v2357_v56 = vpop.f32.mrf.mxu1  ;;  %v2226_v52 = vpop.f32.mrf.mxu0  ;;  %3472 = vmatprep.subr.bf16.mxu0 %v4455_v42 }
 0x1da   :  { %v6803_v17 = vadd.f32 %v2357_v56, %v2225_v58  ;;  %3512 = vmatpush2.bf16.msra.mxu1 %v4456_v21  ;;  %v2227_v50 = vadd.f32 %v2226_v52, %v6717_v16  ;;  %v4458_v58 = vld [vmem:[%s8052_s2 + $0x1e8] ss:$24 sps:$4 sm:$0xff]   ;;  %v4459_v52 = vld [vmem:[%s8052_s2 + $0x1bc] ss:$24 sps:$4 sm:$0xff]  }
 0x1db   :  { %v2359_v61 = vpop.f32.mrf.mxu1  ;;  %3513 = vmatprep.subr.bf16.mxu1 %v4457_v20  ;;  %v2228_v32 = vpop.f32.mrf.mxu0 }
 0x1dc   :  { %v6812_v6 = vadd.f32 %v2359_v61, %v2227_v50  ;;  %v2229_v42 = vadd.f32 %v2228_v32, %v6705_v26  ;;  %3473 = vmatpush2.bf16.msra.mxu0 %v4458_v58  ;;  %v4460_v50 = vld [vmem:[%s8052_s2 + $0x4e8] ss:$24 sps:$4 sm:$0xff]   ;;  %v4461_v32 = vld [vmem:[%s8052_s2 + $0x4bc] ss:$24 sps:$4 sm:$0xff]  }
 0x1dd   :  { %v2361_v56 = vpop.f32.mrf.mxu1  ;;  %v2230_v21 = vpop.f32.mrf.mxu0  ;;  %3474 = vmatprep.subr.bf16.mxu0 %v4459_v52 }
 0x1de   :  { %v6821_v31 = vadd.f32 %v2361_v56, %v2229_v42  ;;  %3514 = vmatpush2.bf16.msra.mxu1 %v4460_v50  ;;  %v2231_v61 = vadd.f32 %v2230_v21, %v6717_v16  ;;  %v4462_v42 = vld [vmem:[%s8052_s2 + $0x1b8] ss:$24 sps:$4 sm:$0xff]   ;;  %v4463_v21 = vld [vmem:[%s8052_s2 + $0x18c] ss:$24 sps:$4 sm:$0xff]  }
 0x1df   :  { %v2363_v20 = vpop.f32.mrf.mxu1  ;;  %3515 = vmatprep.subr.bf16.mxu1 %v4461_v32  ;;  %v2234_v58 = vpop.f32.mrf.mxu0 }
 0x1e0   :  { %v6830_v25 = vadd.f32 %v2363_v20, %v2231_v61  ;;  %v2235_v52 = vadd.f32 %v2234_v58, %v6705_v26  ;;  %3475 = vmatpush2.bf16.msra.mxu0 %v4462_v42  ;;  %v4464_v61 = vld [vmem:[%s8052_s2 + $0x4b8] ss:$24 sps:$4 sm:$0xff]   ;;  %v4465_v58 = vld [vmem:[%s8052_s2 + $0x48c] ss:$24 sps:$4 sm:$0xff]  }
 0x1e1   :  { %v2367_v56 = vpop.f32.mrf.mxu1  ;;  %v2236_v50 = vpop.f32.mrf.mxu0  ;;  %3476 = vmatprep.subr.bf16.mxu0 %v4463_v21 }
 0x1e2   :  { %v6839_v60 = vadd.f32 %v2367_v56, %v2235_v52  ;;  %3516 = vmatpush2.bf16.msra.mxu1 %v4464_v61  ;;  %v2237_v20 = vadd.f32 %v2236_v50, %v6717_v16  ;;  %v4466_v52 = vld [vmem:[%s8052_s2 + $0x188] ss:$24 sps:$4 sm:$0xff]   ;;  %v4467_v50 = vld [vmem:[%s8052_s2 + $0x164] ss:$24 sps:$4 sm:$0xff]  }
 0x1e3   :  { %v2369_v32 = vpop.f32.mrf.mxu1  ;;  %3517 = vmatprep.subr.bf16.mxu1 %v4465_v58  ;;  %v2238_v42 = vpop.f32.mrf.mxu0 }
 0x1e4   :  { %v6848_v39 = vadd.f32 %v2369_v32, %v2237_v20  ;;  %v2239_v21 = vadd.f32 %v2238_v42, %v6705_v26  ;;  %3477 = vmatpush2.bf16.msra.mxu0 %v4466_v52  ;;  %v4468_v20 = vld [vmem:[%s8052_s2 + $0x488] ss:$24 sps:$4 sm:$0xff]   ;;  %v4469_v42 = vld [vmem:[%s8052_s2 + $0x464] ss:$24 sps:$4 sm:$0xff]  }
 0x1e5   :  { %v2371_v56 = vpop.f32.mrf.mxu1  ;;  %v2240_v61 = vpop.f32.mrf.mxu0  ;;  %3528 = vmatprep.subr.bf16.mxu0 %v4467_v50 }
 0x1e6   :  { %v6857_v11 = vadd.f32 %v2371_v56, %v2239_v21  ;;  %3518 = vmatpush2.bf16.msra.mxu1 %v4468_v20  ;;  %v2241_v32 = vadd.f32 %v2240_v61, %v6717_v16  ;;  %v4470_v56 = vld [vmem:[%s8052_s2 + $0x160] ss:$24 sps:$4 sm:$0xff]  }
 0x1e7   :  { %v2373_v58 = vpop.f32.mrf.mxu1  ;;  %3479 = vmatmul.mubr.bf16.vlgmr.msra.gmra.mxu0 %v6559_v15  ;;  %3569 = vmatprep.subr.bf16.mxu1 %v4469_v42  ;;  %v2244_v52 = vpop.f32.mrf.mxu0 }
 0x1e8   :  { %v6867_v37 = vadd.f32 %v2373_v58, %v2241_v32  ;;  %v2245_v21 = vadd.f32 %v2244_v52, %v6705_v26  ;;  %3529 = vmatpush1.bf16.msra.mxu0 %v4470_v56  ;;  %3560 = vmatprep.mubr.bf16.mxu0 %v6544_v14  ;;  %v4471_v32 = vld [vmem:[%s8052_s2 + $0x460] ss:$24 sps:$4 sm:$0xff]   ;;  %v4472_v52 = vld [vmem:[%s8052_s2 + $0x134] ss:$24 sps:$4 sm:$0xff]  }
 0x1e9   :  { %3520 = vmatmul.mubr.bf16.vlgmr.msra.gmra.mxu1 %v6564_v12  ;;  %v2377_v61 = vpop.f32.mrf.mxu1  ;;  %v2246_v50 = vpop.f32.mrf.mxu0  ;;  %3530 = vmatprep.subr.bf16.mxu0 %v4472_v52  ;;  %v4473_v14 = vld [vmem:[%s8052_s2 + $0x434] ss:$24 sps:$4 sm:$0xff]   ;;  %v4475_v52 = vld [vmem:[%s8052_s2 + $0x104] ss:$24 sps:$4 sm:$0xff]  }
 0x1ea   :  { %v6875_v20 = vadd.f32 %v2377_v61, %v2245_v21  ;;  %3570 = vmatpush1.bf16.msra.mxu1 %v4471_v32  ;;  %3601 = vmatprep.mubr.bf16.mxu1 %v6549_v43  ;;  %v2247_v58 = vadd.f32 %v2246_v50, %v6717_v16  ;;  %v4474_v43 = vld [vmem:[%s8052_s2 + $0x130] ss:$24 sps:$4 sm:$0xff]  }
 0x1eb   :  { %v2379_v42 = vpop.f32.mrf.mxu1  ;;  %3571 = vmatprep.subr.bf16.mxu1 %v4473_v14  ;;  %v2248_v21 = vpop.f32.mrf.mxu0  ;;  %v4476_v14 = vld [vmem:[%s8052_s2 + $0x430] ss:$24 sps:$4 sm:$0xff]  }
 0x1ec   :  { %v2249_v56 = vadd.f32 %v2248_v21, %v6705_v26  ;;  %3531 = vmatpush1.bf16.msra.mxu0 %v4474_v43  ;;  %v6892_v61 = vadd.f32 %v2379_v42, %v2247_v58  ;;  %v4477_v58 = vld [vmem:[%s8052_s2 + $0x404] ss:$24 sps:$4 sm:$0xff]  }
 0x1ed   :  { %v2381_v50 = vpop.f32.mrf.mxu1  ;;  %v2250_v32 = vpop.f32.mrf.mxu0  ;;  %3532 = vmatprep.subr.bf16.mxu0 %v4475_v52 }
 0x1ee   :  { %v6897_v57 = vadd.f32 %v2381_v50, %v2249_v56  ;;  %3572 = vmatpush1.bf16.msra.mxu1 %v4476_v14  ;;  %v2251_v21 = vadd.f32 %v2250_v32, %v6717_v16  ;;  %v4478_v56 = vld [vmem:[%s8052_s2 + $0x100] ss:$24 sps:$4 sm:$0xff]   ;;  %v4479_v32 = vld [vmem:[%s8052_s2 + $0xd4] ss:$24 sps:$4 sm:$0xff]  }
 0x1ef   :  { %v2383_v10 = vpop.f32.mrf.mxu1  ;;  %3573 = vmatprep.subr.bf16.mxu1 %v4477_v58  ;;  %v2254_v42 = vpop.f32.mrf.mxu0 }
 0x1f0   :  { %8200 = vst [vmem:[#allocation47_spill] sm:$0xff] %v6897_v57  ;;  %v6906_v43 = vadd.f32 %v2383_v10, %v2251_v21  ;;  %v2255_v52 = vadd.f32 %v2254_v42, %v6705_v26  ;;  %3533 = vmatpush1.bf16.msra.mxu0 %v4478_v56  ;;  %v4480_v10 = vld [vmem:[%s8052_s2 + $0x400] ss:$24 sps:$4 sm:$0xff]   ;;  %v4481_v42 = vld [vmem:[%s8052_s2 + $0x3d4] ss:$24 sps:$4 sm:$0xff]  }
 0x1f1   :  { %v2387_v50 = vpop.f32.mrf.mxu1  ;;  %v2256_v14 = vpop.f32.mrf.mxu0  ;;  %3534 = vmatprep.subr.bf16.mxu0 %v4479_v32 }
 0x1f2   :  { %8201 = vst [vmem:[#allocation48_spill] sm:$0xff] %v6906_v43  ;;  %v6915_v53 = vadd.f32 %v2387_v50, %v2255_v52  ;;  %3574 = vmatpush1.bf16.msra.mxu1 %v4480_v10  ;;  %v2257_v21 = vadd.f32 %v2256_v14, %v6717_v16  ;;  %v4482_v52 = vld [vmem:[%s8052_s2 + $0xd0] ss:$24 sps:$4 sm:$0xff]   ;;  %v4483_v14 = vld [vmem:[%s8052_s2 + $0xa4] ss:$24 sps:$4 sm:$0xff]  }
 0x1f3   :  { %v2389_v58 = vpop.f32.mrf.mxu1  ;;  %3575 = vmatprep.subr.bf16.mxu1 %v4481_v42  ;;  %v2258_v56 = vpop.f32.mrf.mxu0 }
 0x1f4   :  { %8202 = vst [vmem:[#allocation49_spill] sm:$0xff] %v6915_v53  ;;  %v6924_v49 = vadd.f32 %v2389_v58, %v2257_v21  ;;  %v2259_v32 = vadd.f32 %v2258_v56, %v6705_v26  ;;  %3535 = vmatpush1.bf16.msra.mxu0 %v4482_v52  ;;  %v4484_v21 = vld [vmem:[%s8052_s2 + $0x3d0] ss:$24 sps:$4 sm:$0xff]   ;;  %v4485_v56 = vld [vmem:[%s8052_s2 + $0x3a4] ss:$24 sps:$4 sm:$0xff]  }
 0x1f5   :  { %v2391_v50 = vpop.f32.mrf.mxu1  ;;  %v2260_v10 = vpop.f32.mrf.mxu0  ;;  %3536 = vmatprep.subr.bf16.mxu0 %v4483_v14 }
 0x1f6   :  { %8203 = vst [vmem:[#allocation50_spill] sm:$0xff] %v6924_v49  ;;  %v6933_v27 = vadd.f32 %v2391_v50, %v2259_v32  ;;  %3576 = vmatpush1.bf16.msra.mxu1 %v4484_v21  ;;  %v2261_v58 = vadd.f32 %v2260_v10, %v6717_v16  ;;  %v4486_v32 = vld [vmem:[%s8052_s2 + $0xa0] ss:$24 sps:$4 sm:$0xff]   ;;  %v4487_v10 = vld [vmem:[%s8052_s2 + $0x74] ss:$24 sps:$4 sm:$0xff]  }
 0x1f7   :  { %v2393_v42 = vpop.f32.mrf.mxu1  ;;  %3577 = vmatprep.subr.bf16.mxu1 %v4485_v56  ;;  %v2264_v52 = vpop.f32.mrf.mxu0 }
 0x1f8   :  { %8204 = vst [vmem:[#allocation51_spill] sm:$0xff] %v6933_v27  ;;  %v6942_v49 = vadd.f32 %v2393_v42, %v2261_v58  ;;  %v2265_v14 = vadd.f32 %v2264_v52, %v6705_v26  ;;  %3537 = vmatpush1.bf16.msra.mxu0 %v4486_v32  ;;  %v4488_v58 = vld [vmem:[%s8052_s2 + $0x3a0] ss:$24 sps:$4 sm:$0xff]   ;;  %v4489_v52 = vld [vmem:[%s8052_s2 + $0x374] ss:$24 sps:$4 sm:$0xff]  }
 0x1f9   :  { %v2397_v50 = vpop.f32.mrf.mxu1  ;;  %v2266_v21 = vpop.f32.mrf.mxu0  ;;  %3538 = vmatprep.subr.bf16.mxu0 %v4487_v10 }
 0x1fa   :  { %8205 = vst [vmem:[#allocation52_spill] sm:$0xff] %v6942_v49  ;;  %v6951_v27 = vadd.f32 %v2397_v50, %v2265_v14  ;;  %3578 = vmatpush1.bf16.msra.mxu1 %v4488_v58  ;;  %v2267_v42 = vadd.f32 %v2266_v21, %v6717_v16  ;;  %v4490_v14 = vld [vmem:[%s8052_s2 + $0x70] ss:$24 sps:$4 sm:$0xff]   ;;  %v4491_v21 = vld [vmem:[%s8052_s2 + $0x44] ss:$24 sps:$4 sm:$0xff]  }
 0x1fb   :  { %v2399_v56 = vpop.f32.mrf.mxu1  ;;  %3579 = vmatprep.subr.bf16.mxu1 %v4489_v52  ;;  %v2268_v32 = vpop.f32.mrf.mxu0 }
 0x1fc   :  { %8206 = vst [vmem:[#allocation53_spill] sm:$0xff] %v6951_v27  ;;  %v6960_v49 = vadd.f32 %v2399_v56, %v2267_v42  ;;  %v2269_v10 = vadd.f32 %v2268_v32, %v6705_v26  ;;  %3539 = vmatpush1.bf16.msra.mxu0 %v4490_v14  ;;  %v4492_v42 = vld [vmem:[%s8052_s2 + $0x370] ss:$24 sps:$4 sm:$0xff]   ;;  %v4493_v32 = vld [vmem:[%s8052_s2 + $0x344] ss:$24 sps:$4 sm:$0xff]  }
 0x1fd   :  { %v2401_v50 = vpop.f32.mrf.mxu1  ;;  %v2270_v58 = vpop.f32.mrf.mxu0  ;;  %3540 = vmatprep.subr.bf16.mxu0 %v4491_v21 }
 0x1fe   :  { %8207 = vst [vmem:[#allocation54_spill] sm:$0xff] %v6960_v49  ;;  %v6969_v27 = vadd.f32 %v2401_v50, %v2269_v10  ;;  %3580 = vmatpush1.bf16.msra.mxu1 %v4492_v42  ;;  %v2271_v56 = vadd.f32 %v2270_v58, %v6717_v16  ;;  %v4494_v10 = vld [vmem:[%s8052_s2 + $0x40] ss:$24 sps:$4 sm:$0xff]   ;;  %v4495_v58 = vld [vmem:[%s8052_s2 + $0x14] ss:$24 sps:$4 sm:$0xff]  }
 0x1ff   :  { %v2403_v52 = vpop.f32.mrf.mxu1  ;;  %3581 = vmatprep.subr.bf16.mxu1 %v4493_v32  ;;  %v2274_v14 = vpop.f32.mrf.mxu0 }
 0x200   :  { %8208 = vst [vmem:[#allocation55_spill] sm:$0xff] %v6969_v27  ;;  %v6978_v49 = vadd.f32 %v2403_v52, %v2271_v56  ;;  %v2275_v21 = vadd.f32 %v2274_v14, %v6705_v26  ;;  %3541 = vmatpush1.bf16.msra.mxu0 %v4494_v10  ;;  %v4496_v56 = vld [vmem:[%s8052_s2 + $0x340] ss:$24 sps:$4 sm:$0xff]   ;;  %v4497_v14 = vld [vmem:[%s8052_s2 + $0x314] ss:$24 sps:$4 sm:$0xff]  }
 0x201   :  { %v2407_v50 = vpop.f32.mrf.mxu1  ;;  %v2276_v42 = vpop.f32.mrf.mxu0  ;;  %3542 = vmatprep.subr.bf16.mxu0 %v4495_v58 }
 0x202   :  { %8209 = vst [vmem:[#allocation56_spill] sm:$0xff] %v6978_v49  ;;  %v6987_v27 = vadd.f32 %v2407_v50, %v2275_v21  ;;  %3582 = vmatpush1.bf16.msra.mxu1 %v4496_v56  ;;  %v2277_v52 = vadd.f32 %v2276_v42, %v6717_v16  ;;  %v4498_v21 = vld [vmem:[%s8052_s2 + $0x10] ss:$24 sps:$4 sm:$0xff]   ;;  %v4499_v42 = vld [vmem:[%s8052_s2 + $0x2e4] ss:$24 sps:$4 sm:$0xff]  }
 0x203   :  { %v2409_v32 = vpop.f32.mrf.mxu1  ;;  %3583 = vmatprep.subr.bf16.mxu1 %v4497_v14  ;;  %v2278_v10 = vpop.f32.mrf.mxu0 }
 0x204   :  { %8210 = vst [vmem:[#allocation57_spill] sm:$0xff] %v6987_v27  ;;  %v6996_v49 = vadd.f32 %v2409_v32, %v2277_v52  ;;  %v2279_v58 = vadd.f32 %v2278_v10, %v6705_v26  ;;  %3543 = vmatpush1.bf16.msra.mxu0 %v4498_v21  ;;  %v4500_v52 = vld [vmem:[%s8052_s2 + $0x310] ss:$24 sps:$4 sm:$0xff]   ;;  %v4501_v10 = vld [vmem:[%s8052_s2 + $0x5e4] ss:$24 sps:$4 sm:$0xff]  }
 0x205   :  { %v2411_v50 = vpop.f32.mrf.mxu1  ;;  %v2280_v56 = vpop.f32.mrf.mxu0  ;;  %3544 = vmatprep.subr.bf16.mxu0 %v4499_v42 }
 0x206   :  { %8211 = vst [vmem:[#allocation58_spill] sm:$0xff] %v6996_v49  ;;  %v7005_v27 = vadd.f32 %v2411_v50, %v2279_v58  ;;  %3584 = vmatpush1.bf16.msra.mxu1 %v4500_v52  ;;  %v2281_v32 = vadd.f32 %v2280_v56, %v6717_v16  ;;  %v4502_v58 = vld [vmem:[%s8052_s2 + $0x2e0] ss:$24 sps:$4 sm:$0xff]   ;;  %v4503_v56 = vld [vmem:[%s8052_s2 + $0x2b4] ss:$24 sps:$4 sm:$0xff]  }
 0x207   :  { %v2413_v14 = vpop.f32.mrf.mxu1  ;;  %3585 = vmatprep.subr.bf16.mxu1 %v4501_v10  ;;  %v2284_v21 = vpop.f32.mrf.mxu0 }
 0x208   :  { %8212 = vst [vmem:[#allocation59_spill] sm:$0xff] %v7005_v27  ;;  %v7014_v49 = vadd.f32 %v2413_v14, %v2281_v32  ;;  %v2285_v42 = vadd.f32 %v2284_v21, %v6705_v26  ;;  %3545 = vmatpush2.bf16.msra.mxu0 %v4502_v58  ;;  %v4504_v32 = vld [vmem:[%s8052_s2 + $0x5e0] ss:$24 sps:$4 sm:$0xff]   ;;  %v4505_v21 = vld [vmem:[%s8052_s2 + $0x5b4] ss:$24 sps:$4 sm:$0xff]  }
 0x209   :  { %v2417_v50 = vpop.f32.mrf.mxu1  ;;  %v2286_v52 = vpop.f32.mrf.mxu0  ;;  %3546 = vmatprep.subr.bf16.mxu0 %v4503_v56 }
 0x20a   :  { %8213 = vst [vmem:[#allocation60_spill] sm:$0xff] %v7014_v49  ;;  %v7023_v27 = vadd.f32 %v2417_v50, %v2285_v42  ;;  %3586 = vmatpush2.bf16.msra.mxu1 %v4504_v32  ;;  %v2287_v14 = vadd.f32 %v2286_v52, %v6717_v16  ;;  %v4506_v42 = vld [vmem:[%s8052_s2 + $0x2b0] ss:$24 sps:$4 sm:$0xff]   ;;  %v4507_v52 = vld [vmem:[%s8052_s2 + $0x284] ss:$24 sps:$4 sm:$0xff]  }
 0x20b   :  { %v2419_v10 = vpop.f32.mrf.mxu1  ;;  %3587 = vmatprep.subr.bf16.mxu1 %v4505_v21  ;;  %v2288_v58 = vpop.f32.mrf.mxu0 }
 0x20c   :  { %8214 = vst [vmem:[#allocation61_spill] sm:$0xff] %v7023_v27  ;;  %v7032_v49 = vadd.f32 %v2419_v10, %v2287_v14  ;;  %v2289_v56 = vadd.f32 %v2288_v58, %v6705_v26  ;;  %3547 = vmatpush2.bf16.msra.mxu0 %v4506_v42  ;;  %v4508_v14 = vld [vmem:[%s8052_s2 + $0x5b0] ss:$24 sps:$4 sm:$0xff]   ;;  %v4509_v58 = vld [vmem:[%s8052_s2 + $0x584] ss:$24 sps:$4 sm:$0xff]  }
 0x20d   :  { %v2421_v50 = vpop.f32.mrf.mxu1  ;;  %v2290_v32 = vpop.f32.mrf.mxu0  ;;  %3548 = vmatprep.subr.bf16.mxu0 %v4507_v52 }
 0x20e   :  { %8215 = vst [vmem:[#allocation62_spill] sm:$0xff] %v7032_v49  ;;  %v7041_v27 = vadd.f32 %v2421_v50, %v2289_v56  ;;  %3588 = vmatpush2.bf16.msra.mxu1 %v4508_v14  ;;  %v2291_v10 = vadd.f32 %v2290_v32, %v6717_v16  ;;  %v4510_v56 = vld [vmem:[%s8052_s2 + $0x280] ss:$24 sps:$4 sm:$0xff]   ;;  %v932_v50 = vsub.s32 4, %v5029_v28 }
 0x20f   :  { %v2423_v21 = vpop.f32.mrf.mxu1  ;;  %3589 = vmatprep.subr.bf16.mxu1 %v4509_v58  ;;  %v2294_v42 = vpop.f32.mrf.mxu0  ;;  %v4512_v58 = vld [vmem:[%s8052_s2 + $0x580] ss:$24 sps:$4 sm:$0xff]  }
 0x210   :  { %8216 = vst [vmem:[#allocation63_spill] sm:$0xff] %v7041_v27  ;;  %v7050_v49 = vadd.f32 %v2423_v21, %v2291_v10  ;;  %v2295_v52 = vadd.f32 %v2294_v42, %v6705_v26  ;;  %3549 = vmatpush2.bf16.msra.mxu0 %v4510_v56  ;;  %v4511_v27 = vld [vmem:[%s8052_s2 + $0x254] ss:$24 sps:$4 sm:$0xff]   ;;  %v2703_v10 = vmul.f32 %v6372_v24, %v6372_v24  ;;  %v936_v56 = vsub.s32 5, %v5029_v28  ;;  %v4514_v28 = vld [vmem:[%s8052_s2 + $0x250] ss:$24 sps:$4 sm:$0xff]  }
 0x211   :  { %v2427_v14 = vpop.f32.mrf.mxu1  ;;  %v2296_v32 = vpop.f32.mrf.mxu0  ;;  %3550 = vmatprep.subr.bf16.mxu0 %v4511_v27  ;;  %v4513_v27 = vld [vmem:[%s8052_s2 + $0x554] ss:$24 sps:$4 sm:$0xff]  }
 0x212   :  { %8217 = vst [vmem:[#allocation64_spill] sm:$0xff] %v7050_v49  ;;  %v7062_v21 = vadd.f32 %v2427_v14, %v2295_v52  ;;  %3590 = vmatpush2.bf16.msra.mxu1 %v4512_v58  ;;  %v2297_v42 = vadd.f32 %v2296_v32, %v6717_v16  ;;  %v2702_v49 = vmul.f32 %v6361_v55, %v6361_v55  ;;  %v4515_v32 = vld [vmem:[%s8053_s3] sm:$0x3f] }
 0x213   :  { %v2429_v19 = vpop.f32.mrf.mxu1  ;;  %3591 = vmatprep.subr.bf16.mxu1 %v4513_v27  ;;  %v2298_v52 = vpop.f32.mrf.mxu0  ;;  %v2704_v14 = vmul.f32 %v6731_v0, %v6731_v0  ;;  %v7085_v55 = vrot.slane %v4515_v32, %v932_v50  ;;  %v7096_v0 = vrot.slane %v4515_v32, %v936_v56  ;;  %v2709_v50 = vmul.f32 %v6390_v23, %v6390_v23  ;;  %v4519_v32 = vld [vmem:[%s8052_s2 + $0x220] ss:$24 sps:$4 sm:$0xff]  }
 0x214   :  { %8218 = vst [vmem:[#allocation65_spill] sm:$0xff] %v7062_v21  ;;  %v7076_v24 = vadd.f32 %v2429_v19, %v2297_v42  ;;  %v2299_v58 = vadd.f32 %v2298_v52, %v6705_v26  ;;  %3551 = vmatpush2.bf16.msra.mxu0 %v4514_v28  ;;  %v4516_v19 = vld [vmem:[%s8052_s2 + $0x224] ss:$24 sps:$4 sm:$0xff]   ;;  %v2822_v42 = vadd.f32 %v2703_v10, %v2702_v49  ;;  %v4517_v28 = vld [vmem:[%s8052_s2 + $0x550] ss:$24 sps:$4 sm:$0xff]  }
 0x215   :  { %v2431_v27 = vpop.f32.mrf.mxu1  ;;  %v2300_v21 = vpop.f32.mrf.mxu0  ;;  %3552 = vmatprep.subr.bf16.mxu0 %v4516_v19  ;;  %v4518_v49 = vld [vmem:[%s8052_s2 + $0x524] ss:$24 sps:$4 sm:$0xff]   ;;  %v2708_v19 = vmul.f32 %v6381_v18, %v6381_v18 }
 0x216   :  { %8219 = vst [vmem:[#allocation66_spill] sm:$0xff] %v7076_v24  ;;  %v7090_v52 = vadd.f32 %v2431_v27, %v2299_v58  ;;  %3592 = vmatpush2.bf16.msra.mxu1 %v4517_v28  ;;  %v2301_v26 = vadd.f32 %v2300_v21, %v6717_v16  ;;  %v2715_v24 = vmul.f32 %v6409_v5, %v6409_v5 }
 0x217   :  { %v2433_v4 = vpop.f32.mrf.mxu1  ;;  %3593 = vmatprep.subr.bf16.mxu1 %v4518_v49  ;;  %v2470_v10 = vpop.f32.mrf.mxu0  ;;  %v2823_v58 = vadd.f32 %v2822_v42, %v2704_v14  ;;  %v2705_v27 = vmul.f32 %v6740_v9, %v6740_v9  ;;  %v2714_v28 = vmul.f32 %v6398_v29, %v6398_v29  ;;  %v2710_v14 = vmul.f32 %v6749_v48, %v6749_v48 }
 0x218   :  { %8220 = vst [vmem:[#allocation67_spill] sm:$0xff] %v7090_v52  ;;  %v7107_v21 = vadd.f32 %v2433_v4, %v2301_v26  ;;  %v2471_v56 = vadd.f32 %v2470_v10, %v7085_v55  ;;  %3553 = vmatpush2.bf16.msra.mxu0 %v4519_v32  ;;  %v4520_v4 = vld [vmem:[%s8052_s2 + $0x1f4] ss:$24 sps:$4 sm:$0xff]   ;;  %v4521_v10 = vld [vmem:[%s8052_s2 + $0x520] ss:$24 sps:$4 sm:$0xff]   ;;  %v2721_v16 = vmul.f32 %v6433_v30, %v6433_v30 }
 0x219   :  { %v2603_v42 = vpop.f32.mrf.mxu1  ;;  %v2472_v49 = vpop.f32.mrf.mxu0  ;;  %3554 = vmatprep.subr.bf16.mxu0 %v4520_v4  ;;  %v2836_v52 = vadd.f32 %v2715_v24, %v2714_v28  ;;  %v2716_v5 = vmul.f32 %v6767_v1, %v6767_v1  ;;  %v2824_v4 = vadd.f32 %v2823_v58, %v2705_v27  ;;  %v2722_v58 = vmul.f32 %v6785_v38, %v6785_v38 }
 0x21a   :  { %8221 = vst [vmem:[#allocation68_spill] sm:$0xff] %v7107_v21  ;;  %v7122_v26 = vadd.f32 %v2603_v42, %v2471_v56  ;;  %3594 = vmatpush2.bf16.msra.mxu1 %v4521_v10  ;;  %v2473_v32 = vadd.f32 %v2472_v49, %v7096_v0  ;;  %v2829_v21 = vadd.f32 %v2709_v50, %v2708_v19  ;;  %v4522_v56 = vld [vmem:[%s8052_s2 + $0x4f4] ss:$24 sps:$4 sm:$0xff]   ;;  %v4523_v50 = vld [vmem:[%s8052_s2 + $0x1f0] ss:$24 sps:$4 sm:$0xff]  }
 0x21b   :  { %v2605_v29 = vpop.f32.mrf.mxu1  ;;  %3595 = vmatprep.subr.bf16.mxu1 %v4522_v56  ;;  %v2474_v42 = vpop.f32.mrf.mxu0  ;;  %v2720_v19 = vmul.f32 %v6424_v62, %v6424_v62  ;;  %v2711_v56 = vmul.f32 %v6758_v35, %v6758_v35  ;;  %v2727_v62 = vmul.f32 %v6454_v13, %v6454_v13  ;;  %v2837_v1 = vadd.f32 %v2836_v52, %v2716_v5  ;;  %v4527_v5 = vld [vmem:[%s8052_s2 + $0x1c0] ss:$24 sps:$4 sm:$0xff]  }
 0x21c   :  { %v2706_v10 = vmul.f32 %v7122_v26, %v7122_v26  ;;  %v7137_v49 = vadd.f32 %v2605_v29, %v2473_v32  ;;  %v2475_v24 = vadd.f32 %v2474_v42, %v7085_v55  ;;  %3555 = vmatpush2.bf16.msra.mxu0 %v4523_v50  ;;  %v2830_v28 = vadd.f32 %v2829_v21, %v2710_v14  ;;  %v4524_v32 = vld [vmem:[%s8052_s2 + $0x1c4] ss:$24 sps:$4 sm:$0xff]   ;;  %v4525_v21 = vld [vmem:[%s8052_s2 + $0x4f0] ss:$24 sps:$4 sm:$0xff]  }
 0x21d   :  { %v2607_v27 = vpop.f32.mrf.mxu1  ;;  %v2476_v29 = vpop.f32.mrf.mxu0  ;;  %3556 = vmatprep.subr.bf16.mxu0 %v4524_v32  ;;  %v2843_v30 = vadd.f32 %v2721_v16, %v2720_v19  ;;  %v2717_v32 = vmul.f32 %v6776_v59, %v6776_v59 }
 0x21e   :  { %v2707_v42 = vmul.f32 %v7137_v49, %v7137_v49  ;;  %v7154_v50 = vadd.f32 %v2607_v27, %v2475_v24  ;;  %3596 = vmatpush2.bf16.msra.mxu1 %v4525_v21  ;;  %v2477_v14 = vadd.f32 %v2476_v29, %v7096_v0  ;;  %v2825_v38 = vadd.f32 %v2824_v4, %v2706_v10  ;;  %v4526_v24 = vld [vmem:[%s8052_s2 + $0x4c4] ss:$24 sps:$4 sm:$0xff]  }
 0x21f   :  { %v2609_v35 = vpop.f32.mrf.mxu1  ;;  %3597 = vmatprep.subr.bf16.mxu1 %v4526_v24  ;;  %v2480_v27 = vpop.f32.mrf.mxu0  ;;  %v2726_v4 = vmul.f32 %v6443_v7, %v6443_v7  ;;  %v2831_v10 = vadd.f32 %v2830_v28, %v2711_v56  ;;  %v2844_v19 = vadd.f32 %v2843_v30, %v2722_v58  ;;  %v2723_v24 = vmul.f32 %v6794_v46, %v6794_v46 }
 0x220   :  { %v2712_v21 = vmul.f32 %v7154_v50, %v7154_v50  ;;  %v7169_v29 = vadd.f32 %v2609_v35, %v2477_v14  ;;  %v2481_v16 = vadd.f32 %v2480_v27, %v7085_v55  ;;  %3557 = vmatpush2.bf16.msra.mxu0 %v4527_v5  ;;  %v2826_v52 = vadd.f32 %v2825_v38, %v2707_v42  ;;  %v4528_v35 = vld [vmem:[%s8052_s2 + $0x194] ss:$24 sps:$4 sm:$0xff]   ;;  %v4529_v38 = vld [vmem:[%s8052_s2 + $0x4c0] ss:$24 sps:$4 sm:$0xff]  }
 0x221   :  { %v2613_v13 = vpop.f32.mrf.mxu1  ;;  %v2482_v59 = vpop.f32.mrf.mxu0  ;;  %3558 = vmatprep.subr.bf16.mxu0 %v4528_v35  ;;  %v2850_v28 = vadd.f32 %v2727_v62, %v2726_v4  ;;  %v2732_v56 = vmul.f32 %v6470_v45, %v6470_v45  ;;  %v2728_v58 = vmul.f32 %v6803_v17, %v6803_v17  ;;  %v2838_v35 = vadd.f32 %v2837_v1, %v2717_v32  ;;  %v4531_v4 = vld [vmem:[%s8052_s2 + $0x190] ss:$24 sps:$4 sm:$0xff]  }
 0x222   :  { %v2713_v14 = vmul.f32 %v7169_v29, %v7169_v29  ;;  %v7184_v27 = vadd.f32 %v2613_v13, %v2481_v16  ;;  %3598 = vmatpush2.bf16.msra.mxu1 %v4529_v38  ;;  %v2483_v30 = vadd.f32 %v2482_v59, %v7096_v0  ;;  %2827 = vadd.xlane.f32.xlu1 %v2826_v52  ;;  %v4530_v13 = vld [vmem:[%s8052_s2 + $0x494] ss:$24 sps:$4 sm:$0xff]  }
 0x223   :  { %v2615_v42 = vpop.f32.mrf.mxu1  ;;  %3599 = vmatprep.subr.bf16.mxu1 %v4530_v13  ;;  %v2484_v16 = vpop.f32.mrf.mxu0  ;;  %v2832_v5 = vadd.f32 %v2831_v10, %v2712_v21  ;;  %v2733_v38 = vmul.f32 %v6479_v2, %v6479_v2  ;;  %v1975_v13 = vadd.f32 %v6504_v3, %v6344_v54  ;;  %v2845_v21 = vadd.f32 %v2844_v19, %v2723_v24 }
 0x224   :  { %v2718_v59 = vmul.f32 %v7184_v27, %v7184_v27  ;;  %v7199_v52 = vadd.f32 %v2615_v42, %v2483_v30  ;;  %v2485_v62 = vadd.f32 %v2484_v16, %v7085_v55  ;;  %3559 = vmatpush2.bf16.msra.mxu0 %v4531_v4  ;;  %v4532_v16 = vld [vmem:[%s8052_s2 + $0x490] ss:$24 sps:$4 sm:$0xff]   ;;  %v2851_v45 = vadd.f32 %v2850_v28, %v2728_v58 }
 0x225   :  { %v2617_v1 = vpop.f32.mrf.mxu1  ;;  %v2486_v32 = vpop.f32.mrf.mxu0  ;;  %v2833_v10 = vadd.f32 %v2832_v5, %v2713_v14  ;;  %v2729_v3 = vmul.f32 %v6812_v6, %v6812_v6  ;;  %v2734_v19 = vmul.f32 %v6821_v31, %v6821_v31  ;;  %v2857_v28 = vadd.f32 %v2733_v38, %v2732_v56 }
 0x226   :  { %v2719_v30 = vmul.f32 %v7199_v52, %v7199_v52  ;;  %v7211_v42 = vadd.f32 %v2617_v1, %v2485_v62  ;;  %3600 = vmatpush2.bf16.msra.mxu1 %v4532_v16  ;;  %v2487_v4 = vadd.f32 %v2486_v32, %v7096_v0  ;;  %v2839_v2 = vadd.f32 %v2838_v35, %v2718_v59 }
 0x227   :  { %v2619_v24 = vpop.f32.mrf.mxu1  ;;  %3561 = vmatmul.mubr.bf16.vlgmr.msra.gmra.mxu0 %v6559_v15  ;;  %2834 = vadd.xlane.f32.xlu0 %v2833_v10  ;;  %v2490_v14 = vpop.f32.mrf.mxu0  ;;  %v2738_v58 = vmul.f32 %v6487_v40, %v6487_v40  ;;  %v2739_v59 = vmul.f32 %v6498_v63, %v6498_v63  ;;  %v7232_v32 = vadd.f32 %v6506_v51, %v1975_v13 }
 0x228   :  { %v2724_v5 = vmul.f32 %v7211_v42, %v7211_v42  ;;  %v7224_v62 = vadd.f32 %v2619_v24, %v2487_v4  ;;  %v2491_v1 = vadd.f32 %v2490_v14, %v7085_v55  ;;  %v2840_v35 = vadd.f32 %v2839_v2, %v2719_v30 }
 0x229   :  { %8222 = vst [vmem:[#allocation69_spill] sm:$0xff] %v7232_v32  ;;  %3602 = vmatmul.mubr.bf16.vlgmr.msra.gmra.mxu1 %v6564_v12  ;;  %v2623_v15 = vpop.f32.mrf.mxu1  ;;  %v2492_v10 = vpop.f32.mrf.mxu0  ;;  %v2852_v38 = vadd.f32 %v2851_v45, %v2729_v3  ;;  %v2858_v30 = vadd.f32 %v2857_v28, %v2734_v19  ;;  %v2735_v24 = vmul.f32 %v6830_v25, %v6830_v25 }
 0x22a   :  { %v2725_v16 = vmul.f32 %v7224_v62, %v7224_v62  ;;  %v7237_v4 = vadd.f32 %v2623_v15, %v2491_v1  ;;  %v2493_v2 = vadd.f32 %v2492_v10, %v7096_v0  ;;  %2841 = vadd.xlane.f32.xlu1 %v2840_v35  ;;  %v2846_v56 = vadd.f32 %v2845_v21, %v2724_v5 }
 0x22b   :  { %v2740_v51 = vmul.f32 %v6839_v60, %v6839_v60  ;;  %v2625_v12 = vpop.f32.mrf.mxu1  ;;  %v2494_v13 = vpop.f32.mrf.mxu0  ;;  %v2864_v35 = vadd.f32 %v2739_v59, %v2738_v58  ;;  %v2744_v45 = vmul.f32 %v6514_v41, %v6514_v41  ;;  %v2745_v21 = vmul.f32 %v7232_v32, %v7232_v32 }
 0x22c   :  { %v2730_v14 = vmul.f32 %v7237_v4, %v7237_v4  ;;  %v7246_v63 = vadd.f32 %v2625_v12, %v2493_v2  ;;  %v2495_v1 = vadd.f32 %v2494_v13, %v7085_v55  ;;  %v2847_v15 = vadd.f32 %v2846_v56, %v2725_v16 }
 0x22d   :  { %v1985_v3 = vadd.f32 %v6538_v34, %v6344_v54  ;;  %v2627_v19 = vpop.f32.mrf.mxu1  ;;  %v2496_v5 = vpop.f32.mrf.mxu0  ;;  %v2859_v59 = vadd.f32 %v2858_v30, %v2735_v24  ;;  %v2865_v16 = vadd.f32 %v2864_v35, %v2740_v51  ;;  %v2741_v56 = vmul.f32 %v6848_v39, %v6848_v39 }
 0x22e   :  { %v2731_v28 = vmul.f32 %v7246_v63, %v7246_v63  ;;  %v7257_v10 = vadd.f32 %v2627_v19, %v2495_v1  ;;  %v2497_v2 = vadd.f32 %v2496_v5, %v7096_v0  ;;  %2848 = vadd.xlane.f32.xlu0 %v2847_v15  ;;  %v2853_v58 = vadd.f32 %v2852_v38, %v2730_v14 }
 0x22f   :  { %v2746_v12 = vmul.f32 %v6857_v11, %v6857_v11  ;;  %v2629_v34 = vpop.f32.mrf.mxu1  ;;  %v2500_v13 = vpop.f32.mrf.mxu0  ;;  %v2871_v15 = vadd.f32 %v2745_v21, %v2744_v45  ;;  %v2750_v38 = vmul.f32 %v6530_v33, %v6530_v33  ;;  %v2751_v30 = vmul.f32 %v6535_v44, %v6535_v44 }
 0x230   :  { %v2736_v32 = vmul.f32 %v7257_v10, %v7257_v10  ;;  %v7266_v41 = vadd.f32 %v2629_v34, %v2497_v2  ;;  %v2501_v1 = vadd.f32 %v2500_v13, %v7085_v55  ;;  %v2854_v19 = vadd.f32 %v2853_v58, %v2731_v28 }
 0x231   :  { %v7274_v24 = vadd.f32 %v6540_v22, %v1985_v3  ;;  %v2633_v51 = vpop.f32.mrf.mxu1  ;;  %v2502_v14 = vpop.f32.mrf.mxu0  ;;  %v2866_v21 = vadd.f32 %v2865_v16, %v2741_v56  ;;  %v2872_v28 = vadd.f32 %v2871_v15, %v2746_v12  ;;  %v2747_v58 = vmul.f32 %v6867_v37, %v6867_v37 }
 0x232   :  { %v2737_v35 = vmul.f32 %v7266_v41, %v7266_v41  ;;  %v7278_v5 = vadd.f32 %v2633_v51, %v2501_v1  ;;  %v2503_v2 = vadd.f32 %v2502_v14, %v7096_v0  ;;  %2855 = vadd.xlane.f32.xlu1 %v2854_v19  ;;  %v2860_v45 = vadd.f32 %v2859_v59, %v2736_v32 }
 0x233   :  { %8223 = vst [vmem:[#allocation70_spill] sm:$0xff] %v7274_v24  ;;  %v2752_v22 = vmul.f32 %v6875_v20, %v6875_v20  ;;  %v2635_v3 = vpop.f32.mrf.mxu1  ;;  %v2504_v34 = vpop.f32.mrf.mxu0  ;;  %v2878_v19 = vadd.f32 %v2751_v30, %v2750_v38  ;;  %v2756_v32 = vmul.f32 %v6542_v8, %v6542_v8  ;;  %v2757_v59 = vmul.f32 %v7274_v24, %v7274_v24 }
 0x234   :  { %v2742_v13 = vmul.f32 %v7278_v5, %v7278_v5  ;;  %v7287_v44 = vadd.f32 %v2635_v3, %v2503_v2  ;;  %v2505_v1 = vadd.f32 %v2504_v34, %v7085_v55  ;;  %v2861_v51 = vadd.f32 %v2860_v45, %v2737_v35 }
 0x235   :  { %v2637_v16 = vpop.f32.mrf.mxu1  ;;  %v2506_v56 = vpop.f32.mrf.mxu0  ;;  %v2873_v3 = vadd.f32 %v2872_v28, %v2747_v58  ;;  %v2879_v35 = vadd.f32 %v2878_v19, %v2752_v22  ;;  %v2753_v38 = vmul.f32 %v6892_v61, %v6892_v61  ;;  %v2758_v30 = vmul.f32 %v6897_v57, %v6897_v57 }
 0x236   :  { %v2743_v12 = vmul.f32 %v7287_v44, %v7287_v44  ;;  %v7296_v15 = vadd.f32 %v2637_v16, %v2505_v1  ;;  %v2507_v14 = vadd.f32 %v2506_v56, %v7096_v0  ;;  %2862 = vadd.xlane.f32.xlu0 %v2861_v51  ;;  %v2867_v2 = vadd.f32 %v2866_v21, %v2742_v13 }
 0x237   :  { %v2639_v45 = vpop.f32.mrf.mxu1  ;;  %v2510_v34 = vpop.f32.mrf.mxu0  ;;  %v2885_v51 = vadd.f32 %v2757_v59, %v2756_v32  ;;  %v2762_v21 = vmul.f32 %v6551_v36, %v6551_v36  ;;  %v2763_v28 = vmul.f32 %v6556_v47, %v6556_v47  ;;  %v2759_v32 = vmul.f32 %v6906_v43, %v6906_v43 }
 0x238   :  { %v2748_v24 = vmul.f32 %v7296_v15, %v7296_v15  ;;  %v7305_v8 = vadd.f32 %v2639_v45, %v2507_v14  ;;  %v2511_v1 = vadd.f32 %v2510_v34, %v7085_v55  ;;  %v2868_v16 = vadd.f32 %v2867_v2, %v2743_v12 }
 0x239   :  { %v2643_v58 = vpop.f32.mrf.mxu1  ;;  %v2512_v22 = vpop.f32.mrf.mxu0  ;;  %v2880_v45 = vadd.f32 %v2879_v35, %v2753_v38  ;;  %v2886_v12 = vadd.f32 %v2885_v51, %v2758_v30  ;;  %v2764_v59 = vmul.f32 %v6915_v53, %v6915_v53  ;;  %v8226_v35 = vld [vmem:[#allocation23_spill] sm:$0xff] }
 0x23a   :  { %v2749_v13 = vmul.f32 %v7305_v8, %v7305_v8  ;;  %v7314_v19 = vadd.f32 %v2643_v58, %v2511_v1  ;;  %v2513_v56 = vadd.f32 %v2512_v22, %v7096_v0  ;;  %2869 = vadd.xlane.f32.xlu1 %v2868_v16  ;;  %v2874_v14 = vadd.f32 %v2873_v3, %v2748_v24  ;;  %v8225_v24 = vld [vmem:[#allocation22_spill] sm:$0xff] }
 0x23b   :  { %v2645_v2 = vpop.f32.mrf.mxu1  ;;  %v2514_v34 = vpop.f32.mrf.mxu0  ;;  %v2892_v16 = vadd.f32 %v2763_v28, %v2762_v21  ;;  %v2768_v3 = vmul.f32 %v8225_v24, %v8225_v24  ;;  %v2769_v38 = vmul.f32 %v8226_v35, %v8226_v35  ;;  %v8228_v21 = vld [vmem:[#allocation50_spill] sm:$0xff] }
 0x23c   :  { %v2754_v47 = vmul.f32 %v7314_v19, %v7314_v19  ;;  %v7323_v36 = vadd.f32 %v2645_v2, %v2513_v56  ;;  %v2515_v1 = vadd.f32 %v2514_v34, %v7085_v55  ;;  %v2875_v58 = vadd.f32 %v2874_v14, %v2749_v13  ;;  %v8229_v14 = vld [vmem:[#allocation51_spill] sm:$0xff] }
 0x23d   :  { %v2647_v30 = vpop.f32.mrf.mxu1  ;;  %v2516_v51 = vpop.f32.mrf.mxu0  ;;  %v2887_v34 = vadd.f32 %v2886_v12, %v2759_v32  ;;  %v2893_v13 = vadd.f32 %v2892_v16, %v2764_v59  ;;  %v2765_v28 = vmul.f32 %v8228_v21, %v8228_v21  ;;  %v2770_v24 = vmul.f32 %v8229_v14, %v8229_v14  ;;  %v8232_v12 = vld [vmem:[#allocation25_spill] sm:$0xff] }
 0x23e   :  { %8224 = vst [vmem:[#allocation71_spill] sm:$0xff] %v7323_v36  ;;  %v2755_v22 = vmul.f32 %v7323_v36, %v7323_v36  ;;  %v7332_v53 = vadd.f32 %v2647_v30, %v2515_v1  ;;  %v2517_v56 = vadd.f32 %v2516_v51, %v7096_v0  ;;  %2876 = vadd.xlane.f32.xlu0 %v2875_v58 }
 0x23f   :  { %v2881_v2 = vadd.f32 %v2880_v45, %v2754_v47  ;;  %v2649_v35 = vpop.f32.mrf.mxu1  ;;  %v2520_v43 = vpop.f32.mrf.mxu0  ;;  %v2899_v58 = vadd.f32 %v2769_v38, %v2768_v3  ;;  %v8231_v47 = vld [vmem:[#allocation24_spill] sm:$0xff]  ;;  %v2775_v32 = vmul.f32 %v8232_v12, %v8232_v12 }
 0x240   :  { %8227 = vst [vmem:[#allocation72_spill] sm:$0xff] %v7332_v53  ;;  %v2760_v57 = vmul.f32 %v7332_v53, %v7332_v53  ;;  %v7341_v36 = vadd.f32 %v2649_v35, %v2517_v56  ;;  %v2521_v1 = vadd.f32 %v2520_v43, %v7085_v55  ;;  %v2774_v45 = vmul.f32 %v8231_v47, %v8231_v47  ;;  %v8234_v3 = vld [vmem:[#allocation52_spill] sm:$0xff] }
 0x241   :  { %v2882_v30 = vadd.f32 %v2881_v2, %v2755_v22  ;;  %v2653_v59 = vpop.f32.mrf.mxu1  ;;  %v2522_v16 = vpop.f32.mrf.mxu0  ;;  %v2894_v43 = vadd.f32 %v2893_v13, %v2765_v28  ;;  %v2900_v22 = vadd.f32 %v2899_v58, %v2770_v24  ;;  %v2771_v38 = vmul.f32 %v8234_v3, %v8234_v3  ;;  %v8235_v2 = vld [vmem:[#allocation53_spill] sm:$0xff] }
 0x242   :  { %8230 = vst [vmem:[#allocation73_spill] sm:$0xff] %v7341_v36  ;;  %v2761_v51 = vmul.f32 %v7341_v36, %v7341_v36  ;;  %v7350_v14 = vadd.f32 %v2653_v59, %v2521_v1  ;;  %v2523_v35 = vadd.f32 %v2522_v16, %v7096_v0  ;;  %v2888_v56 = vadd.f32 %v2887_v34, %v2760_v57  ;;  %v8237_v57 = vld [vmem:[#allocation26_spill] sm:$0xff]  ;;  %v8238_v34 = vld [vmem:[#allocation27_spill] sm:$0xff] }
 0x243   :  { %2883 = vadd.xlane.f32.xlu1 %v2882_v30  ;;  %v2776_v47 = vmul.f32 %v8235_v2, %v8235_v2  ;;  %v2655_v12 = vpop.f32.mrf.mxu1  ;;  %v2524_v21 = vpop.f32.mrf.mxu0  ;;  %v2906_v30 = vadd.f32 %v2775_v32, %v2774_v45  ;;  %v2780_v24 = vmul.f32 %v8237_v57, %v8237_v57  ;;  %v2781_v13 = vmul.f32 %v8238_v34, %v8238_v34  ;;  %v8240_v45 = vld [vmem:[#allocation54_spill] sm:$0xff] }
 0x244   :  { %8233 = vst [vmem:[#allocation74_spill] sm:$0xff] %v7350_v14  ;;  %v2766_v53 = vmul.f32 %v7350_v14, %v7350_v14  ;;  %v7359_v36 = vadd.f32 %v2655_v12, %v2523_v35  ;;  %v2525_v1 = vadd.f32 %v2524_v21, %v7085_v55  ;;  %v2889_v59 = vadd.f32 %v2888_v56, %v2761_v51  ;;  %v8241_v56 = vld [vmem:[#allocation55_spill] sm:$0xff] }
 0x245   :  { %v2657_v28 = vpop.f32.mrf.mxu1  ;;  %v2526_v58 = vpop.f32.mrf.mxu0  ;;  %v2901_v21 = vadd.f32 %v2900_v22, %v2771_v38  ;;  %v2907_v51 = vadd.f32 %v2906_v30, %v2776_v47  ;;  %v2777_v32 = vmul.f32 %v8240_v45, %v8240_v45  ;;  %v2782_v57 = vmul.f32 %v8241_v56, %v8241_v56 }
 0x246   :  { %8236 = vst [vmem:[#allocation75_spill] sm:$0xff] %v7359_v36  ;;  %v2767_v16 = vmul.f32 %v7359_v36, %v7359_v36  ;;  %v7368_v2 = vadd.f32 %v2657_v28, %v2525_v1  ;;  %v2527_v12 = vadd.f32 %v2526_v58, %v7096_v0  ;;  %2890 = vadd.xlane.f32.xlu0 %v2889_v59 }
 0x247   :  { %v2895_v35 = vadd.f32 %v2894_v43, %v2766_v53  ;;  %v2659_v34 = vpop.f32.mrf.mxu1  ;;  %v2530_v3 = vpop.f32.mrf.mxu0  ;;  %v2913_v59 = vadd.f32 %v2781_v13, %v2780_v24  ;;  %v8243_v53 = vld [vmem:[#allocation28_spill] sm:$0xff]  ;;  %v8244_v43 = vld [vmem:[#allocation29_spill] sm:$0xff] }
 0x248   :  { %8239 = vst [vmem:[#allocation76_spill] sm:$0xff] %v7368_v2  ;;  %v2772_v14 = vmul.f32 %v7368_v2, %v7368_v2  ;;  %v7377_v36 = vadd.f32 %v2659_v34, %v2527_v12  ;;  %v2531_v1 = vadd.f32 %v2530_v3, %v7085_v55  ;;  %v2786_v47 = vmul.f32 %v8243_v53, %v8243_v53  ;;  %v8246_v24 = vld [vmem:[#allocation56_spill] sm:$0xff] }
 0x249   :  { %v2896_v28 = vadd.f32 %v2895_v35, %v2767_v16  ;;  %v2787_v22 = vmul.f32 %v8244_v43, %v8244_v43  ;;  %v2663_v38 = vpop.f32.mrf.mxu1  ;;  %v2532_v30 = vpop.f32.mrf.mxu0  ;;  %v2908_v3 = vadd.f32 %v2907_v51, %v2777_v32  ;;  %v2914_v16 = vadd.f32 %v2913_v59, %v2782_v57  ;;  %v8247_v35 = vld [vmem:[#allocation57_spill] sm:$0xff] }
 0x24a   :  { %8242 = vst [vmem:[#allocation77_spill] sm:$0xff] %v7377_v36  ;;  %v2773_v58 = vmul.f32 %v7377_v36, %v7377_v36  ;;  %v7386_v56 = vadd.f32 %v2663_v38, %v2531_v1  ;;  %v2533_v34 = vadd.f32 %v2532_v30, %v7096_v0  ;;  %v2902_v12 = vadd.f32 %v2901_v21, %v2772_v14  ;;  %v8249_v14 = vld [vmem:[#allocation30_spill] sm:$0xff]  ;;  %v8250_v21 = vld [vmem:[#allocation31_spill] sm:$0xff] }
 0x24b   :  { %2897 = vadd.xlane.f32.xlu1 %v2896_v28  ;;  %v2783_v13 = vmul.f32 %v8246_v24, %v8246_v24  ;;  %v2788_v53 = vmul.f32 %v8247_v35, %v8247_v35  ;;  %v2665_v43 = vpop.f32.mrf.mxu1  ;;  %v2534_v45 = vpop.f32.mrf.mxu0  ;;  %v2920_v28 = vadd.f32 %v2787_v22, %v2786_v47  ;;  %v2792_v57 = vmul.f32 %v8249_v14, %v8249_v14  ;;  %v8252_v47 = vld [vmem:[#allocation58_spill] sm:$0xff] }
 0x24c   :  { %8245 = vst [vmem:[#allocation78_spill] sm:$0xff] %v7386_v56  ;;  %v2778_v2 = vmul.f32 %v7386_v56, %v7386_v56  ;;  %v7395_v36 = vadd.f32 %v2665_v43, %v2533_v34  ;;  %v2535_v1 = vadd.f32 %v2534_v45, %v7085_v55  ;;  %v2903_v38 = vadd.f32 %v2902_v12, %v2773_v58  ;;  %v8253_v12 = vld [vmem:[#allocation59_spill] sm:$0xff] }
 0x24d   :  { %v2793_v51 = vmul.f32 %v8250_v21, %v8250_v21  ;;  %v2667_v32 = vpop.f32.mrf.mxu1  ;;  %v2536_v59 = vpop.f32.mrf.mxu0  ;;  %v2915_v45 = vadd.f32 %v2914_v16, %v2783_v13  ;;  %v2921_v58 = vadd.f32 %v2920_v28, %v2788_v53  ;;  %v2789_v22 = vmul.f32 %v8252_v47, %v8252_v47 }
 0x24e   :  { %8248 = vst [vmem:[#allocation79_spill] sm:$0xff] %v7395_v36  ;;  %v2779_v30 = vmul.f32 %v7395_v36, %v7395_v36  ;;  %v7404_v35 = vadd.f32 %v2667_v32, %v2535_v1  ;;  %v2537_v43 = vadd.f32 %v2536_v59, %v7096_v0  ;;  %2904 = vadd.xlane.f32.xlu0 %v2903_v38 }
 0x24f   :  { %v2909_v34 = vadd.f32 %v2908_v3, %v2778_v2  ;;  %v2794_v14 = vmul.f32 %v8253_v12, %v8253_v12  ;;  %v2669_v21 = vpop.f32.mrf.mxu1  ;;  %v2540_v24 = vpop.f32.mrf.mxu0  ;;  %v2927_v38 = vadd.f32 %v2793_v51, %v2792_v57  ;;  %v8255_v2 = vld [vmem:[#allocation32_spill] sm:$0xff]  ;;  %v8256_v3 = vld [vmem:[#allocation33_spill] sm:$0xff] }
 0x250   :  { %8251 = vst [vmem:[#allocation80_spill] sm:$0xff] %v7404_v35  ;;  %v2784_v56 = vmul.f32 %v7404_v35, %v7404_v35  ;;  %v7413_v36 = vadd.f32 %v2669_v21, %v2537_v43  ;;  %v2541_v1 = vadd.f32 %v2540_v24, %v7085_v55  ;;  %v2798_v53 = vmul.f32 %v8255_v2, %v8255_v2  ;;  %v8257_v57 = vld [vmem:[#allocation60_spill] sm:$0xff] }
 0x251   :  { %v2910_v32 = vadd.f32 %v2909_v34, %v2779_v30  ;;  %v2799_v16 = vmul.f32 %v8256_v3, %v8256_v3  ;;  %v2673_v13 = vpop.f32.mrf.mxu1  ;;  %v2542_v28 = vpop.f32.mrf.mxu0  ;;  %v2922_v24 = vadd.f32 %v2921_v58, %v2789_v22  ;;  %v2928_v30 = vadd.f32 %v2927_v38, %v2794_v14  ;;  %v8258_v34 = vld [vmem:[#allocation61_spill] sm:$0xff] }
 0x252   :  { %8254 = vst [vmem:[#allocation81_spill] sm:$0xff] %v7413_v36  ;;  %v2785_v59 = vmul.f32 %v7413_v36, %v7413_v36  ;;  %v7422_v12 = vadd.f32 %v2673_v13, %v2541_v1  ;;  %v2543_v21 = vadd.f32 %v2542_v28, %v7096_v0  ;;  %v2916_v43 = vadd.f32 %v2915_v45, %v2784_v56 }
 0x253   :  { %2911 = vadd.xlane.f32.xlu1 %v2910_v32  ;;  %v2795_v51 = vmul.f32 %v8257_v57, %v8257_v57  ;;  %v2800_v2 = vmul.f32 %v8258_v34, %v8258_v34  ;;  %v2675_v3 = vpop.f32.mrf.mxu1  ;;  %v2544_v47 = vpop.f32.mrf.mxu0  ;;  %v2934_v32 = vadd.f32 %v2799_v16, %v2798_v53  ;;  %v8261_v57 = vld [vmem:[#allocation62_spill] sm:$0xff] }
 0x254   :  { %v2790_v35 = vmul.f32 %v7422_v12, %v7422_v12  ;;  %v7431_v36 = vadd.f32 %v2675_v3, %v2543_v21  ;;  %v2545_v1 = vadd.f32 %v2544_v47, %v7085_v55  ;;  %v2917_v13 = vadd.f32 %v2916_v43, %v2785_v59 }
 0x255   :  { %v2677_v56 = vpop.f32.mrf.mxu1  ;;  %v2546_v45 = vpop.f32.mrf.mxu0  ;;  %v2929_v28 = vadd.f32 %v2928_v30, %v2795_v51  ;;  %v2935_v34 = vadd.f32 %v2934_v32, %v2800_v2  ;;  %v2801_v3 = vmul.f32 %v8261_v57, %v8261_v57  ;;  %v8265_v32 = vld [vmem:[#allocation36_spill] sm:$0xff] }
 0x256   :  { %8259 = vst [vmem:[#allocation82_spill] sm:$0xff] %v7431_v36  ;;  %v2791_v14 = vmul.f32 %v7431_v36, %v7431_v36  ;;  %v7436_v58 = vadd.f32 %v2677_v56, %v2545_v1  ;;  %v2547_v22 = vadd.f32 %v2546_v45, %v7096_v0  ;;  %2918 = vadd.xlane.f32.xlu0 %v2917_v13  ;;  %v8263_v1 = vld [vmem:[#allocation37_spill] sm:$0xff]  ;;  %v8274_v36 = vld [vmem:[#allocation8_spill] sm:$0xff] }
 0x257   :  { %v2923_v38 = vadd.f32 %v2922_v24, %v2790_v35  ;;  %v2679_v21 = vpop.f32.mrf.mxu1  ;;  %v2550_v47 = vpop.f32.mrf.mxu0  ;;  %v2811_v56 = vmul.f32 %v8263_v1, %v8263_v1  ;;  %v2810_v45 = vmul.f32 %v8265_v32, %v8265_v32 }
 0x258   :  { %8260 = vst [vmem:[#allocation83_spill] sm:$0xff] %v7436_v58  ;;  %v2796_v53 = vmul.f32 %v7436_v58, %v7436_v58  ;;  %v7443_v16 = vadd.f32 %v2679_v21, %v2547_v22  ;;  %v2551_v59 = vadd.f32 %v2550_v47, %v7085_v55  ;;  %v2936_v22 = vadd.f32 %v2935_v34, %v2801_v3  ;;  %v8266_v21 = vld [vmem:[#allocation65_spill] sm:$0xff] }
 0x259   :  { %v2924_v43 = vadd.f32 %v2923_v38, %v2791_v14  ;;  %v2683_v13 = vpop.f32.mrf.mxu1  ;;  %v2552_v35 = vpop.f32.mrf.mxu0  ;;  %v2812_v14 = vmul.f32 %v8266_v21, %v8266_v21 }
 0x25a   :  { %8262 = vst [vmem:[#allocation84_spill] sm:$0xff] %v7443_v16  ;;  %v2797_v2 = vmul.f32 %v7443_v16, %v7443_v16  ;;  %v7450_v24 = vadd.f32 %v2683_v13, %v2551_v59  ;;  %v2553_v30 = vadd.f32 %v2552_v35, %v7096_v0  ;;  %v2930_v51 = vadd.f32 %v2929_v28, %v2796_v53 }
 0x25b   :  { %2925 = vadd.xlane.f32.xlu1 %v2924_v43  ;;  %v2685_v38 = vpop.f32.mrf.mxu1  ;;  %v2554_v47 = vpop.f32.mrf.mxu0  ;;  %v2948_v35 = vadd.f32 %v2811_v56, %v2810_v45 }
 0x25c   :  { %8264 = vst [vmem:[#allocation85_spill] sm:$0xff] %v7450_v24  ;;  %v2802_v1 = vmul.f32 %v7450_v24, %v7450_v24  ;;  %v7459_v57 = vadd.f32 %v2685_v38, %v2553_v30  ;;  %v2555_v59 = vadd.f32 %v2554_v47, %v7085_v55  ;;  %v2931_v13 = vadd.f32 %v2930_v51, %v2797_v2  ;;  %v8268_v30 = vld [vmem:[#allocation66_spill] sm:$0xff] }
 0x25d   :  { %v2687_v43 = vpop.f32.mrf.mxu1  ;;  %v2556_v28 = vpop.f32.mrf.mxu0  ;;  %v2949_v32 = vadd.f32 %v2948_v35, %v2812_v14  ;;  %v2813_v38 = vmul.f32 %v8268_v30, %v8268_v30 }
 0x25e   :  { %8267 = vst [vmem:[#allocation86_spill] sm:$0xff] %v7459_v57  ;;  %v2803_v53 = vmul.f32 %v7459_v57, %v7459_v57  ;;  %v7464_v34 = vadd.f32 %v2687_v43, %v2555_v59  ;;  %v2557_v3 = vadd.f32 %v2556_v28, %v7096_v0  ;;  %2932 = vadd.xlane.f32.xlu0 %v2931_v13 }
 0x25f   :  { %v2937_v21 = vadd.f32 %v2936_v22, %v2802_v1  ;;  %v2689_v16 = vpop.f32.mrf.mxu1  ;;  %v2560_v24 = vpop.f32.mrf.mxu0  ;;  %v2950_v22 = vadd.f32 %v2949_v32, %v2813_v38  ;;  %v8272_v38 = vld [vmem:[#allocation6_spill] sm:$0xff] }
 0x260   :  { %v7469_v47 = vadd.f32 %v2689_v16, %v2557_v3  ;;  %v2561_v56 = vadd.f32 %v2560_v24, %v7085_v55 }
 0x261   :  { %v2938_v2 = vadd.f32 %v2937_v21, %v2803_v53  ;;  %v2693_v51 = vpop.f32.mrf.mxu1  ;;  %v2562_v45 = vpop.f32.mrf.mxu0 }
 0x262   :  { %v7472_v57 = vadd.f32 %v2693_v51, %v2561_v56  ;;  %v2563_v59 = vadd.f32 %v2562_v45, %v7096_v0 }
 0x263   :  { %2939 = vadd.xlane.f32.xlu1 %v2938_v2  ;;  %v2695_v13 = vpop.f32.mrf.mxu1  ;;  %v2564_v1 = vpop.f32.mrf.mxu0 }
 0x264   :  { %8269 = vst [vmem:[#allocation87_spill] sm:$0xff] %v7472_v57  ;;  %v2814_v14 = vmul.f32 %v7472_v57, %v7472_v57  ;;  %v7477_v35 = vadd.f32 %v2695_v13, %v2563_v59  ;;  %v2565_v16 = vadd.f32 %v2564_v1, %v7085_v55 }
 0x265   :  { %v2697_v43 = vpop.f32.mrf.mxu1  ;;  %v2566_v24 = vpop.f32.mrf.mxu0 }
 0x266   :  { %8270 = vst [vmem:[#allocation88_spill] sm:$0xff] %v7477_v35  ;;  %v2815_v21 = vmul.f32 %v7477_v35, %v7477_v35  ;;  %v7482_v28 = vadd.f32 %v2697_v43, %v2565_v16  ;;  %v2567_v53 = vadd.f32 %v2566_v24, %v7096_v0  ;;  %v2951_v3 = vadd.f32 %v2950_v22, %v2814_v14 }
 0x267   :  { %v2699_v56 = vpop.f32.mrf.mxu1  ;;  %v3398_v2 = vpop.f32.mrf.mxu0 }
 0x268   :  { %v7485_v32 = vadd.f32 %v2699_v56, %v2567_v53  ;;  %v3399_v51 = vadd.f32 %v3398_v2, %v8272_v38  ;;  %v2952_v45 = vadd.f32 %v2951_v3, %v2815_v21 }
 0x269   :  { %v3439_v59 = vpop.f32.mrf.mxu1  ;;  %v3400_v13 = vpop.f32.mrf.mxu0 }
 0x26a   :  { %8271 = vst [vmem:[#allocation89_spill] sm:$0xff] %v7485_v32  ;;  %v7488_v1 = vadd.f32 %v3439_v59, %v3399_v51  ;;  %v3401_v57 = vadd.f32 %v3400_v13, %v6344_v54  ;;  %2953 = vadd.xlane.f32.xlu1 %v2952_v45  ;;  %v8273_v32 = vld [vmem:[#allocation7_spill] sm:$0xff] }
 0x26b   :  { %v3441_v35 = vpop.f32.mrf.mxu1  ;;  %v3402_v16 = vpop.f32.mrf.mxu0 }
 0x26c   :  { %v7491_v43 = vadd.f32 %v3441_v35, %v3401_v57 }
 0x26d   :  { %v3443_v24 = vpop.f32.mrf.mxu1  ;;  %v3403_v22 = vpop.f32.mrf.mxu0 }
 0x26f   :  { %v3444_v14 = vpop.f32.mrf.mxu1 }
 0x2a7   :  { %v7493_v30 = vpop.f32.mrf.mxu0 }
 0x2a9   :  { %v7495_v53 = vpop.f32.mrf.mxu1  ;;  %v7497_v56 = vpop.f32.mrf.mxu0 }
 0x2ab   :  { %v7499_v21 = vpop.f32.mrf.mxu1  ;;  %v3484_v3 = vpop.f32.mrf.mxu0 }
 0x2ac   :  { %v2828_v2 = vpop.xlane.xlu1 %2827 }
 0x2ad   :  { %v3525_v38 = vpop.f32.mrf.mxu1  ;;  %v2962_v54 = vmax.f32 %v2828_v2, 1e-24  ;;  %v3485_v51 = vpop.f32.mrf.mxu0  ;;  %v8275_v2 = vld [vmem:[#allocation42_spill] sm:$0xff] }
 0x2af   :  { %4217 = vrsqrt.f32 %v2962_v54  ;;  %v3526_v45 = vpop.f32.mrf.mxu1 }
 0x2b0   :  { %v2835_v57 = vpop.xlane.xlu0 %2834 }
 0x2b1   :  { %v2963_v35 = vmax.f32 %v2835_v57, 1e-24 }
 0x2b3   :  { %4219 = vrsqrt.f32 %v2963_v35  ;;  %v2842_v59 = vpop.xlane.xlu1 %2841  ;;  %v8276_v35 = vld [vmem:[#allocation43_spill] sm:$0xff] }
 0x2b4   :  { %v2964_v13 = vmax.f32 %v2842_v59, 1e-24 }
 0x2b6   :  { %4221 = vrsqrt.f32 %v2964_v13 }
 0x2b7   :  { %v2849_v16 = vpop.xlane.xlu0 %2848 }
 0x2b8   :  { %v2965_v24 = vmax.f32 %v2849_v16, 1e-24 }
 0x2ba   :  { %4223 = vrsqrt.f32 %v2965_v24 }
 0x2bb   :  { %v2856_v22 = vpop.xlane.xlu1 %2855 }
 0x2bc   :  { %v4218_v14 = vpop.eup %4217  ;;  %v2966_v58 = vmax.f32 %v2856_v22, 1e-24  ;;  %v8279_v22 = vld [vmem:[#allocation44_spill] sm:$0xff] }
 0x2bd   :  { %v3002_v3 = vmul.f32 %v4218_v14, %v8273_v32  ;;  %v3003_v38 = vmul.f32 %v4218_v14, %v8274_v36  ;;  %v3004_v51 = vmul.f32 %v4218_v14, %v8275_v2  ;;  %v3005_v54 = vmul.f32 %v4218_v14, %v6740_v9 }
 0x2be   :  { %v3006_v45 = vmul.f32 %v4218_v14, %v7122_v26  ;;  %v3007_v57 = vmul.f32 %v4218_v14, %v7137_v49  ;;  %4225 = vrsqrt.f32 %v2966_v58 }
 0x2bf   :  { %3122 = vst [vmem:[%s8054_s4] sm:$0xff] %v3002_v3  ;;  %3123 = vst [vmem:[%s8054_s4 + $0x8] sm:$0xff] %v3003_v38  ;;  %v2863_v36 = vpop.xlane.xlu0 %2862  ;;  %v8280_v3 = vld [vmem:[#allocation45_spill] sm:$0xff] }
 0x2c0   :  { %3124 = vst [vmem:[%s8054_s4 + $0x10] sm:$0xff] %v3004_v51  ;;  %3125 = vst [vmem:[%s8054_s4 + $0x18] sm:$0xff] %v3005_v54  ;;  %v4220_v9 = vpop.eup %4219  ;;  %v2967_v26 = vmax.f32 %v2863_v36, 1e-24  ;;  %v8282_v36 = vld [vmem:[#allocation12_spill] sm:$0xff] }
 0x2c1   :  { %3126 = vst [vmem:[%s8054_s4 + $0x20] sm:$0xff] %v3006_v45  ;;  %3127 = vst [vmem:[%s8054_s4 + $0x28] sm:$0xff] %v3007_v57  ;;  %v3008_v49 = vmul.f32 %v4220_v9, %v6381_v18  ;;  %v3009_v58 = vmul.f32 %v4220_v9, %v6390_v23  ;;  %v3010_v32 = vmul.f32 %v4220_v9, %v6749_v48  ;;  %v8277_v23 = vld [vmem:[#allocation9_spill] sm:$0xff]  ;;  %v8281_v45 = vld [vmem:[#allocation11_spill] sm:$0xff] }
 0x2c2   :  { %v3011_v59 = vmul.f32 %v4220_v9, %v8276_v35  ;;  %v3012_v13 = vmul.f32 %v4220_v9, %v7154_v50  ;;  %v3013_v16 = vmul.f32 %v4220_v9, %v7169_v29  ;;  %4227 = vrsqrt.f32 %v2967_v26  ;;  %v8278_v50 = vld [vmem:[#allocation10_spill] sm:$0xff] }
 0x2c3   :  { %v4222_v24 = vpop.eup %4221  ;;  %3128 = vst [vmem:[%s8054_s4 + $0x30] sm:$0xff] %v3008_v49  ;;  %3129 = vst [vmem:[%s8054_s4 + $0x38] sm:$0xff] %v3009_v58  ;;  %v2870_v18 = vpop.xlane.xlu1 %2869  ;;  %v8283_v26 = vld [vmem:[#allocation46_spill] sm:$0xff] }
 0x2c4   :  { %3130 = vst [vmem:[%s8054_s4 + $0x40] sm:$0xff] %v3010_v32  ;;  %3131 = vst [vmem:[%s8054_s4 + $0x48] sm:$0xff] %v3011_v59  ;;  %v3014_v48 = vmul.f32 %v4222_v24, %v8277_v23  ;;  %v3015_v29 = vmul.f32 %v4222_v24, %v8278_v50  ;;  %v3016_v14 = vmul.f32 %v4222_v24, %v8279_v22  ;;  %v2968_v54 = vmax.f32 %v2870_v18, 1e-24 }
 0x2c5   :  { %3132 = vst [vmem:[%s8054_s4 + $0x50] sm:$0xff] %v3012_v13  ;;  %3133 = vst [vmem:[%s8054_s4 + $0x58] sm:$0xff] %v3013_v16  ;;  %v3017_v38 = vmul.f32 %v4222_v24, %v8280_v3  ;;  %v3018_v2 = vmul.f32 %v4222_v24, %v7184_v27  ;;  %v3019_v51 = vmul.f32 %v4222_v24, %v7199_v52  ;;  %v8284_v13 = vld [vmem:[#allocation13_spill] sm:$0xff] }
 0x2c6   :  { %3134 = vst [vmem:[%s8054_s4 + $0x60] sm:$0xff] %v3014_v48  ;;  %3135 = vst [vmem:[%s8054_s4 + $0x68] sm:$0xff] %v3015_v29  ;;  %4229 = vrsqrt.f32 %v2968_v54 }
 0x2c7   :  { %3136 = vst [vmem:[%s8054_s4 + $0x70] sm:$0xff] %v3016_v14  ;;  %3137 = vst [vmem:[%s8054_s4 + $0x78] sm:$0xff] %v3017_v38  ;;  %v4224_v27 = vpop.eup %4223  ;;  %v2877_v52 = vpop.xlane.xlu0 %2876 }
 0x2c8   :  { %3138 = vst [vmem:[%s8054_s4 + $0x80] sm:$0xff] %v3018_v2  ;;  %3139 = vst [vmem:[%s8054_s4 + $0x88] sm:$0xff] %v3019_v51  ;;  %v3020_v57 = vmul.f32 %v4224_v27, %v8281_v45  ;;  %v3021_v9 = vmul.f32 %v4224_v27, %v8282_v36  ;;  %v3022_v49 = vmul.f32 %v4224_v27, %v8283_v26  ;;  %v2969_v59 = vmax.f32 %v2877_v52, 1e-24  ;;  %v8287_v51 = vld [vmem:[#allocation16_spill] sm:$0xff]  ;;  %v8289_v36 = vld [vmem:[#allocation69_spill] sm:$0xff] }
 0x2c9   :  { %v3023_v58 = vmul.f32 %v4224_v27, %v6794_v46  ;;  %v3024_v32 = vmul.f32 %v4224_v27, %v7211_v42  ;;  %v3025_v35 = vmul.f32 %v4224_v27, %v7224_v62 }
 0x2ca   :  { %3140 = vst [vmem:[%s8054_s4 + $0x90] sm:$0xff] %v3020_v57  ;;  %3141 = vst [vmem:[%s8054_s4 + $0x98] sm:$0xff] %v3021_v9  ;;  %4231 = vrsqrt.f32 %v2969_v59 }
 0x2cb   :  { %3142 = vst [vmem:[%s8054_s4 + $0xa0] sm:$0xff] %v3022_v49  ;;  %3143 = vst [vmem:[%s8054_s4 + $0xa8] sm:$0xff] %v3023_v58  ;;  %v4226_v46 = vpop.eup %4225 }
 0x2cc   :  { %3144 = vst [vmem:[%s8054_s4 + $0xb0] sm:$0xff] %v3024_v32  ;;  %3145 = vst [vmem:[%s8054_s4 + $0xb8] sm:$0xff] %v3025_v35  ;;  %v2884_v42 = vpop.xlane.xlu1 %2883  ;;  %v3026_v62 = vmul.f32 %v4226_v46, %v6443_v7  ;;  %v3027_v16 = vmul.f32 %v4226_v46, %v8284_v13  ;;  %v3028_v24 = vmul.f32 %v4226_v46, %v6803_v17  ;;  %v8290_v35 = vld [vmem:[#allocation38_spill] sm:$0xff] }
 0x2cd   :  { %v3029_v18 = vmul.f32 %v4226_v46, %v6812_v6  ;;  %v3030_v23 = vmul.f32 %v4226_v46, %v7237_v4  ;;  %v3031_v48 = vmul.f32 %v4226_v46, %v7246_v63  ;;  %v2970_v50 = vmax.f32 %v2884_v42, 1e-24  ;;  %v8285_v63 = vld [vmem:[#allocation14_spill] sm:$0xff]  ;;  %v8286_v4 = vld [vmem:[#allocation15_spill] sm:$0xff] }
 0x2ce   :  { %3146 = vst [vmem:[%s8054_s4 + $0xc0] sm:$0xff] %v3026_v62  ;;  %3147 = vst [vmem:[%s8054_s4 + $0xc8] sm:$0xff] %v3027_v16  ;;  %v3481_v59 = vadd.f32 %v7493_v30, %v8290_v35  ;;  %v8291_v30 = vld [vmem:[#allocation18_spill] sm:$0xff]  ;;  %v8292_v16 = vld [vmem:[#allocation71_spill] sm:$0xff] }
 0x2cf   :  { %3148 = vst [vmem:[%s8054_s4 + $0xd0] sm:$0xff] %v3028_v24  ;;  %3149 = vst [vmem:[%s8054_s4 + $0xd8] sm:$0xff] %v3029_v18  ;;  %v4228_v17 = vpop.eup %4227  ;;  %4233 = vrsqrt.f32 %v2970_v50  ;;  %v2891_v7 = vpop.xlane.xlu0 %2890  ;;  %v3611_v18 = vmul.f32 %v7491_v43, %v7491_v43  ;;  %v8309_v35 = vld [vmem:[#allocation75_spill] sm:$0xff] }
 0x2d0   :  { %3150 = vst [vmem:[%s8054_s4 + $0xe0] sm:$0xff] %v3030_v23  ;;  %3151 = vst [vmem:[%s8054_s4 + $0xe8] sm:$0xff] %v3031_v48  ;;  %v3032_v6 = vmul.f32 %v4228_v17, %v8285_v63  ;;  %v3033_v29 = vmul.f32 %v4228_v17, %v8286_v4  ;;  %v3034_v22 = vmul.f32 %v4228_v17, %v6821_v31  ;;  %v2971_v2 = vmax.f32 %v2891_v7, 1e-24  ;;  %v8293_v48 = vld [vmem:[#allocation40_spill] sm:$0xff] }
 0x2d1   :  { %v3035_v14 = vmul.f32 %v4228_v17, %v6830_v25  ;;  %v3036_v3 = vmul.f32 %v4228_v17, %v7257_v10  ;;  %v3037_v38 = vmul.f32 %v4228_v17, %v7266_v41  ;;  %v7704_v23 = vadd.f32 %v7495_v53, %v3481_v59  ;;  %v8296_v17 = vld [vmem:[#allocation41_spill] sm:$0xff] }
 0x2d2   :  { %3152 = vst [vmem:[%s8054_s4 + $0xf0] sm:$0xff] %v3032_v6  ;;  %3153 = vst [vmem:[%s8054_s4 + $0xf8] sm:$0xff] %v3033_v29  ;;  %4235 = vrsqrt.f32 %v2971_v2  ;;  %v2817_v7 = vmul.f32 %v8296_v17, %v8296_v17  ;;  %v8297_v6 = vld [vmem:[#allocation19_spill] sm:$0xff]  ;;  %v8298_v29 = vld [vmem:[#allocation70_spill] sm:$0xff] }
 0x2d3   :  { %3154 = vst [vmem:[%s8054_s4 + $0x100] sm:$0xff] %v3034_v22  ;;  %3155 = vst [vmem:[%s8054_s4 + $0x108] sm:$0xff] %v3035_v14  ;;  %v4230_v25 = vpop.eup %4229  ;;  %v8299_v14 = vld [vmem:[#allocation47_spill] sm:$0xff] }
 0x2d4   :  { %3156 = vst [vmem:[%s8054_s4 + $0x110] sm:$0xff] %v3036_v3  ;;  %3157 = vst [vmem:[%s8054_s4 + $0x118] sm:$0xff] %v3037_v38  ;;  %v2898_v41 = vpop.xlane.xlu1 %2897  ;;  %v3038_v10 = vmul.f32 %v4230_v25, %v6487_v40  ;;  %v3039_v54 = vmul.f32 %v4230_v25, %v8287_v51  ;;  %v3040_v27 = vmul.f32 %v4230_v25, %v6839_v60  ;;  %v8288_v60 = vld [vmem:[#allocation17_spill] sm:$0xff]  ;;  %v8300_v38 = vld [vmem:[#allocation48_spill] sm:$0xff] }
 0x2d5   :  { %v2972_v31 = vmax.f32 %v2898_v41, 1e-24  ;;  %v3041_v52 = vmul.f32 %v4230_v25, %v6848_v39  ;;  %v3042_v45 = vmul.f32 %v4230_v25, %v7278_v5  ;;  %v3043_v57 = vmul.f32 %v4230_v25, %v7287_v44  ;;  %v8301_v25 = vld [vmem:[#allocation72_spill] sm:$0xff] }
 0x2d6   :  { %3158 = vst [vmem:[%s8054_s4 + $0x120] sm:$0xff] %v3038_v10  ;;  %3159 = vst [vmem:[%s8054_s4 + $0x128] sm:$0xff] %v3039_v54  ;;  %v3610_v41 = vmul.f32 %v7488_v1, %v7488_v1  ;;  %v8302_v10 = vld [vmem:[#allocation73_spill] sm:$0xff] }
 0x2d7   :  { %4237 = vrsqrt.f32 %v2972_v31  ;;  %3160 = vst [vmem:[%s8054_s4 + $0x130] sm:$0xff] %v3040_v27  ;;  %3161 = vst [vmem:[%s8054_s4 + $0x138] sm:$0xff] %v3041_v52  ;;  %v2905_v40 = vpop.xlane.xlu0 %2904  ;;  %v4232_v39 = vpop.eup %4231  ;;  %v8303_v27 = vld [vmem:[#allocation39_spill] sm:$0xff] }
 0x2d8   :  { %3162 = vst [vmem:[%s8054_s4 + $0x140] sm:$0xff] %v3042_v45  ;;  %3163 = vst [vmem:[%s8054_s4 + $0x148] sm:$0xff] %v3043_v57  ;;  %v2973_v44 = vmax.f32 %v2905_v40, 1e-24  ;;  %v3044_v5 = vmul.f32 %v4232_v39, %v8288_v60  ;;  %v3045_v9 = vmul.f32 %v4232_v39, %v8289_v36  ;;  %v3046_v26 = vmul.f32 %v4232_v39, %v6857_v11  ;;  %v8305_v60 = vld [vmem:[#allocation21_spill] sm:$0xff] }
 0x2d9   :  { %v3047_v49 = vmul.f32 %v4232_v39, %v6867_v37  ;;  %v3048_v58 = vmul.f32 %v4232_v39, %v7296_v15  ;;  %v3049_v32 = vmul.f32 %v4232_v39, %v7305_v8  ;;  %v2816_v52 = vmul.f32 %v8303_v27, %v8303_v27  ;;  %v8306_v36 = vld [vmem:[#allocation49_spill] sm:$0xff] }
 0x2da   :  { %4239 = vrsqrt.f32 %v2973_v44  ;;  %3164 = vst [vmem:[%s8054_s4 + $0x150] sm:$0xff] %v3044_v5  ;;  %3165 = vst [vmem:[%s8054_s4 + $0x158] sm:$0xff] %v3045_v9  ;;  %v3617_v45 = vsel %vm3269_vm0, %v3611_v18, 0.0  ;;  %v3612_v57 = vmul.f32 %v7704_v23, %v7704_v23 }
 0x2db   :  { %3166 = vst [vmem:[%s8054_s4 + $0x160] sm:$0xff] %v3046_v26  ;;  %3167 = vst [vmem:[%s8054_s4 + $0x168] sm:$0xff] %v3047_v49  ;;  %v8307_v26 = vld [vmem:[#allocation50_spill] sm:$0xff] }
 0x2dc   :  { %v2912_v8 = vpop.xlane.xlu1 %2911  ;;  %v4234_v37 = vpop.eup %4233  ;;  %3168 = vst [vmem:[%s8054_s4 + $0x170] sm:$0xff] %v3048_v58  ;;  %3169 = vst [vmem:[%s8054_s4 + $0x178] sm:$0xff] %v3049_v32  ;;  %v8308_v58 = vld [vmem:[#allocation74_spill] sm:$0xff] }
 0x2dd   :  { %v2974_v11 = vmax.f32 %v2912_v8, 1e-24  ;;  %v3050_v15 = vmul.f32 %v4234_v37, %v6530_v33  ;;  %v3051_v46 = vmul.f32 %v4234_v37, %v8291_v30  ;;  %v3052_v42 = vmul.f32 %v4234_v37, %v6875_v20 }
 0x2de   :  { %v3053_v62 = vmul.f32 %v4234_v37, %v6892_v61  ;;  %v3054_v13 = vmul.f32 %v4234_v37, %v7314_v19  ;;  %v3055_v24 = vmul.f32 %v4234_v37, %v8292_v16  ;;  %v3483_v33 = vadd.f32 %v7497_v56, %v8293_v48  ;;  %v8294_v19 = vld [vmem:[#allocation34_spill] sm:$0xff]  ;;  %v8295_v56 = vld [vmem:[#allocation35_spill] sm:$0xff] }
 0x2df   :  { %4241 = vrsqrt.f32 %v2974_v11  ;;  %3170 = vst [vmem:[%s8054_s4 + $0x180] sm:$0xff] %v3050_v15  ;;  %3171 = vst [vmem:[%s8054_s4 + $0x188] sm:$0xff] %v3051_v46  ;;  %v2919_v20 = vpop.xlane.xlu0 %2918  ;;  %v4236_v61 = vpop.eup %4235  ;;  %v2804_v53 = vmul.f32 %v8294_v19, %v8294_v19  ;;  %v2805_v50 = vmul.f32 %v8295_v56, %v8295_v56  ;;  %v2955_v11 = vadd.f32 %v2817_v7, %v2816_v52  ;;  %v8310_v15 = vld [vmem:[#allocation63_spill] sm:$0xff]  ;;  %v8311_v48 = vld [vmem:[#allocation22_spill] sm:$0xff] }
 0x2e0   :  { %3172 = vst [vmem:[%s8054_s4 + $0x190] sm:$0xff] %v3052_v42  ;;  %3173 = vst [vmem:[%s8054_s4 + $0x198] sm:$0xff] %v3053_v62  ;;  %v2975_v63 = vmax.f32 %v2919_v20, 1e-24  ;;  %v3056_v4 = vmul.f32 %v4236_v61, %v8297_v6  ;;  %v3057_v22 = vmul.f32 %v4236_v61, %v8298_v29  ;;  %v3058_v3 = vmul.f32 %v4236_v61, %v8299_v14  ;;  %v8312_v20 = vld [vmem:[#allocation23_spill] sm:$0xff]  ;;  %v8314_v7 = vld [vmem:[#allocation52_spill] sm:$0xff] }
 0x2e1   :  { %3174 = vst [vmem:[%s8054_s4 + $0x1a0] sm:$0xff] %v3054_v13  ;;  %3175 = vst [vmem:[%s8054_s4 + $0x1a8] sm:$0xff] %v3055_v24  ;;  %v3059_v2 = vmul.f32 %v4236_v61, %v8300_v38  ;;  %v3060_v31 = vmul.f32 %v4236_v61, %v8301_v25  ;;  %v3061_v51 = vmul.f32 %v4236_v61, %v8302_v10  ;;  %v3616_v46 = vsel %vm3269_vm0, %v3610_v41, 0.0  ;;  %v8315_v6 = vld [vmem:[#allocation76_spill] sm:$0xff]  ;;  %v8316_v29 = vld [vmem:[#allocation77_spill] sm:$0xff] }
 0x2e2   :  { %4243 = vrsqrt.f32 %v2975_v63  ;;  %v7746_v40 = vadd.f32 %v7499_v21, %v3483_v33  ;;  %3176 = vst [vmem:[%s8054_s4 + $0x1b0] sm:$0xff] %v3056_v4  ;;  %3177 = vst [vmem:[%s8054_s4 + $0x1b8] sm:$0xff] %v3057_v22  ;;  %v8304_v21 = vld [vmem:[#allocation20_spill] sm:$0xff]  ;;  %v2941_v37 = vadd.f32 %v2805_v50, %v2804_v53  ;;  %v2806_v30 = vmul.f32 %v8310_v15, %v8310_v15  ;;  %v8313_v53 = vld [vmem:[#allocation51_spill] sm:$0xff] }
 0x2e3   :  { %3178 = vst [vmem:[%s8054_s4 + $0x1c0] sm:$0xff] %v3058_v3  ;;  %3179 = vst [vmem:[%s8054_s4 + $0x1c8] sm:$0xff] %v3059_v2  ;;  %v3618_v62 = vadd.f32 %v3617_v45, %v3616_v46  ;;  %v3619_v13 = vsel %vm3269_vm0, %v3612_v57, 0.0  ;;  %v8317_v25 = vld [vmem:[#allocation64_spill] sm:$0xff]  ;;  %v8318_v10 = vld [vmem:[#allocation67_spill] sm:$0xff] }
 0x2e4   :  { %v4238_v54 = vpop.eup %4237  ;;  %v2926_v39 = vpop.xlane.xlu1 %2925  ;;  %3180 = vst [vmem:[%s8054_s4 + $0x1d0] sm:$0xff] %v3060_v31  ;;  %3181 = vst [vmem:[%s8054_s4 + $0x1d8] sm:$0xff] %v3061_v51  ;;  %v3613_v16 = vmul.f32 %v7746_v40, %v7746_v40  ;;  %v2942_v41 = vadd.f32 %v2941_v37, %v2806_v30  ;;  %v2807_v31 = vmul.f32 %v8317_v25, %v8317_v25 }
 0x2e5   :  { %v3062_v44 = vmul.f32 %v4238_v54, %v8304_v21  ;;  %v3063_v5 = vmul.f32 %v4238_v54, %v8305_v60  ;;  %v3064_v9 = vmul.f32 %v4238_v54, %v8306_v36  ;;  %v3065_v49 = vmul.f32 %v4238_v54, %v8307_v26  ;;  %v8321_v36 = vld [vmem:[#allocation53_spill] sm:$0xff]  ;;  %v8322_v26 = vld [vmem:[#allocation54_spill] sm:$0xff] }
 0x2e6   :  { %v3066_v32 = vmul.f32 %v4238_v54, %v8308_v58  ;;  %v3067_v59 = vmul.f32 %v4238_v54, %v8309_v35  ;;  %v2976_v8 = vmax.f32 %v2926_v39, 1e-24  ;;  %v2818_v51 = vmul.f32 %v8318_v10, %v8318_v10 }
 0x2e7   :  { %3182 = vst [vmem:[%s8054_s4 + $0x1e0] sm:$0xff] %v3062_v44  ;;  %3183 = vst [vmem:[%s8054_s4 + $0x1e8] sm:$0xff] %v3063_v5  ;;  %v4240_v42 = vpop.eup %4239  ;;  %v3562_v24 = vpop.f32.mrf.mxu0  ;;  %v3620_v52 = vadd.f32 %v3619_v13, %v3618_v62  ;;  %v3621_v45 = vsel %vm3269_vm0, %v3613_v16, 0.0  ;;  %v8319_v44 = vld [vmem:[#allocation24_spill] sm:$0xff]  ;;  %v2943_v62 = vadd.f32 %v2942_v41, %v2807_v31 }
 0x2e8   :  { %3184 = vst [vmem:[%s8054_s4 + $0x1f0] sm:$0xff] %v3064_v9  ;;  %3185 = vst [vmem:[%s8054_s4 + $0x1f8] sm:$0xff] %v3065_v49  ;;  %4245 = vrsqrt.f32 %v2976_v8  ;;  %v2933_v18 = vpop.xlane.xlu0 %2932  ;;  %v3068_v33 = vmul.f32 %v4240_v42, %v8311_v48  ;;  %v3069_v61 = vmul.f32 %v4240_v42, %v8312_v20  ;;  %v3070_v50 = vmul.f32 %v4240_v42, %v8313_v53  ;;  %v8325_v16 = vld [vmem:[#allocation68_spill] sm:$0xff] }
 0x2e9   :  { %3186 = vst [vmem:[%s8054_s4 + $0x200] sm:$0xff] %v3066_v32  ;;  %3187 = vst [vmem:[%s8054_s4 + $0x208] sm:$0xff] %v3067_v59  ;;  %v3071_v63 = vmul.f32 %v4240_v42, %v8314_v7  ;;  %v3072_v4 = vmul.f32 %v4240_v42, %v8315_v6  ;;  %v3073_v22 = vmul.f32 %v4240_v42, %v8316_v29  ;;  %v3603_v3 = vpop.f32.mrf.mxu1  ;;  %v2977_v38 = vmax.f32 %v2933_v18, 1e-24  ;;  %v3564_v2 = vpop.f32.mrf.mxu0  ;;  %v8323_v32 = vld [vmem:[#allocation78_spill] sm:$0xff]  ;;  %v8324_v59 = vld [vmem:[#allocation79_spill] sm:$0xff] }
 0x2ea   :  { %v3563_v14 = vadd.f32 %v3562_v24, %v7085_v55  ;;  %3188 = vst [vmem:[%s8054_s4 + $0x210] sm:$0xff] %v3068_v33  ;;  %3189 = vst [vmem:[%s8054_s4 + $0x218] sm:$0xff] %v3069_v61  ;;  %v3565_v55 = vadd.f32 %v3564_v2, %v7096_v0  ;;  %v8320_v0 = vld [vmem:[#allocation25_spill] sm:$0xff]  ;;  %v2956_v13 = vadd.f32 %v2955_v11, %v2818_v51 }
 0x2eb   :  { %3190 = vst [vmem:[%s8054_s4 + $0x220] sm:$0xff] %v3070_v50  ;;  %3191 = vst [vmem:[%s8054_s4 + $0x228] sm:$0xff] %v3071_v63  ;;  %4247 = vrsqrt.f32 %v2977_v38  ;;  %v3605_v39 = vpop.f32.mrf.mxu1  ;;  %v3566_v21 = vpop.f32.mrf.mxu0  ;;  %v2819_v24 = vmul.f32 %v8325_v16, %v8325_v16  ;;  %v2808_v48 = vmul.f32 %v7464_v34, %v7464_v34  ;;  %v3622_v61 = vadd.f32 %v3621_v45, %v3620_v52  ;;  %v8326_v50 = vld [vmem:[#allocation26_spill] sm:$0xff]  ;;  %v8327_v63 = vld [vmem:[#allocation27_spill] sm:$0xff] }
 0x2ec   :  { %v4242_v54 = vpop.eup %4241  ;;  %3192 = vst [vmem:[%s8054_s4 + $0x230] sm:$0xff] %v3072_v4  ;;  %3193 = vst [vmem:[%s8054_s4 + $0x238] sm:$0xff] %v3073_v22  ;;  %v7827_v57 = vadd.f32 %v3603_v3, %v3563_v14  ;;  %v2940_v58 = vpop.xlane.xlu1 %2939  ;;  %v7837_v30 = vadd.f32 %v3605_v39, %v3565_v55  ;;  %v8328_v4 = vld [vmem:[#allocation55_spill] sm:$0xff]  ;;  %v8329_v22 = vld [vmem:[#allocation56_spill] sm:$0xff]  ;;  %v2809_v55 = vmul.f32 %v7469_v47, %v7469_v47 }
 0x2ed   :  { %v3074_v60 = vmul.f32 %v4242_v54, %v8319_v44  ;;  %v3075_v5 = vmul.f32 %v4242_v54, %v8320_v0  ;;  %v3076_v9 = vmul.f32 %v4242_v54, %v8321_v36  ;;  %v3077_v49 = vmul.f32 %v4242_v54, %v8322_v26  ;;  %v3607_v46 = vpop.f32.mrf.mxu1  ;;  %v3567_v42 = vpop.f32.mrf.mxu0  ;;  %v8330_v3 = vld [vmem:[#allocation80_spill] sm:$0xff]  ;;  %v8331_v2 = vld [vmem:[#allocation81_spill] sm:$0xff] }
 0x2ee   :  { %v3078_v35 = vmul.f32 %v4242_v54, %v8323_v32  ;;  %v3079_v8 = vmul.f32 %v4242_v54, %v8324_v59  ;;  %v3614_v37 = vmul.f32 %v7827_v57, %v7827_v57  ;;  %v2978_v11 = vmax.f32 %v2940_v58, 1e-24  ;;  %v8332_v0 = vld [vmem:[#allocation28_spill] sm:$0xff]  ;;  %v8333_v36 = vld [vmem:[#allocation29_spill] sm:$0xff]  ;;  %v8335_v58 = vld [vmem:[#allocation58_spill] sm:$0xff] }
 0x2ef   :  { %3194 = vst [vmem:[%s8054_s4 + $0x240] sm:$0xff] %v3074_v60  ;;  %3195 = vst [vmem:[%s8054_s4 + $0x248] sm:$0xff] %v3075_v5  ;;  %v4244_v18 = vpop.eup %4243  ;;  %v3615_v33 = vmul.f32 %v7837_v30, %v7837_v30  ;;  %v3608_v20 = vpop.f32.mrf.mxu1  ;;  %v2820_v54 = vmul.f32 %v7482_v28, %v7482_v28  ;;  %v2944_v39 = vadd.f32 %v2943_v62, %v2808_v48  ;;  %v8334_v26 = vld [vmem:[#allocation57_spill] sm:$0xff]  ;;  %v8336_v59 = vld [vmem:[#allocation82_spill] sm:$0xff] }
 0x2f0   :  { %3196 = vst [vmem:[%s8054_s4 + $0x250] sm:$0xff] %v3076_v9  ;;  %3197 = vst [vmem:[%s8054_s4 + $0x258] sm:$0xff] %v3077_v49  ;;  %v3623_v53 = vsel %vm3269_vm0, %v3614_v37, 0.0  ;;  %v3080_v7 = vmul.f32 %v4244_v18, %v8326_v50  ;;  %v3081_v6 = vmul.f32 %v4244_v18, %v8327_v63  ;;  %v3082_v29 = vmul.f32 %v4244_v18, %v8328_v4  ;;  %v8337_v37 = vld [vmem:[#allocation89_spill] sm:$0xff]  ;;  %v8340_v48 = vld [vmem:[#allocation59_spill] sm:$0xff] }
 0x2f1   :  { %3198 = vst [vmem:[%s8054_s4 + $0x260] sm:$0xff] %v3078_v35  ;;  %3199 = vst [vmem:[%s8054_s4 + $0x268] sm:$0xff] %v3079_v8  ;;  %v3083_v14 = vmul.f32 %v4244_v18, %v8329_v22  ;;  %v3084_v38 = vmul.f32 %v4244_v18, %v8330_v3  ;;  %v3085_v41 = vmul.f32 %v4244_v18, %v8331_v2  ;;  %4249 = vrsqrt.f32 %v2978_v11  ;;  %v8339_v11 = vld [vmem:[#allocation31_spill] sm:$0xff]  ;;  %v8341_v20 = vld [vmem:[#allocation60_spill] sm:$0xff] }
 0x2f2   :  { %v3624_v31 = vadd.f32 %v3623_v53, %v3622_v61  ;;  %3200 = vst [vmem:[%s8054_s4 + $0x270] sm:$0xff] %v3080_v7  ;;  %3201 = vst [vmem:[%s8054_s4 + $0x278] sm:$0xff] %v3081_v6  ;;  %v3625_v51 = vsel %vm3269_vm0, %v3615_v33, 0.0  ;;  %v2957_v44 = vadd.f32 %v2956_v13, %v2819_v24  ;;  %v2821_v46 = vmul.f32 %v8337_v37, %v8337_v37  ;;  %v8338_v13 = vld [vmem:[#allocation30_spill] sm:$0xff]  ;;  %v8342_v53 = vld [vmem:[#allocation83_spill] sm:$0xff] }
 0x2f3   :  { %3202 = vst [vmem:[%s8054_s4 + $0x280] sm:$0xff] %v3082_v29  ;;  %3203 = vst [vmem:[%s8054_s4 + $0x288] sm:$0xff] %v3083_v14  ;;  %v2954_v45 = vpop.xlane.xlu1 %2953  ;;  %v8343_v7 = vld [vmem:[#allocation84_spill] sm:$0xff]  ;;  %v8345_v14 = vld [vmem:[#allocation33_spill] sm:$0xff] }
 0x2f4   :  { %3204 = vst [vmem:[%s8054_s4 + $0x290] sm:$0xff] %v3084_v38  ;;  %3205 = vst [vmem:[%s8054_s4 + $0x298] sm:$0xff] %v3085_v41  ;;  %v3626_v52 = vadd.f32 %v3625_v51, %v3624_v31  ;;  %v2980_v60 = vmax.f32 %v2954_v45, 1e-24  ;;  %v2958_v42 = vadd.f32 %v2957_v44, %v2820_v54  ;;  %v8344_v29 = vld [vmem:[#allocation32_spill] sm:$0xff]  ;;  %v8346_v38 = vld [vmem:[#allocation61_spill] sm:$0xff] }
 0x2f5   :  { %v4246_v21 = vpop.eup %4245  ;;  %v8347_v41 = vld [vmem:[#allocation62_spill] sm:$0xff]  ;;  %v8348_v51 = vld [vmem:[#allocation85_spill] sm:$0xff] }
 0x2f6   :  { %v3086_v5 = vmul.f32 %v4246_v21, %v8332_v0  ;;  %v3087_v9 = vmul.f32 %v4246_v21, %v8333_v36  ;;  %v3088_v49 = vmul.f32 %v4246_v21, %v8334_v26  ;;  %v3089_v32 = vmul.f32 %v4246_v21, %v8335_v58  ;;  %3627 = vadd.xlane.f32.xlu0 %v3626_v52  ;;  %v8349_v54 = vld [vmem:[#allocation86_spill] sm:$0xff]  ;;  %v8351_v44 = vld [vmem:[#allocation37_spill] sm:$0xff]  ;;  %v8354_v26 = vld [vmem:[#allocation87_spill] sm:$0xff] }
 0x2f7   :  { %v3090_v35 = vmul.f32 %v4246_v21, %v7422_v12  ;;  %v3091_v8 = vmul.f32 %v4246_v21, %v8336_v59  ;;  %4251 = vrsqrt.f32 %v2980_v60  ;;  %v2945_v12 = vadd.f32 %v2944_v39, %v2809_v55  ;;  %v8350_v39 = vld [vmem:[#allocation36_spill] sm:$0xff]  ;;  %v8352_v0 = vld [vmem:[#allocation65_spill] sm:$0xff]  ;;  %v8353_v36 = vld [vmem:[#allocation66_spill] sm:$0xff] }
 0x2f8   :  { %3206 = vst [vmem:[%s8054_s4 + $0x2a0] sm:$0xff] %v3086_v5  ;;  %3207 = vst [vmem:[%s8054_s4 + $0x2a8] sm:$0xff] %v3087_v9  ;;  %v4248_v62 = vpop.eup %4247  ;;  %v2959_v6 = vadd.f32 %v2958_v42, %v2821_v46  ;;  %v8355_v58 = vld [vmem:[#allocation88_spill] sm:$0xff] }
 0x2f9   :  { %3208 = vst [vmem:[%s8054_s4 + $0x2b0] sm:$0xff] %v3088_v49  ;;  %3209 = vst [vmem:[%s8054_s4 + $0x2b8] sm:$0xff] %v3089_v32  ;;  %v3092_v24 = vmul.f32 %v4248_v62, %v8338_v13  ;;  %v3093_v18 = vmul.f32 %v4248_v62, %v8339_v11  ;;  %v3094_v33 = vmul.f32 %v4248_v62, %v8340_v48 }
 0x2fa   :  { %3210 = vst [vmem:[%s8054_s4 + $0x2c0] sm:$0xff] %v3090_v35  ;;  %3211 = vst [vmem:[%s8054_s4 + $0x2c8] sm:$0xff] %v3091_v8  ;;  %v3095_v61 = vmul.f32 %v4248_v62, %v8341_v20  ;;  %2946 = vadd.xlane.f32.xlu0 %v2945_v12  ;;  %v3096_v50 = vmul.f32 %v4248_v62, %v8342_v53  ;;  %v3097_v63 = vmul.f32 %v4248_v62, %v8343_v7 }
 0x2fb   :  { %3212 = vst [vmem:[%s8054_s4 + $0x2d0] sm:$0xff] %v3092_v24  ;;  %3213 = vst [vmem:[%s8054_s4 + $0x2d8] sm:$0xff] %v3093_v18 }
 0x2fc   :  { %3214 = vst [vmem:[%s8054_s4 + $0x2e0] sm:$0xff] %v3094_v33  ;;  %3215 = vst [vmem:[%s8054_s4 + $0x2e8] sm:$0xff] %v3095_v61 }
 0x2fd   :  { %3216 = vst [vmem:[%s8054_s4 + $0x2f0] sm:$0xff] %v3096_v50  ;;  %3217 = vst [vmem:[%s8054_s4 + $0x2f8] sm:$0xff] %v3097_v63 }
 0x2fe   :  { %2960 = vadd.xlane.f32.xlu0 %v2959_v6  ;;  %v4250_v4 = vpop.eup %4249 }
 0x2ff   :  { %v3098_v22 = vmul.f32 %v4250_v4, %v8344_v29  ;;  %v3099_v3 = vmul.f32 %v4250_v4, %v8345_v14  ;;  %v3100_v2 = vmul.f32 %v4250_v4, %v8346_v38  ;;  %v3101_v31 = vmul.f32 %v4250_v4, %v8347_v41 }
 0x300   :  { %v3102_v55 = vmul.f32 %v4250_v4, %v8348_v51  ;;  %v3103_v52 = vmul.f32 %v4250_v4, %v8349_v54 }
 0x301   :  { %3218 = vst [vmem:[%s8054_s4 + $0x300] sm:$0xff] %v3098_v22  ;;  %3219 = vst [vmem:[%s8054_s4 + $0x308] sm:$0xff] %v3099_v3 }
 0x302   :  { %3220 = vst [vmem:[%s8054_s4 + $0x310] sm:$0xff] %v3100_v2  ;;  %3221 = vst [vmem:[%s8054_s4 + $0x318] sm:$0xff] %v3101_v31 }
 0x303   :  { %3222 = vst [vmem:[%s8054_s4 + $0x320] sm:$0xff] %v3102_v55  ;;  %3223 = vst [vmem:[%s8054_s4 + $0x328] sm:$0xff] %v3103_v52 }
 0x304   :  { %v4252_v45 = vpop.eup %4251 }
 0x305   :  { %v3110_v21 = vmul.f32 %v4252_v45, %v8350_v39  ;;  %v3111_v60 = vmul.f32 %v4252_v45, %v8351_v44  ;;  %v3112_v5 = vmul.f32 %v4252_v45, %v8352_v0  ;;  %v3113_v9 = vmul.f32 %v4252_v45, %v8353_v36 }
 0x306   :  { %v3114_v49 = vmul.f32 %v4252_v45, %v8354_v26  ;;  %v3115_v32 = vmul.f32 %v4252_v45, %v8355_v58 }
 0x307   :  { %3230 = vst [vmem:[%s8054_s4 + $0x360] sm:$0xff] %v3110_v21  ;;  %3231 = vst [vmem:[%s8054_s4 + $0x368] sm:$0xff] %v3111_v60 }
 0x308   :  { %3232 = vst [vmem:[%s8054_s4 + $0x370] sm:$0xff] %v3112_v5  ;;  %3233 = vst [vmem:[%s8054_s4 + $0x378] sm:$0xff] %v3113_v9 }
 0x309   :  { %3234 = vst [vmem:[%s8054_s4 + $0x380] sm:$0xff] %v3114_v49  ;;  %3235 = vst [vmem:[%s8054_s4 + $0x388] sm:$0xff] %v3115_v32 }
 0x37f   :  { %v3628_v35 = vpop.xlane.xlu0 %3627 }
 0x380   :  { %v3629_v59 = vmax.f32 %v3628_v35, 1e-24 }
 0x382   :  { %4253 = vrsqrt.f32 %v3629_v59 }
 0x383   :  { %v2947_v8 = vpop.xlane.xlu0 %2946 }
 0x384   :  { %v2979_v46 = vmax.f32 %v2947_v8, 1e-24 }
 0x386   :  { %4255 = vrsqrt.f32 %v2979_v46 }
 0x387   :  { %v2961_v12 = vpop.xlane.xlu0 %2960 }
 0x388   :  { %v2981_v42 = vmax.f32 %v2961_v12, 1e-24 }
 0x38a   :  { %4257 = vrsqrt.f32 %v2981_v42 }
 0x38f   :  { %v4254_v62 = vpop.eup %4253 }
 0x390   :  { %v3631_v13 = vmul.f32 %v4254_v62, %v7488_v1  ;;  %v3632_v24 = vmul.f32 %v4254_v62, %v7491_v43  ;;  %v3633_v11 = vmul.f32 %v4254_v62, %v7704_v23  ;;  %v3634_v18 = vmul.f32 %v4254_v62, %v7746_v40 }
 0x391   :  { %v3635_v48 = vmul.f32 %v4254_v62, %v7827_v57  ;;  %v3636_v33 = vmul.f32 %v4254_v62, %v7837_v30  ;;  %v8356_v57 = vld [vmem:[#allocation5_spill] sm:$0xff] }
 0x392   :  { %v3643_v20 = vcombine.low %v3631_v13, %v3632_v24  ;;  %v3644_v61 = vcombine.low %v3633_v11, %v3634_v18 }
 0x393   :  { %v4256_v53 = vpop.eup %4255  ;;  %v3660_v50 = vcombine.low %v3635_v48, %v3636_v33 }
 0x394   :  { %v3104_v7 = vmul.f32 %v4256_v53, %v8294_v19  ;;  %v3105_v63 = vmul.f32 %v4256_v53, %v8295_v56  ;;  %v3106_v1 = vmul.f32 %v4256_v53, %v8310_v15  ;;  %v3107_v43 = vmul.f32 %v4256_v53, %v8317_v25 }
 0x395   :  { %v3108_v23 = vmul.f32 %v4256_v53, %v7464_v34  ;;  %v3109_v40 = vmul.f32 %v4256_v53, %v7469_v47  ;;  %v3651_v30 = vrot.slane %v3643_v20, %v8356_v57  ;;  %v3658_v6 = vrot.slane %v3644_v61, %v8356_v57  ;;  %3882 = vst.sshfl [vmem:[#allocation2 + $0x8] sm:$0x33 pattern:$0x76325410] %v3660_v50 }
 0x396   :  { %3224 = vst [vmem:[%s8054_s4 + $0x330] sm:$0xff] %v3104_v7  ;;  %3225 = vst [vmem:[%s8054_s4 + $0x338] sm:$0xff] %v3105_v63 }
 0x397   :  { %3226 = vst [vmem:[%s8054_s4 + $0x340] sm:$0xff] %v3106_v1  ;;  %3227 = vst [vmem:[%s8054_s4 + $0x348] sm:$0xff] %v3107_v43  ;;  %v4258_v34 = vpop.eup %4257  ;;  %v3659_v47 = vcombine.low %v3651_v30, %v3658_v6 }
 0x398   :  { %3228 = vst [vmem:[%s8054_s4 + $0x350] sm:$0xff] %v3108_v23  ;;  %3229 = vst [vmem:[%s8054_s4 + $0x358] sm:$0xff] %v3109_v40  ;;  %v3116_v19 = vmul.f32 %v4258_v34, %v8303_v27  ;;  %v3117_v56 = vmul.f32 %v4258_v34, %v8296_v17  ;;  %v3118_v15 = vmul.f32 %v4258_v34, %v8318_v10 }
 0x399   :  { %v3119_v25 = vmul.f32 %v4258_v34, %v8325_v16  ;;  %v3120_v4 = vmul.f32 %v4258_v34, %v7482_v28  ;;  %v3121_v29 = vmul.f32 %v4258_v34, %v8337_v37  ;;  %3670 = vst [vmem:[#allocation2] sm:$0xff] %v3659_v47 }
 0x39a   :  { %3236 = vst [vmem:[%s8054_s4 + $0x390] sm:$0xff] %v3116_v19  ;;  %3237 = vst [vmem:[%s8054_s4 + $0x398] sm:$0xff] %v3117_v56 }
 0x39b   :  { %3238 = vst [vmem:[%s8054_s4 + $0x3a0] sm:$0xff] %v3118_v15  ;;  %3239 = vst [vmem:[%s8054_s4 + $0x3a8] sm:$0xff] %v3119_v25 }
 0x39c   :  { %4544 = shalt.err (!%p4541_p4)
}
 0x39d   :  { %3683 = dma.vmem_to_hbm [thread:$0]  %s3681_s19, 192, %s8055_s5, [#allocation3]   ;;  %3240 = vst [vmem:[%s8054_s4 + $0x3b0] sm:$0xff] %v3120_v4  ;;  %3241 = vst [vmem:[%s8054_s4 + $0x3b8] sm:$0xff] %v3121_v29 }
 0x39e   :  { %4553 = dma.done.wait [#allocation3], 192  }
 0x39f   :  { %4554 = vsyncadd [#allocation3], 4294967104 }
 0x3a0   :  { %3689 = vsyncpa [#allocation3], 1 }

</bundles_post_ra>
